<compile_context>
chip_gen: v5e
topology: v5e:2x2
jax: 0.10.0
libtpu: 0.0.40
codegen_flags: <defaults>
</compile_context>

<pallas_src>
import functools

import jax
import jax.numpy as jnp
import numpy as np
from jax.experimental import pallas as pl
from jax.experimental.pallas import tpu as pltpu


# ----------------------------------------------------------------------------
# Fused Pallas kernel: whole residual encoder for one batch element.
# ----------------------------------------------------------------------------
def _encoder_kernel(x_ref, *refs, metas):
    """x_ref: (1, H, W*Cin)  channel-minor flattened NHWC input.

    refs = [W1, b1, W2, b2, R] per block, then the output ref last.
      Wk: (KH, Win*Cin, Wo*Cout)  banded matmul weights (one per kernel row)
      bk: (1, Wo*Cout)            bias tiled over output columns
      R : (Win*Cin, Wo2*Cout)     1x1 residual conv, width-crop folded in
    o_ref: (1, 1, Wo_last*Cout_last) -- only the h==0 output row
      (the module returns x[:, :, 0, :]).
    """
    o_ref = refs[-1]
    p_refs = refs[:-1]

    act = x_ref[0]                                     # (H, W*Cin), f32
    r = 0
    for m in metas:
        w1_ref, b1_ref, w2_ref, b2_ref, res_ref = p_refs[r:r + 5]
        r += 5

        # conv1 + bias + ReLU   (KH banded matmuls, K >= 128)
        acc = None
        for i in range(m["kh1"]):
            part = jnp.dot(act[i:i + m["ho1"], :], w1_ref[i],
                           preferred_element_type=jnp.float32)
            acc = part if acc is None else acc + part
        h = jnp.maximum(acc + b1_ref[...], 0.0)        # (Ho1, Wo1*Chid)

        # conv2 + bias + ReLU
        acc = None
        for i in range(m["kh2"]):
            part = jnp.dot(h[i:i + m["ho2"], :], w2_ref[i],
                           preferred_element_type=jnp.float32)
            acc = part if acc is None else acc + part
        main = jnp.maximum(acc + b2_ref[...], 0.0)     # (Ho2, Wo2*Cout)

        # residual: 1x1 conv (width-crop folded into weights) + height-crop
        res = jnp.dot(act, res_ref[...], preferred_element_type=jnp.float32)
        res = res[m["crop_h"]:m["crop_h"] + m["ho2"], :]
        act = main + res
        if m["relu"]:                                  # inter-block ReLU
            act = jnp.maximum(act, 0.0)

    o_ref[0] = act[0:1, :].astype(o_ref.dtype)


# ----------------------------------------------------------------------------
# Wrapper-side weight packing (one-time layout plumbing, outside the kernel).
# ----------------------------------------------------------------------------
def _pack_conv(w, bias, w_in, wo):
    """PyTorch conv weight (Cout, Cin, KH, KW) -> banded matmul form.

    W_stack[i][win*Cin+ci, wo*Cout+co] = w[co, ci, i, win-wo]  (0 <= win-wo < KW)
    bias_flat[0, wo*Cout+co]           = bias[co]
    so conv(x)[ho, wo, co] = sum_i x2d[ho+i, :] @ W_stack[i] + bias_flat,
    where x2d is the (H, W*Cin) channel-minor flattening of x.
    """
    cout, cin, kh, kw = w.shape
    mats = []
    for i in range(kh):
        m = jnp.zeros((w_in * cin, wo * cout), jnp.float32)
        for j in range(kw):
            sel = jnp.eye(w_in, wo, k=-j, dtype=jnp.float32)   # win == wo + j
            m = m + jnp.kron(sel, w[:, :, i, j].T.astype(jnp.float32))
        mats.append(m)
    w_stack = jnp.stack(mats, axis=0)
    if bias is None:
        b_flat = jnp.zeros((1, wo * cout), jnp.float32)
    else:
        b_flat = jnp.tile(bias.astype(jnp.float32), (wo,)).reshape(1, wo * cout)
    return w_stack, b_flat


def _pack_residual(w_res, cin, w_in, wo_main, crop_w):
    """1x1 residual conv (or identity when Cin==Cout) with the width-crop folded in."""
    if w_res is None:
        core = jnp.eye(cin, dtype=jnp.float32)
    else:
        core = w_res[:, :, 0, 0].T.astype(jnp.float32)         # (Cin, Cout)
    sel = jnp.eye(w_in, wo_main, k=-crop_w, dtype=jnp.float32)  # win == wo + crop
    return jnp.kron(sel, core)                                  # (Win*Cin, Wo*Cout)


# ----------------------------------------------------------------------------
# Encoder forward (single fused pallas_call)
# ----------------------------------------------------------------------------
def encoder_forward(x_nchw, params_list):
    B, cin0, h0, w0 = x_nchw.shape
    # NCHW -> NHWC -> lane-dense 2D (H, W*C) per sample (channel minor).
    x2d = jnp.transpose(x_nchw, (0, 2, 3, 1)).reshape(B, h0, w0 * cin0)
    x2d = x2d.astype(jnp.float32)

    packed, metas = [], []
    H, W, C = h0, w0, cin0
    n_blocks = len(params_list)
    for idx, p in enumerate(params_list):
        cout = p["w2"].shape[0]
        kh1, kw1 = p["w1"].shape[2], p["w1"].shape[3]
        kh2, kw2 = p["w2"].shape[2], p["w2"].shape[3]
        ho1, wo1 = H - kh1 + 1, W - kw1 + 1
        ho2, wo2 = ho1 - kh2 + 1, wo1 - kw2 + 1

        w1s, b1f = _pack_conv(p["w1"], p["b1"], W, wo1)
        w2s, b2f = _pack_conv(p["w2"], p["b2"], wo1, wo2)

        # Residual crop arithmetic (exact replica of the PyTorch expressions).
        o_h = (H - ho2 + 1) / 2
        o_w = (W - wo2 + 1) / 2
        crop_h = H - int(o_h + ho2) if int(o_h) > 0 else 0
        crop_w = W - int(o_w + wo2) if int(o_w) > 0 else 0
        rmat = _pack_residual(p["w_res"], C, W, wo2, crop_w)

        packed += [w1s, b1f, w2s, b2f, rmat]
        metas.append(dict(kh1=kh1, kh2=kh2, ho1=ho1, ho2=ho2,
                          crop_h=crop_h, relu=idx < n_blocks - 1))
        H, W, C = ho2, wo2, cout

    out_n = W * C   # last block: Wo2 * Cout (lane-dense output row)

    in_specs = [pl.BlockSpec((1, h0, w0 * cin0), lambda b: (b, 0, 0))]
    for arr in packed:
        in_specs.append(pl.BlockSpec(arr.shape, lambda b, _n=arr.ndim: (0,) * _n))

    out = pl.pallas_call(
        functools.partial(_encoder_kernel, metas=tuple(metas)),
        out_shape=jax.ShapeDtypeStruct((B, 1, out_n), jnp.float32),
        grid=(B,),
        in_specs=in_specs,
        out_specs=pl.BlockSpec((1, 1, out_n), lambda b: (b, 0, 0)),
        compiler_params=pltpu.CompilerParams(
            dimension_semantics=("parallel",)),
    )(x2d, *packed)

    # (B, 1, Wo*Cout) -> (B, Cout, Wo)  ==  torch x[:, :, 0, :]
    return jnp.transpose(out.reshape(B, W, C), (0, 2, 1))


# ----------------------------------------------------------------------------
# Pure-JAX reference (for correctness check)
# ----------------------------------------------------------------------------
def _crop_residual(res, main):
    """Replica of the PyTorch cropping arithmetic (NHWC layout)."""
    r_h, r_w = res.shape[1], res.shape[2]
    m_h, m_w = main.shape[1], main.shape[2]
    o_h = (r_h - m_h + 1) / 2
    o_w = (r_w - m_w + 1) / 2
    if int(o_h) > 0:
        res = res[:, r_h - int(o_h + m_h): r_h - int(o_h), :, :]
    if int(o_w) > 0:
        res = res[:, :, r_w - int(o_w + m_w): r_w - int(o_w), :]
    return res


def _conv_ref(x, w, b, relu):
    out = jax.lax.conv_general_dilated(
        x, jnp.transpose(w, (2, 3, 1, 0)), window_strides=(1, 1),
        padding="VALID", dimension_numbers=("NHWC", "HWIO", "NHWC"),
        preferred_element_type=jnp.float32)
    if b is not None:
        out = out + b
    if relu:
        out = jnp.maximum(out, 0.0)
    return out


def encoder_ref(x_nchw, params_list):
    x = jnp.transpose(x_nchw, (0, 2, 3, 1)).astype(jnp.float32)
    n_blocks = len(params_list)
    for idx, p in enumerate(params_list):
        orig = x
        h = _conv_ref(x, p["w1"], p["b1"], True)
        main = _conv_ref(h, p["w2"], p["b2"], True)
        res = orig
        if p["w_res"] is not None:
            res = _conv_ref(res, p["w_res"], None, False)
        res = _crop_residual(res, main)
        x = main + res
        if idx < n_blocks - 1:
            x = jnp.maximum(x, 0.0)
    return jnp.transpose(x[:, 0, :, :], (0, 2, 1))


# ----------------------------------------------------------------------------
# Deterministic parameter init (shapes per ScalogramEncoderBlock.__init__)
# ----------------------------------------------------------------------------
def _conv_weight(key, cout, cin, kh, kw):
    bound = 1.0 / float(np.sqrt(cin * kh * kw))
    return jax.random.uniform(key, (cout, cin, kh, kw), jnp.float32, -bound, bound)


def init_block_params(key, cin, cout, k1, k2):
    chid = cout  # hidden_channels = out_channels (hparams sets None)
    kw1, kb1, kw2, kb2, kwr = jax.random.split(key, 5)
    b_bound1 = 1.0 / float(np.sqrt(cin * k1[0] * k1[1]))
    b_bound2 = 1.0 / float(np.sqrt(chid * k2[0] * k2[1]))
    return {
        "w1": _conv_weight(kw1, chid, cin, k1[0], k1[1]),
        "b1": jax.random.uniform(kb1, (chid,), jnp.float32, -b_bound1, b_bound1),
        "w2": _conv_weight(kw2, cout, chid, k2[0], k2[1]),
        "b2": jax.random.uniform(kb2, (cout,), jnp.float32, -b_bound2, b_bound2),
        # residual 1x1 conv only when in_channels != out_channels (bias=False)
        "w_res": _conv_weight(kwr, cout, cin, 1, 1) if cin != cout else None,
    }


# ----------------------------------------------------------------------------
if __name__ == "__main__":
    key = jax.random.PRNGKey(0)
    kx, kp = jax.random.split(key)

    enc_channels = (4, 8, 16)
    enc_kernel_1 = [(3, 3), (3, 3)]
    enc_kernel_2 = [(3, 3), (3, 3)]

    # PyTorch-style NCHW input: (batch, channels, freq, time)
    x = jax.random.normal(kx, (2, enc_channels[0], 16, 32), jnp.float32)

    params = []
    for i in range(len(enc_kernel_1)):
        kp, kb = jax.random.split(kp)
        params.append(init_block_params(kb, enc_channels[i], enc_channels[i + 1],
                                        enc_kernel_1[i], enc_kernel_2[i]))

    fwd = jax.jit(encoder_forward)
    out = jax.block_until_ready(fwd(x, params))
    ref = jax.block_until_ready(encoder_ref(x, params))

    assert out.shape == (2, 16, 24), f"unexpected output shape {out.shape}"
    if not np.allclose(np.asarray(out), np.asarray(ref), rtol=2e-2, atol=2e-2):
        raise AssertionError("Pallas output mismatch vs pure-JAX reference")
    print("KERNEL_OK")
</pallas_src>

<mosaic_0001>
module attributes {stable_mosaic.version = 11 : i64} {
  func.func @_encoder_kernel(%arg0: i32, %arg1: memref<1x16x128xf32, #tpu.memory_space<vmem>>, %arg2: memref<3x128x240xf32, #tpu.memory_space<vmem>>, %arg3: memref<1x240xf32, #tpu.memory_space<vmem>>, %arg4: memref<3x240x224xf32, #tpu.memory_space<vmem>>, %arg5: memref<1x224xf32, #tpu.memory_space<vmem>>, %arg6: memref<128x224xf32, #tpu.memory_space<vmem>>, %arg7: memref<3x224x416xf32, #tpu.memory_space<vmem>>, %arg8: memref<1x416xf32, #tpu.memory_space<vmem>>, %arg9: memref<3x416x384xf32, #tpu.memory_space<vmem>>, %arg10: memref<1x384xf32, #tpu.memory_space<vmem>>, %arg11: memref<224x384xf32, #tpu.memory_space<vmem>>, %arg12: memref<1x1x384xf32, #tpu.memory_space<vmem>>) attributes {dimension_semantics = [#tpu.dimension_semantics<parallel>], iteration_bounds = array<i64: 2>, scalar_prefetch = 0 : i64, scratch_operands = 0 : i64, tpu.core_type = #tpu.core_type<tc>, window_params = [{transform_indices = @transform_0, window_bounds = array<i64: 1, 16, 128>}, {pipeline_mode = #tpu.pipeline_mode<synchronous>, transform_indices = @transform_1, window_bounds = array<i64: 3, 128, 240>}, {pipeline_mode = #tpu.pipeline_mode<synchronous>, transform_indices = @transform_2, window_bounds = array<i64: 1, 240>}, {pipeline_mode = #tpu.pipeline_mode<synchronous>, transform_indices = @transform_3, window_bounds = array<i64: 3, 240, 224>}, {pipeline_mode = #tpu.pipeline_mode<synchronous>, transform_indices = @transform_4, window_bounds = array<i64: 1, 224>}, {pipeline_mode = #tpu.pipeline_mode<synchronous>, transform_indices = @transform_5, window_bounds = array<i64: 128, 224>}, {pipeline_mode = #tpu.pipeline_mode<synchronous>, transform_indices = @transform_6, window_bounds = array<i64: 3, 224, 416>}, {pipeline_mode = #tpu.pipeline_mode<synchronous>, transform_indices = @transform_7, window_bounds = array<i64: 1, 416>}, {pipeline_mode = #tpu.pipeline_mode<synchronous>, transform_indices = @transform_8, window_bounds = array<i64: 3, 416, 384>}, {pipeline_mode = #tpu.pipeline_mode<synchronous>, transform_indices = @transform_9, window_bounds = array<i64: 1, 384>}, {pipeline_mode = #tpu.pipeline_mode<synchronous>, transform_indices = @transform_10, window_bounds = array<i64: 224, 384>}, {transform_indices = @transform_11, window_bounds = array<i64: 1, 1, 384>}]} {
    %c0 = arith.constant 0 : index
    %c0_0 = arith.constant 0 : index
    %c0_1 = arith.constant 0 : index
    %0 = vector.load %arg1[%c0, %c0_0, %c0_1] : memref<1x16x128xf32, #tpu.memory_space<vmem>>, vector<1x16x128xf32>
    %1 = vector.shape_cast %0 : vector<1x16x128xf32> to vector<16x128xf32>
    %2 = vector.extract_strided_slice %1 {offsets = [0, 0], sizes = [14, 128], strides = [1, 1]} : vector<16x128xf32> to vector<14x128xf32>
    %c0_2 = arith.constant 0 : index
    %c0_3 = arith.constant 0 : index
    %c0_4 = arith.constant 0 : index
    %3 = vector.load %arg2[%c0_2, %c0_3, %c0_4] : memref<3x128x240xf32, #tpu.memory_space<vmem>>, vector<1x128x240xf32>
    %4 = vector.shape_cast %3 : vector<1x128x240xf32> to vector<128x240xf32>
    %cst = arith.constant dense<0.000000e+00> : vector<14x240xf32>
    %5 = tpu.matmul %2, %4, %cst {dimension_numbers = #tpu.dot_dimension_numbers<[1], [0], [0], [1], [0, 0, 1, 1], [], []>} : vector<14x128xf32>, vector<128x240xf32>, vector<14x240xf32> -> vector<14x240xf32>
    %6 = vector.extract_strided_slice %1 {offsets = [1, 0], sizes = [14, 128], strides = [1, 1]} : vector<16x128xf32> to vector<14x128xf32>
    %c1 = arith.constant 1 : index
    %c0_5 = arith.constant 0 : index
    %c0_6 = arith.constant 0 : index
    %7 = vector.load %arg2[%c1, %c0_5, %c0_6] : memref<3x128x240xf32, #tpu.memory_space<vmem>>, vector<1x128x240xf32>
    %8 = vector.shape_cast %7 : vector<1x128x240xf32> to vector<128x240xf32>
    %cst_7 = arith.constant dense<0.000000e+00> : vector<14x240xf32>
    %9 = tpu.matmul %6, %8, %cst_7 {dimension_numbers = #tpu.dot_dimension_numbers<[1], [0], [0], [1], [0, 0, 1, 1], [], []>} : vector<14x128xf32>, vector<128x240xf32>, vector<14x240xf32> -> vector<14x240xf32>
    %10 = arith.addf %5, %9 : vector<14x240xf32>
    %11 = vector.extract_strided_slice %1 {offsets = [2, 0], sizes = [14, 128], strides = [1, 1]} : vector<16x128xf32> to vector<14x128xf32>
    %c2 = arith.constant 2 : index
    %c0_8 = arith.constant 0 : index
    %c0_9 = arith.constant 0 : index
    %12 = vector.load %arg2[%c2, %c0_8, %c0_9] : memref<3x128x240xf32, #tpu.memory_space<vmem>>, vector<1x128x240xf32>
    %13 = vector.shape_cast %12 : vector<1x128x240xf32> to vector<128x240xf32>
    %cst_10 = arith.constant dense<0.000000e+00> : vector<14x240xf32>
    %14 = tpu.matmul %11, %13, %cst_10 {dimension_numbers = #tpu.dot_dimension_numbers<[1], [0], [0], [1], [0, 0, 1, 1], [], []>} : vector<14x128xf32>, vector<128x240xf32>, vector<14x240xf32> -> vector<14x240xf32>
    %15 = arith.addf %10, %14 : vector<14x240xf32>
    %c0_11 = arith.constant 0 : index
    %c0_12 = arith.constant 0 : index
    %16 = vector.load %arg3[%c0_11, %c0_12] : memref<1x240xf32, #tpu.memory_space<vmem>>, vector<1x240xf32>
    %17 = vector.broadcast %16 : vector<1x240xf32> to vector<14x240xf32>
    %18 = arith.addf %15, %17 : vector<14x240xf32>
    %cst_13 = arith.constant 0.000000e+00 : f32
    %19 = vector.broadcast %cst_13 : f32 to vector<14x240xf32>
    %20 = arith.maximumf %18, %19 : vector<14x240xf32>
    %21 = vector.extract_strided_slice %20 {offsets = [0, 0], sizes = [12, 240], strides = [1, 1]} : vector<14x240xf32> to vector<12x240xf32>
    %c0_14 = arith.constant 0 : index
    %c0_15 = arith.constant 0 : index
    %c0_16 = arith.constant 0 : index
    %22 = vector.load %arg4[%c0_14, %c0_15, %c0_16] : memref<3x240x224xf32, #tpu.memory_space<vmem>>, vector<1x240x224xf32>
    %23 = vector.shape_cast %22 : vector<1x240x224xf32> to vector<240x224xf32>
    %cst_17 = arith.constant dense<0.000000e+00> : vector<12x224xf32>
    %24 = tpu.matmul %21, %23, %cst_17 {dimension_numbers = #tpu.dot_dimension_numbers<[1], [0], [0], [1], [0, 0, 1, 1], [], []>} : vector<12x240xf32>, vector<240x224xf32>, vector<12x224xf32> -> vector<12x224xf32>
    %25 = vector.extract_strided_slice %20 {offsets = [1, 0], sizes = [12, 240], strides = [1, 1]} : vector<14x240xf32> to vector<12x240xf32>
    %c1_18 = arith.constant 1 : index
    %c0_19 = arith.constant 0 : index
    %c0_20 = arith.constant 0 : index
    %26 = vector.load %arg4[%c1_18, %c0_19, %c0_20] : memref<3x240x224xf32, #tpu.memory_space<vmem>>, vector<1x240x224xf32>
    %27 = vector.shape_cast %26 : vector<1x240x224xf32> to vector<240x224xf32>
    %cst_21 = arith.constant dense<0.000000e+00> : vector<12x224xf32>
    %28 = tpu.matmul %25, %27, %cst_21 {dimension_numbers = #tpu.dot_dimension_numbers<[1], [0], [0], [1], [0, 0, 1, 1], [], []>} : vector<12x240xf32>, vector<240x224xf32>, vector<12x224xf32> -> vector<12x224xf32>
    %29 = arith.addf %24, %28 : vector<12x224xf32>
    %30 = vector.extract_strided_slice %20 {offsets = [2, 0], sizes = [12, 240], strides = [1, 1]} : vector<14x240xf32> to vector<12x240xf32>
    %c2_22 = arith.constant 2 : index
    %c0_23 = arith.constant 0 : index
    %c0_24 = arith.constant 0 : index
    %31 = vector.load %arg4[%c2_22, %c0_23, %c0_24] : memref<3x240x224xf32, #tpu.memory_space<vmem>>, vector<1x240x224xf32>
    %32 = vector.shape_cast %31 : vector<1x240x224xf32> to vector<240x224xf32>
    %cst_25 = arith.constant dense<0.000000e+00> : vector<12x224xf32>
    %33 = tpu.matmul %30, %32, %cst_25 {dimension_numbers = #tpu.dot_dimension_numbers<[1], [0], [0], [1], [0, 0, 1, 1], [], []>} : vector<12x240xf32>, vector<240x224xf32>, vector<12x224xf32> -> vector<12x224xf32>
    %34 = arith.addf %29, %33 : vector<12x224xf32>
    %c0_26 = arith.constant 0 : index
    %c0_27 = arith.constant 0 : index
    %35 = vector.load %arg5[%c0_26, %c0_27] : memref<1x224xf32, #tpu.memory_space<vmem>>, vector<1x224xf32>
    %36 = vector.broadcast %35 : vector<1x224xf32> to vector<12x224xf32>
    %37 = arith.addf %34, %36 : vector<12x224xf32>
    %cst_28 = arith.constant 0.000000e+00 : f32
    %38 = vector.broadcast %cst_28 : f32 to vector<12x224xf32>
    %39 = arith.maximumf %37, %38 : vector<12x224xf32>
    %c0_29 = arith.constant 0 : index
    %c0_30 = arith.constant 0 : index
    %40 = vector.load %arg6[%c0_29, %c0_30] : memref<128x224xf32, #tpu.memory_space<vmem>>, vector<128x224xf32>
    %cst_31 = arith.constant dense<0.000000e+00> : vector<16x224xf32>
    %41 = tpu.matmul %1, %40, %cst_31 {dimension_numbers = #tpu.dot_dimension_numbers<[1], [0], [0], [1], [0, 0, 1, 1], [], []>} : vector<16x128xf32>, vector<128x224xf32>, vector<16x224xf32> -> vector<16x224xf32>
    %42 = vector.extract_strided_slice %41 {offsets = [2, 0], sizes = [12, 224], strides = [1, 1]} : vector<16x224xf32> to vector<12x224xf32>
    %43 = arith.addf %39, %42 : vector<12x224xf32>
    %cst_32 = arith.constant 0.000000e+00 : f32
    %44 = vector.broadcast %cst_32 : f32 to vector<12x224xf32>
    %45 = arith.maximumf %43, %44 : vector<12x224xf32>
    %46 = vector.extract_strided_slice %45 {offsets = [0, 0], sizes = [10, 224], strides = [1, 1]} : vector<12x224xf32> to vector<10x224xf32>
    %c0_33 = arith.constant 0 : index
    %c0_34 = arith.constant 0 : index
    %c0_35 = arith.constant 0 : index
    %47 = vector.load %arg7[%c0_33, %c0_34, %c0_35] : memref<3x224x416xf32, #tpu.memory_space<vmem>>, vector<1x224x416xf32>
    %48 = vector.shape_cast %47 : vector<1x224x416xf32> to vector<224x416xf32>
    %cst_36 = arith.constant dense<0.000000e+00> : vector<10x416xf32>
    %49 = tpu.matmul %46, %48, %cst_36 {dimension_numbers = #tpu.dot_dimension_numbers<[1], [0], [0], [1], [0, 0, 1, 1], [], []>} : vector<10x224xf32>, vector<224x416xf32>, vector<10x416xf32> -> vector<10x416xf32>
    %50 = vector.extract_strided_slice %45 {offsets = [1, 0], sizes = [10, 224], strides = [1, 1]} : vector<12x224xf32> to vector<10x224xf32>
    %c1_37 = arith.constant 1 : index
    %c0_38 = arith.constant 0 : index
    %c0_39 = arith.constant 0 : index
    %51 = vector.load %arg7[%c1_37, %c0_38, %c0_39] : memref<3x224x416xf32, #tpu.memory_space<vmem>>, vector<1x224x416xf32>
    %52 = vector.shape_cast %51 : vector<1x224x416xf32> to vector<224x416xf32>
    %cst_40 = arith.constant dense<0.000000e+00> : vector<10x416xf32>
    %53 = tpu.matmul %50, %52, %cst_40 {dimension_numbers = #tpu.dot_dimension_numbers<[1], [0], [0], [1], [0, 0, 1, 1], [], []>} : vector<10x224xf32>, vector<224x416xf32>, vector<10x416xf32> -> vector<10x416xf32>
    %54 = arith.addf %49, %53 : vector<10x416xf32>
    %55 = vector.extract_strided_slice %45 {offsets = [2, 0], sizes = [10, 224], strides = [1, 1]} : vector<12x224xf32> to vector<10x224xf32>
    %c2_41 = arith.constant 2 : index
    %c0_42 = arith.constant 0 : index
    %c0_43 = arith.constant 0 : index
    %56 = vector.load %arg7[%c2_41, %c0_42, %c0_43] : memref<3x224x416xf32, #tpu.memory_space<vmem>>, vector<1x224x416xf32>
    %57 = vector.shape_cast %56 : vector<1x224x416xf32> to vector<224x416xf32>
    %cst_44 = arith.constant dense<0.000000e+00> : vector<10x416xf32>
    %58 = tpu.matmul %55, %57, %cst_44 {dimension_numbers = #tpu.dot_dimension_numbers<[1], [0], [0], [1], [0, 0, 1, 1], [], []>} : vector<10x224xf32>, vector<224x416xf32>, vector<10x416xf32> -> vector<10x416xf32>
    %59 = arith.addf %54, %58 : vector<10x416xf32>
    %c0_45 = arith.constant 0 : index
    %c0_46 = arith.constant 0 : index
    %60 = vector.load %arg8[%c0_45, %c0_46] : memref<1x416xf32, #tpu.memory_space<vmem>>, vector<1x416xf32>
    %61 = vector.broadcast %60 : vector<1x416xf32> to vector<10x416xf32>
    %62 = arith.addf %59, %61 : vector<10x416xf32>
    %cst_47 = arith.constant 0.000000e+00 : f32
    %63 = vector.broadcast %cst_47 : f32 to vector<10x416xf32>
    %64 = arith.maximumf %62, %63 : vector<10x416xf32>
    %65 = vector.extract_strided_slice %64 {offsets = [0, 0], sizes = [8, 416], strides = [1, 1]} : vector<10x416xf32> to vector<8x416xf32>
    %c0_48 = arith.constant 0 : index
    %c0_49 = arith.constant 0 : index
    %c0_50 = arith.constant 0 : index
    %66 = vector.load %arg9[%c0_48, %c0_49, %c0_50] : memref<3x416x384xf32, #tpu.memory_space<vmem>>, vector<1x416x384xf32>
    %67 = vector.shape_cast %66 : vector<1x416x384xf32> to vector<416x384xf32>
    %cst_51 = arith.constant dense<0.000000e+00> : vector<8x384xf32>
    %68 = tpu.matmul %65, %67, %cst_51 {dimension_numbers = #tpu.dot_dimension_numbers<[1], [0], [0], [1], [0, 0, 1, 1], [], []>} : vector<8x416xf32>, vector<416x384xf32>, vector<8x384xf32> -> vector<8x384xf32>
    %69 = vector.extract_strided_slice %64 {offsets = [1, 0], sizes = [8, 416], strides = [1, 1]} : vector<10x416xf32> to vector<8x416xf32>
    %c1_52 = arith.constant 1 : index
    %c0_53 = arith.constant 0 : index
    %c0_54 = arith.constant 0 : index
    %70 = vector.load %arg9[%c1_52, %c0_53, %c0_54] : memref<3x416x384xf32, #tpu.memory_space<vmem>>, vector<1x416x384xf32>
    %71 = vector.shape_cast %70 : vector<1x416x384xf32> to vector<416x384xf32>
    %cst_55 = arith.constant dense<0.000000e+00> : vector<8x384xf32>
    %72 = tpu.matmul %69, %71, %cst_55 {dimension_numbers = #tpu.dot_dimension_numbers<[1], [0], [0], [1], [0, 0, 1, 1], [], []>} : vector<8x416xf32>, vector<416x384xf32>, vector<8x384xf32> -> vector<8x384xf32>
    %73 = arith.addf %68, %72 : vector<8x384xf32>
    %74 = vector.extract_strided_slice %64 {offsets = [2, 0], sizes = [8, 416], strides = [1, 1]} : vector<10x416xf32> to vector<8x416xf32>
    %c2_56 = arith.constant 2 : index
    %c0_57 = arith.constant 0 : index
    %c0_58 = arith.constant 0 : index
    %75 = vector.load %arg9[%c2_56, %c0_57, %c0_58] : memref<3x416x384xf32, #tpu.memory_space<vmem>>, vector<1x416x384xf32>
    %76 = vector.shape_cast %75 : vector<1x416x384xf32> to vector<416x384xf32>
    %cst_59 = arith.constant dense<0.000000e+00> : vector<8x384xf32>
    %77 = tpu.matmul %74, %76, %cst_59 {dimension_numbers = #tpu.dot_dimension_numbers<[1], [0], [0], [1], [0, 0, 1, 1], [], []>} : vector<8x416xf32>, vector<416x384xf32>, vector<8x384xf32> -> vector<8x384xf32>
    %78 = arith.addf %73, %77 : vector<8x384xf32>
    %c0_60 = arith.constant 0 : index
    %c0_61 = arith.constant 0 : index
    %79 = vector.load %arg10[%c0_60, %c0_61] : memref<1x384xf32, #tpu.memory_space<vmem>>, vector<1x384xf32>
    %80 = vector.broadcast %79 : vector<1x384xf32> to vector<8x384xf32>
    %81 = arith.addf %78, %80 : vector<8x384xf32>
    %cst_62 = arith.constant 0.000000e+00 : f32
    %82 = vector.broadcast %cst_62 : f32 to vector<8x384xf32>
    %83 = arith.maximumf %81, %82 : vector<8x384xf32>
    %c0_63 = arith.constant 0 : index
    %c0_64 = arith.constant 0 : index
    %84 = vector.load %arg11[%c0_63, %c0_64] : memref<224x384xf32, #tpu.memory_space<vmem>>, vector<224x384xf32>
    %cst_65 = arith.constant dense<0.000000e+00> : vector<12x384xf32>
    %85 = tpu.matmul %45, %84, %cst_65 {dimension_numbers = #tpu.dot_dimension_numbers<[1], [0], [0], [1], [0, 0, 1, 1], [], []>} : vector<12x224xf32>, vector<224x384xf32>, vector<12x384xf32> -> vector<12x384xf32>
    %86 = vector.extract_strided_slice %85 {offsets = [2, 0], sizes = [8, 384], strides = [1, 1]} : vector<12x384xf32> to vector<8x384xf32>
    %87 = arith.addf %83, %86 : vector<8x384xf32>
    %88 = vector.extract_strided_slice %87 {offsets = [0, 0], sizes = [1, 384], strides = [1, 1]} : vector<8x384xf32> to vector<1x384xf32>
    %c0_66 = arith.constant 0 : index
    %c0_67 = arith.constant 0 : index
    %c0_68 = arith.constant 0 : index
    %89 = vector.load %arg12[%c0_66, %c0_67, %c0_68] : memref<1x1x384xf32, #tpu.memory_space<vmem>>, vector<1x1x384xf32>
    %90 = vector.shape_cast %89 : vector<1x1x384xf32> to vector<1x384xf32>
    %91 = vector.shape_cast %88 : vector<1x384xf32> to vector<1x1x384xf32>
    tpu.vector_store %arg12[%c0_66, %c0_67, %c0_68], %91 {strides = array<i32>} : memref<1x1x384xf32, #tpu.memory_space<vmem>>, vector<1x1x384xf32>,
    return
  }
  func.func @transform_0(%arg0: i32) -> (i32, i32, i32) {
    %c0_i32 = arith.constant 0 : i32
    %c0_i32_0 = arith.constant 0 : i32
    %c0_i32_1 = arith.constant 0 : i32
    return %arg0, %c0_i32, %c0_i32_0 : i32, i32, i32
  }
  func.func @transform_1(%arg0: i32) -> (i32, i32, i32) {
    %c0_i32 = arith.constant 0 : i32
    %c0_i32_0 = arith.constant 0 : i32
    %c0_i32_1 = arith.constant 0 : i32
    %c0_i32_2 = arith.constant 0 : i32
    return %c0_i32, %c0_i32_0, %c0_i32_1 : i32, i32, i32
  }
  func.func @transform_2(%arg0: i32) -> (i32, i32) {
    %c0_i32 = arith.constant 0 : i32
    %c0_i32_0 = arith.constant 0 : i32
    %c0_i32_1 = arith.constant 0 : i32
    return %c0_i32, %c0_i32_0 : i32, i32
  }
  func.func @transform_3(%arg0: i32) -> (i32, i32, i32) {
    %c0_i32 = arith.constant 0 : i32
    %c0_i32_0 = arith.constant 0 : i32
    %c0_i32_1 = arith.constant 0 : i32
    %c0_i32_2 = arith.constant 0 : i32
    return %c0_i32, %c0_i32_0, %c0_i32_1 : i32, i32, i32
  }
  func.func @transform_4(%arg0: i32) -> (i32, i32) {
    %c0_i32 = arith.constant 0 : i32
    %c0_i32_0 = arith.constant 0 : i32
    %c0_i32_1 = arith.constant 0 : i32
    return %c0_i32, %c0_i32_0 : i32, i32
  }
  func.func @transform_5(%arg0: i32) -> (i32, i32) {
    %c0_i32 = arith.constant 0 : i32
    %c0_i32_0 = arith.constant 0 : i32
    %c0_i32_1 = arith.constant 0 : i32
    return %c0_i32, %c0_i32_0 : i32, i32
  }
  func.func @transform_6(%arg0: i32) -> (i32, i32, i32) {
    %c0_i32 = arith.constant 0 : i32
    %c0_i32_0 = arith.constant 0 : i32
    %c0_i32_1 = arith.constant 0 : i32
    %c0_i32_2 = arith.constant 0 : i32
    return %c0_i32, %c0_i32_0, %c0_i32_1 : i32, i32, i32
  }
  func.func @transform_7(%arg0: i32) -> (i32, i32) {
    %c0_i32 = arith.constant 0 : i32
    %c0_i32_0 = arith.constant 0 : i32
    %c0_i32_1 = arith.constant 0 : i32
    return %c0_i32, %c0_i32_0 : i32, i32
  }
  func.func @transform_8(%arg0: i32) -> (i32, i32, i32) {
    %c0_i32 = arith.constant 0 : i32
    %c0_i32_0 = arith.constant 0 : i32
    %c0_i32_1 = arith.constant 0 : i32
    %c0_i32_2 = arith.constant 0 : i32
    return %c0_i32, %c0_i32_0, %c0_i32_1 : i32, i32, i32
  }
  func.func @transform_9(%arg0: i32) -> (i32, i32) {
    %c0_i32 = arith.constant 0 : i32
    %c0_i32_0 = arith.constant 0 : i32
    %c0_i32_1 = arith.constant 0 : i32
    return %c0_i32, %c0_i32_0 : i32, i32
  }
  func.func @transform_10(%arg0: i32) -> (i32, i32) {
    %c0_i32 = arith.constant 0 : i32
    %c0_i32_0 = arith.constant 0 : i32
    %c0_i32_1 = arith.constant 0 : i32
    return %c0_i32, %c0_i32_0 : i32, i32
  }
  func.func @transform_11(%arg0: i32) -> (i32, i32, i32) {
    %c0_i32 = arith.constant 0 : i32
    %c0_i32_0 = arith.constant 0 : i32
    %c0_i32_1 = arith.constant 0 : i32
    return %arg0, %c0_i32, %c0_i32_0 : i32, i32, i32
  }
}

</mosaic_0001>

<bundles_post_ra>
// kernel: tile.33
= control target key start
LH: loop header
LB: loop body
LE: loop exit
PB: predicated region body
PF: predicated region fallthrough
CT: control target
= control target key end

     0   :  { %s40_s0 = inlined_call_operand.vmem [shape: f32[16], index: 0, kind: input, shape index: {}]   ;;  %s41_s1 = inlined_call_operand.vmem [shape: f32[26,16], index: 1, kind: output, shape index: {}]  }
   0x1   :  { %v4_v0 = vld [vmem:[%s40_s0] ss:$0 sm:$0xff] }
   0x2   :  { %5 = vst [vmem:[%s41_s1] sm:$0xff] %v4_v0 }
   0x3   :  { %12 = vst [vmem:[%s41_s1 + $0x8] sm:$0xff] %v4_v0 }
   0x4   :  { %13 = vst [vmem:[%s41_s1 + $0x10] sm:$0xff] %v4_v0 }
   0x5   :  { %14 = vst [vmem:[%s41_s1 + $0x18] sm:$0xff] %v4_v0 }

// kernel: tile.34
= control target key start
LH: loop header
LB: loop body
LE: loop exit
PB: predicated region body
PF: predicated region fallthrough
CT: control target
= control target key end

     0   :  { %s88_s8 = smov 112   ;;  %s89_s11 = smov 80   ;;  %vm3_vm0 = vcmask 130048   ;;  %vm9_vm1 = vcmask 1048448   ;;  %vm15_vm2 = vcmask 917248   ;;  %vm21_vm3 = vcmask 786048   ;;  %s141_s0 = inlined_call_operand.vmem [shape: f32[26,16], index: 0, kind: input, shape index: {}]   ;;  %s142_s1 = inlined_call_operand.vmem [shape: f32[1,416], index: 1, kind: output, shape index: {}]  }
   0x1   :  { %v71_v0 = vld [vmem:[%s141_s0 + $0x7] ss:$8 sm:$0x7]   ;;  %v73_v1 = vld [vmem:[%s141_s0 + $0x5] ss:$8 sm:$0x7]  }
   0x2   :  { %7 = vrot.lane.b32.xlu0 %v71_v0, %s88_s8  ;;  %19 = vrot.lane.b32.xlu1 %v73_v1, %s89_s11  ;;  %v75_v2 = vld [vmem:[%s141_s0 + $0x3] ss:$8 sm:$0x7]   ;;  %s90_s14 = smov 48   ;;  %s91_s19 = smov 96   ;;  %vm27_vm4 = vcmask 654848  }
   0x3   :  { %31 = vrot.lane.b32.xlu2 %v75_v2, %s90_s14  ;;  %v72_v3 = vld [vmem:[%s141_s0 + $0x6] ss:$8 sm:$0x7]   ;;  %v74_v4 = vld [vmem:[%s141_s0 + $0x4] ss:$8 sm:$0x7]  }
   0x4   :  { %s92_s20 = smov 64   ;;  %v76_v5 = vld [vmem:[%s141_s0 + $0x2] ss:$8 sm:$0x7]   ;;  %s93_s23 = smov 32   ;;  %vm33_vm5 = vcmask 523648  }
   0x5   :  { %v77_v6 = vld [vmem:[%s141_s0 + $0x1] ss:$8 sm:$0xf]   ;;  %s94_s26 = smov 16   ;;  %vm39_vm6 = vcmask 392448   ;;  %vm45_vm7 = vcmask 261248  }
   0x6   :  { %v2_v7 = vld [vmem:[%s141_s0] ss:$8 sm:$0xf]  }
   0x7   :  { %4 = vst.msk [vmem:[#allocation0] ss:$8 sm:$0xf] %vm3_vm0, %v2_v7  }
   0xa   :  { %13 = vrot.lane.b32.xlu0 %v72_v3, %s91_s19  ;;  %25 = vrot.lane.b32.xlu1 %v74_v4, %s92_s20 }
   0xb   :  { %37 = vrot.lane.b32.xlu2 %v76_v5, %s93_s23 }
  0x12   :  { %43 = vrot.lane.b32.xlu0 %v77_v6, %s94_s26 }
  0x5d   :  { %v32_v8 = vpop.permute.xlu2 %31  }
  0x65   :  { %v38_v9 = vpop.permute.xlu2 %37  }
  0x74   :  { %v8_v10 = vpop.permute.xlu0 %7   ;;  %v20_v11 = vpop.permute.xlu1 %19  }
  0x75   :  { %10 = vst.msk [vmem:[#allocation0] ss:$8 sm:$0x7] %vm9_vm1, %v8_v10  }
  0x7c   :  { %v14_v12 = vpop.permute.xlu0 %13   ;;  %v26_v13 = vpop.permute.xlu1 %25  }
  0x7d   :  { %16 = vst.msk [vmem:[#allocation0] ss:$8 sm:$0x7] %vm15_vm2, %v14_v12  }
  0x7e   :  { %22 = vst.msk [vmem:[#allocation0] ss:$8 sm:$0x7] %vm21_vm3, %v20_v11  }
  0x7f   :  { %28 = vst.msk [vmem:[#allocation0] ss:$8 sm:$0x7] %vm27_vm4, %v26_v13  }
  0x80   :  { %34 = vst.msk [vmem:[#allocation0] ss:$8 sm:$0x7] %vm33_vm5, %v32_v8  }
  0x81   :  { %40 = vst.msk [vmem:[#allocation0] ss:$8 sm:$0x7] %vm39_vm6, %v38_v9  }
  0x84   :  { %v44_v14 = vpop.permute.xlu0 %43  }
  0x85   :  { %46 = vst.msk [vmem:[#allocation0] ss:$8 sm:$0xf] %vm45_vm7, %v44_v14  }
  0x8c   :  { %v49_v15 = vld [vmem:[#allocation0] sm:$0x1]  ;;  %v54_v16 = vld [vmem:[#allocation0 + $0x8] sm:$0x1]  ;;  %v60_v17 = vld [vmem:[#allocation0 + $0x10] sm:$0x1] }
  0x8d   :  { %52 = vst [vmem:[%s142_s1] sm:$0x1] %v49_v15  ;;  %v66_v18 = vld [vmem:[#allocation0 + $0x18] sm:$0x1] }
  0x8e   :  { %78 = vst [vmem:[%s142_s1 + $0x1] sm:$0x1] %v54_v16 }
  0x8f   :  { %79 = vst [vmem:[%s142_s1 + $0x2] sm:$0x1] %v60_v17 }
  0x90   :  { %80 = vst [vmem:[%s142_s1 + $0x3] sm:$0x1] %v66_v18 }

// kernel: tile.23
= control target key start
LH: loop header
LB: loop body
LE: loop exit
PB: predicated region body
PF: predicated region fallthrough
CT: control target
= control target key end

     0   :  { %s40_s0 = inlined_call_operand.vmem [shape: f32[8], index: 0, kind: input, shape index: {}]   ;;  %s41_s1 = inlined_call_operand.vmem [shape: f32[30,8], index: 1, kind: output, shape index: {}]  }
   0x1   :  { %v4_v0 = vld [vmem:[%s40_s0] ss:$0 sm:$0xff] }
   0x2   :  { %5 = vst [vmem:[%s41_s1] sm:$0xff] %v4_v0 }
   0x3   :  { %12 = vst [vmem:[%s41_s1 + $0x8] sm:$0xff] %v4_v0 }
   0x4   :  { %13 = vst [vmem:[%s41_s1 + $0x10] sm:$0xff] %v4_v0 }
   0x5   :  { %14 = vst [vmem:[%s41_s1 + $0x18] sm:$0xff] %v4_v0 }

// kernel: tile.24
= control target key start
LH: loop header
LB: loop body
LE: loop exit
PB: predicated region body
PF: predicated region fallthrough
CT: control target
= control target key end

     0   :  { %s19_s8 = smov 3  ;;  %s152_s9 = smov 120   ;;  %vm4_vm0 = vcmask 64512   ;;  %vm10_vm1 = vcmask 1048512   ;;  %vm16_vm2 = vcmask 982912   ;;  %vm23_vm3 = vcmask 917312   ;;  %s231_s0 = inlined_call_operand.vmem [shape: f32[30,8], index: 0, kind: input, shape index: {}]   ;;  %s232_s1 = inlined_call_operand.vmem [shape: f32[1,240], index: 1, kind: output, shape index: {}]  }
   0x1   :  { %v121_v0 = vld [vmem:[%s231_s0 + $0xf] sm:$0x1]   ;;  %v123_v1 = vld [vmem:[%s231_s0 + $0xd] ss:$16 sm:%s19_s8]   ;;  %s153_s12 = smov 104   ;;  %s26_s13 = smov 3 }
   0x2   :  { %8 = vrot.lane.b32.xlu0 %v121_v0, %s152_s9  ;;  %21 = vrot.lane.b32.xlu1 %v123_v1, %s153_s12  ;;  %v122_v2 = vld [vmem:[%s231_s0 + $0xe] sm:$0x1]   ;;  %s33_s18 = smov 3  ;;  %s154_s21 = smov 112   ;;  %vm30_vm4 = vcmask 851712   ;;  %vm37_vm5 = vcmask 786112  }
   0x3   :  { %v124_v3 = vld [vmem:[%s231_s0 + $0xc] ss:$16 sm:%s26_s13]   ;;  %v125_v4 = vld [vmem:[%s231_s0 + $0xb] ss:$16 sm:%s33_s18]   ;;  %s155_s22 = smov 88   ;;  %s156_s23 = smov 96  }
   0x4   :  { %35 = vrot.lane.b32.xlu2 %v125_v4, %s155_s22  ;;  %s47_s24 = smov 3  ;;  %s40_s25 = smov 3  ;;  %vm44_vm6 = vcmask 720512   ;;  %vm51_vm7 = vcmask 654912   ;;  %vm58_vm8 = vcmask 589312   ;;  %vm65_vm9 = vcmask 523712  }
   0x5   :  { %s54_s26 = smov 3  ;;  %v127_v5 = vld [vmem:[%s231_s0 + $0x9] ss:$16 sm:%s47_s24]   ;;  %v126_v6 = vld [vmem:[%s231_s0 + $0xa] ss:$16 sm:%s40_s25]   ;;  %s157_s4 = smov 72  }
   0x6   :  { %v128_v7 = vld [vmem:[%s231_s0 + $0x8] ss:$16 sm:%s54_s26]   ;;  %s158_s5 = smov 80   ;;  %s159_s6 = smov 64   ;;  %vm72_vm10 = vcmask 458112   ;;  %vm79_vm11 = vcmask 392512  }
   0x7   :  { %s68_s7 = smov 3  ;;  %s61_s8 = smov 3  ;;  %vm86_vm12 = vcmask 326912   ;;  %vm93_vm13 = vcmask 261312   ;;  %vm100_vm14 = vcmask 195712   ;;  %vm107_vm15 = vcmask 130112  }
   0x8   :  { %s75_s9 = smov 3  ;;  %v130_v8 = vld [vmem:[%s231_s0 + $0x6] ss:$16 sm:%s68_s7]   ;;  %v129_v9 = vld [vmem:[%s231_s0 + $0x7] ss:$16 sm:%s61_s8]   ;;  %s160_s16 = smov 48  }
   0x9   :  { %v131_v10 = vld [vmem:[%s231_s0 + $0x5] ss:$16 sm:%s75_s9]   ;;  %s161_s17 = smov 56   ;;  %s162_s18 = smov 40  }
   0xa   :  { %14 = vrot.lane.b32.xlu0 %v122_v2, %s154_s21  ;;  %28 = vrot.lane.b32.xlu1 %v124_v3, %s156_s23  ;;  %s89_s19 = smov 3  ;;  %s82_s20 = smov 3 }
   0xb   :  { %s96_s21 = smov 3  ;;  %v133_v11 = vld [vmem:[%s231_s0 + $0x3] ss:$16 sm:%s89_s19]   ;;  %v132_v12 = vld [vmem:[%s231_s0 + $0x4] ss:$16 sm:%s82_s20]   ;;  %s163_s28 = smov 24  }
   0xc   :  { %42 = vrot.lane.b32.xlu2 %v126_v6, %s158_s5  ;;  %v134_v13 = vld [vmem:[%s231_s0 + $0x2] ss:$16 sm:%s96_s21]   ;;  %s164_s29 = smov 32   ;;  %s165_s30 = smov 16  }
   0xd   :  { %s103_s2 = smov 3  ;;  %s166_s5 = smov 8  }
   0xe   :  { %v135_v14 = vld [vmem:[%s231_s0 + $0x1] ss:$16 sm:%s103_s2]  }
  0x12   :  { %49 = vrot.lane.b32.xlu0 %v127_v5, %s157_s4  ;;  %56 = vrot.lane.b32.xlu1 %v128_v7, %s159_s6  ;;  %s2_s6 = smov 3 }
  0x13   :  { %v3_v15 = vld [vmem:[%s231_s0] ss:$16 sm:%s2_s6]  }
  0x14   :  { %63 = vrot.lane.b32.xlu2 %v129_v9, %s161_s17  ;;  %5 = vst.msk [vmem:[#allocation0] ss:$8 sm:$0x3] %vm4_vm0, %v3_v15  }
  0x1a   :  { %70 = vrot.lane.b32.xlu0 %v130_v8, %s160_s16  ;;  %77 = vrot.lane.b32.xlu1 %v131_v10, %s162_s18 }
  0x1c   :  { %84 = vrot.lane.b32.xlu2 %v132_v12, %s164_s29 }
  0x22   :  { %91 = vrot.lane.b32.xlu0 %v133_v11, %s163_s28  ;;  %98 = vrot.lane.b32.xlu1 %v134_v13, %s165_s30 }
  0x24   :  { %105 = vrot.lane.b32.xlu2 %v135_v14, %s166_s5 }
  0x5e   :  { %v36_v16 = vpop.permute.xlu2 %35  }
  0x66   :  { %v43_v17 = vpop.permute.xlu2 %42  }
  0x6e   :  { %v64_v19 = vpop.permute.xlu2 %63  }
  0x74   :  { %v9_v18 = vpop.permute.xlu0 %8   ;;  %v22_v20 = vpop.permute.xlu1 %21  }
  0x75   :  { %11 = vst.msk [vmem:[#allocation0] sm:$0x1] %vm10_vm1, %v9_v18  }
  0x76   :  { %v85_v22 = vpop.permute.xlu2 %84  }
  0x7c   :  { %v15_v21 = vpop.permute.xlu0 %14   ;;  %v29_v23 = vpop.permute.xlu1 %28  }
  0x7d   :  { %17 = vst.msk [vmem:[#allocation0] sm:$0x1] %vm16_vm2, %v15_v21  }
  0x7e   :  { %24 = vst.msk [vmem:[#allocation0] ss:$8 sm:$0x3] %vm23_vm3, %v22_v20   ;;  %v106_v25 = vpop.permute.xlu2 %105  }
  0x7f   :  { %31 = vst.msk [vmem:[#allocation0] ss:$8 sm:$0x3] %vm30_vm4, %v29_v23  }
  0x80   :  { %38 = vst.msk [vmem:[#allocation0] ss:$8 sm:$0x3] %vm37_vm5, %v36_v16  }
  0x81   :  { %45 = vst.msk [vmem:[#allocation0] ss:$8 sm:$0x3] %vm44_vm6, %v43_v17  }
  0x84   :  { %v50_v24 = vpop.permute.xlu0 %49   ;;  %v57_v26 = vpop.permute.xlu1 %56  }
  0x85   :  { %52 = vst.msk [vmem:[#allocation0] ss:$8 sm:$0x3] %vm51_vm7, %v50_v24  }
  0x86   :  { %59 = vst.msk [vmem:[#allocation0] ss:$8 sm:$0x3] %vm58_vm8, %v57_v26  }
  0x87   :  { %66 = vst.msk [vmem:[#allocation0] ss:$8 sm:$0x3] %vm65_vm9, %v64_v19  }
  0x8c   :  { %v71_v27 = vpop.permute.xlu0 %70   ;;  %v78_v28 = vpop.permute.xlu1 %77  }
  0x8d   :  { %73 = vst.msk [vmem:[#allocation0] ss:$8 sm:$0x3] %vm72_vm10, %v71_v27  }
  0x8e   :  { %80 = vst.msk [vmem:[#allocation0] ss:$8 sm:$0x3] %vm79_vm11, %v78_v28  }
  0x8f   :  { %87 = vst.msk [vmem:[#allocation0] ss:$8 sm:$0x3] %vm86_vm12, %v85_v22  }
  0x94   :  { %v92_v29 = vpop.permute.xlu0 %91   ;;  %v99_v30 = vpop.permute.xlu1 %98  }
  0x95   :  { %94 = vst.msk [vmem:[#allocation0] ss:$8 sm:$0x3] %vm93_vm13, %v92_v29  }
  0x96   :  { %101 = vst.msk [vmem:[#allocation0] ss:$8 sm:$0x3] %vm100_vm14, %v99_v30  }
  0x97   :  { %108 = vst.msk [vmem:[#allocation0] ss:$8 sm:$0x3] %vm107_vm15, %v106_v25  }
  0x9e   :  { %v111_v31 = vld [vmem:[#allocation0] sm:$0x1]  ;;  %v116_v32 = vld [vmem:[#allocation0 + $0x8] sm:$0x1] }
  0x9f   :  { %114 = vst [vmem:[%s232_s1] sm:$0x1] %v111_v31 }
  0xa0   :  { %136 = vst [vmem:[%s232_s1 + $0x1] sm:$0x1] %v116_v32 }

// kernel: tile.28
= control target key start
LH: loop header
LB: loop body
LE: loop exit
PB: predicated region body
PF: predicated region fallthrough
CT: control target
= control target key end

     0   :  { %s40_s0 = inlined_call_operand.vmem [shape: f32[8], index: 0, kind: input, shape index: {}]   ;;  %s41_s1 = inlined_call_operand.vmem [shape: f32[28,8], index: 1, kind: output, shape index: {}]  }
   0x1   :  { %v4_v0 = vld [vmem:[%s40_s0] ss:$0 sm:$0xff] }
   0x2   :  { %5 = vst [vmem:[%s41_s1] sm:$0xff] %v4_v0 }
   0x3   :  { %12 = vst [vmem:[%s41_s1 + $0x8] sm:$0xff] %v4_v0 }
   0x4   :  { %13 = vst [vmem:[%s41_s1 + $0x10] sm:$0xff] %v4_v0 }
   0x5   :  { %14 = vst [vmem:[%s41_s1 + $0x18] sm:$0xff] %v4_v0 }

// kernel: tile.29
= control target key start
LH: loop header
LB: loop body
LE: loop exit
PB: predicated region body
PF: predicated region fallthrough
CT: control target
= control target key end

     0   :  { %s150_s10 = smov 120   ;;  %s151_s11 = smov 104   ;;  %vm4_vm0 = vcmask 64512   ;;  %vm10_vm1 = vcmask 1048512   ;;  %vm16_vm2 = vcmask 982912   ;;  %vm22_vm3 = vcmask 917312   ;;  %s229_s0 = inlined_call_operand.vmem [shape: f32[28,8], index: 0, kind: input, shape index: {}]   ;;  %s230_s1 = inlined_call_operand.vmem [shape: f32[1,224], index: 1, kind: output, shape index: {}]  }
   0x1   :  { %v119_v0 = vld [vmem:[%s229_s0 + $0xf] sm:$0x1]   ;;  %v121_v1 = vld [vmem:[%s229_s0 + $0xd] sm:$0x1]   ;;  %v120_v2 = vld [vmem:[%s229_s0 + $0xe] sm:$0x1]  }
   0x2   :  { %8 = vrot.lane.b32.xlu0 %v119_v0, %s150_s10  ;;  %20 = vrot.lane.b32.xlu1 %v121_v1, %s151_s11  ;;  %v122_v3 = vld [vmem:[%s229_s0 + $0xc] sm:$0x1]   ;;  %s31_s16 = smov 3  ;;  %s152_s19 = smov 88   ;;  %vm28_vm4 = vcmask 851712   ;;  %vm35_vm5 = vcmask 786112  }
   0x3   :  { %v123_v4 = vld [vmem:[%s229_s0 + $0xb] ss:$16 sm:%s31_s16]   ;;  %s153_s20 = smov 112   ;;  %s154_s21 = smov 96   ;;  %vm42_vm6 = vcmask 720512   ;;  %vm49_vm7 = vcmask 654912  }
   0x4   :  { %33 = vrot.lane.b32.xlu2 %v123_v4, %s152_s19  ;;  %s38_s22 = smov 3  ;;  %s45_s23 = smov 3  ;;  %vm56_vm8 = vcmask 589312   ;;  %vm63_vm9 = vcmask 523712   ;;  %vm70_vm10 = vcmask 458112   ;;  %vm77_vm11 = vcmask 392512  }
   0x5   :  { %s52_s24 = smov 3  ;;  %v124_v5 = vld [vmem:[%s229_s0 + $0xa] ss:$16 sm:%s38_s22]   ;;  %v125_v6 = vld [vmem:[%s229_s0 + $0x9] ss:$16 sm:%s45_s23]   ;;  %s155_s2 = smov 80  }
   0x6   :  { %v126_v7 = vld [vmem:[%s229_s0 + $0x8] ss:$16 sm:%s52_s24]   ;;  %s156_s3 = smov 72   ;;  %s157_s4 = smov 64   ;;  %vm84_vm12 = vcmask 326912   ;;  %vm91_vm13 = vcmask 261312  }
   0x7   :  { %s59_s5 = smov 3  ;;  %s66_s6 = smov 3  ;;  %vm98_vm14 = vcmask 195712   ;;  %vm105_vm15 = vcmask 130112  }
   0x8   :  { %s73_s7 = smov 3  ;;  %v127_v8 = vld [vmem:[%s229_s0 + $0x7] ss:$16 sm:%s59_s5]   ;;  %v128_v9 = vld [vmem:[%s229_s0 + $0x6] ss:$16 sm:%s66_s6]   ;;  %s158_s14 = smov 56  }
   0x9   :  { %v129_v10 = vld [vmem:[%s229_s0 + $0x5] ss:$16 sm:%s73_s7]   ;;  %s159_s15 = smov 48   ;;  %s160_s16 = smov 40  }
   0xa   :  { %14 = vrot.lane.b32.xlu0 %v120_v2, %s153_s20  ;;  %26 = vrot.lane.b32.xlu1 %v122_v3, %s154_s21  ;;  %s80_s17 = smov 3  ;;  %s87_s18 = smov 3 }
   0xb   :  { %s94_s19 = smov 3  ;;  %v130_v11 = vld [vmem:[%s229_s0 + $0x4] ss:$16 sm:%s80_s17]   ;;  %v131_v12 = vld [vmem:[%s229_s0 + $0x3] ss:$16 sm:%s87_s18]   ;;  %s161_s26 = smov 32  }
   0xc   :  { %40 = vrot.lane.b32.xlu2 %v124_v5, %s155_s2  ;;  %v132_v13 = vld [vmem:[%s229_s0 + $0x2] ss:$16 sm:%s94_s19]   ;;  %s162_s27 = smov 24   ;;  %s163_s28 = smov 16  }
   0xd   :  { %s101_s29 = smov 3 }
   0xe   :  { %v133_v14 = vld [vmem:[%s229_s0 + $0x1] ss:$16 sm:%s101_s29]  }
  0x12   :  { %47 = vrot.lane.b32.xlu0 %v125_v6, %s156_s3  ;;  %54 = vrot.lane.b32.xlu1 %v126_v7, %s157_s4  ;;  %s164_s3 = smov 8   ;;  %s2_s4 = smov 3 }
  0x13   :  { %v3_v15 = vld [vmem:[%s229_s0] ss:$16 sm:%s2_s4]  }
  0x14   :  { %61 = vrot.lane.b32.xlu2 %v127_v8, %s158_s14  ;;  %5 = vst.msk [vmem:[#allocation0] ss:$8 sm:$0x3] %vm4_vm0, %v3_v15  }
  0x1a   :  { %68 = vrot.lane.b32.xlu0 %v128_v9, %s159_s15  ;;  %75 = vrot.lane.b32.xlu1 %v129_v10, %s160_s16 }
  0x1c   :  { %82 = vrot.lane.b32.xlu2 %v130_v11, %s161_s26 }
  0x22   :  { %89 = vrot.lane.b32.xlu0 %v131_v12, %s162_s27  ;;  %96 = vrot.lane.b32.xlu1 %v132_v13, %s163_s28 }
  0x24   :  { %103 = vrot.lane.b32.xlu2 %v133_v14, %s164_s3 }
  0x5e   :  { %v34_v16 = vpop.permute.xlu2 %33  }
  0x66   :  { %v41_v17 = vpop.permute.xlu2 %40  }
  0x6e   :  { %v62_v18 = vpop.permute.xlu2 %61  }
  0x74   :  { %v9_v19 = vpop.permute.xlu0 %8   ;;  %v21_v20 = vpop.permute.xlu1 %20  }
  0x75   :  { %11 = vst.msk [vmem:[#allocation0] sm:$0x1] %vm10_vm1, %v9_v19  }
  0x76   :  { %v83_v21 = vpop.permute.xlu2 %82  }
  0x7c   :  { %v15_v22 = vpop.permute.xlu0 %14   ;;  %v27_v23 = vpop.permute.xlu1 %26  }
  0x7d   :  { %17 = vst.msk [vmem:[#allocation0] sm:$0x1] %vm16_vm2, %v15_v22  }
  0x7e   :  { %23 = vst.msk [vmem:[#allocation0] sm:$0x1] %vm22_vm3, %v21_v20   ;;  %v104_v24 = vpop.permute.xlu2 %103  }
  0x7f   :  { %29 = vst.msk [vmem:[#allocation0] sm:$0x1] %vm28_vm4, %v27_v23  }
  0x80   :  { %36 = vst.msk [vmem:[#allocation0] ss:$8 sm:$0x3] %vm35_vm5, %v34_v16  }
  0x81   :  { %43 = vst.msk [vmem:[#allocation0] ss:$8 sm:$0x3] %vm42_vm6, %v41_v17  }
  0x84   :  { %v48_v25 = vpop.permute.xlu0 %47   ;;  %v55_v26 = vpop.permute.xlu1 %54  }
  0x85   :  { %50 = vst.msk [vmem:[#allocation0] ss:$8 sm:$0x3] %vm49_vm7, %v48_v25  }
  0x86   :  { %57 = vst.msk [vmem:[#allocation0] ss:$8 sm:$0x3] %vm56_vm8, %v55_v26  }
  0x87   :  { %64 = vst.msk [vmem:[#allocation0] ss:$8 sm:$0x3] %vm63_vm9, %v62_v18  }
  0x8c   :  { %v69_v27 = vpop.permute.xlu0 %68   ;;  %v76_v28 = vpop.permute.xlu1 %75  }
  0x8d   :  { %71 = vst.msk [vmem:[#allocation0] ss:$8 sm:$0x3] %vm70_vm10, %v69_v27  }
  0x8e   :  { %78 = vst.msk [vmem:[#allocation0] ss:$8 sm:$0x3] %vm77_vm11, %v76_v28  }
  0x8f   :  { %85 = vst.msk [vmem:[#allocation0] ss:$8 sm:$0x3] %vm84_vm12, %v83_v21  }
  0x94   :  { %v90_v29 = vpop.permute.xlu0 %89   ;;  %v97_v30 = vpop.permute.xlu1 %96  }
  0x95   :  { %92 = vst.msk [vmem:[#allocation0] ss:$8 sm:$0x3] %vm91_vm13, %v90_v29  }
  0x96   :  { %99 = vst.msk [vmem:[#allocation0] ss:$8 sm:$0x3] %vm98_vm14, %v97_v30  }
  0x97   :  { %106 = vst.msk [vmem:[#allocation0] ss:$8 sm:$0x3] %vm105_vm15, %v104_v24  }
  0x9e   :  { %v109_v31 = vld [vmem:[#allocation0] sm:$0x1]  ;;  %v114_v32 = vld [vmem:[#allocation0 + $0x8] sm:$0x1] }
  0x9f   :  { %112 = vst [vmem:[%s230_s1] sm:$0x1] %v109_v31 }
  0xa0   :  { %134 = vst [vmem:[%s230_s1 + $0x1] sm:$0x1] %v114_v32 }

// kernel: tile.38
= control target key start
LH: loop header
LB: loop body
LE: loop exit
PB: predicated region body
PF: predicated region fallthrough
CT: control target
= control target key end

     0   :  { %s34_s0 = inlined_call_operand.vmem [shape: f32[16], index: 0, kind: input, shape index: {}]   ;;  %s35_s1 = inlined_call_operand.vmem [shape: f32[24,16], index: 1, kind: output, shape index: {}]  }
   0x1   :  { %v4_v0 = vld [vmem:[%s34_s0] ss:$0 sm:$0xff] }
   0x2   :  { %5 = vst [vmem:[%s35_s1] sm:$0xff] %v4_v0 }
   0x3   :  { %10 = vst [vmem:[%s35_s1 + $0x8] sm:$0xff] %v4_v0 }
   0x4   :  { %11 = vst [vmem:[%s35_s1 + $0x10] sm:$0xff] %v4_v0 }

// kernel: tile.39
= control target key start
LH: loop header
LB: loop body
LE: loop exit
PB: predicated region body
PF: predicated region fallthrough
CT: control target
= control target key end

     0   :  { %s81_s8 = smov 112   ;;  %s82_s11 = smov 80   ;;  %vm3_vm0 = vcmask 130048   ;;  %vm9_vm1 = vcmask 1048448   ;;  %vm15_vm2 = vcmask 917248   ;;  %vm21_vm3 = vcmask 786048   ;;  %s131_s0 = inlined_call_operand.vmem [shape: f32[24,16], index: 0, kind: input, shape index: {}]   ;;  %s132_s1 = inlined_call_operand.vmem [shape: f32[1,384], index: 1, kind: output, shape index: {}]  }
   0x1   :  { %v65_v0 = vld [vmem:[%s131_s0 + $0x7] ss:$8 sm:$0x7]   ;;  %v67_v1 = vld [vmem:[%s131_s0 + $0x5] ss:$8 sm:$0x7]  }
   0x2   :  { %7 = vrot.lane.b32.xlu0 %v65_v0, %s81_s8  ;;  %19 = vrot.lane.b32.xlu1 %v67_v1, %s82_s11  ;;  %v69_v2 = vld [vmem:[%s131_s0 + $0x3] ss:$8 sm:$0x7]   ;;  %s83_s14 = smov 48   ;;  %s84_s19 = smov 96   ;;  %vm27_vm4 = vcmask 654848  }
   0x3   :  { %31 = vrot.lane.b32.xlu2 %v69_v2, %s83_s14  ;;  %v66_v3 = vld [vmem:[%s131_s0 + $0x6] ss:$8 sm:$0x7]   ;;  %v68_v4 = vld [vmem:[%s131_s0 + $0x4] ss:$8 sm:$0x7]  }
   0x4   :  { %s85_s20 = smov 64   ;;  %v70_v5 = vld [vmem:[%s131_s0 + $0x2] ss:$8 sm:$0x7]   ;;  %s86_s23 = smov 32   ;;  %vm33_vm5 = vcmask 523648  }
   0x5   :  { %v71_v6 = vld [vmem:[%s131_s0 + $0x1] ss:$8 sm:$0x7]   ;;  %s87_s26 = smov 16   ;;  %vm39_vm6 = vcmask 392448   ;;  %vm45_vm7 = vcmask 261248  }
   0x6   :  { %v2_v7 = vld [vmem:[%s131_s0] ss:$8 sm:$0x7]  }
   0x7   :  { %4 = vst.msk [vmem:[#allocation0] ss:$8 sm:$0x7] %vm3_vm0, %v2_v7  }
   0xa   :  { %13 = vrot.lane.b32.xlu0 %v66_v3, %s84_s19  ;;  %25 = vrot.lane.b32.xlu1 %v68_v4, %s85_s20 }
   0xb   :  { %37 = vrot.lane.b32.xlu2 %v70_v5, %s86_s23 }
  0x12   :  { %43 = vrot.lane.b32.xlu0 %v71_v6, %s87_s26 }
  0x5d   :  { %v32_v8 = vpop.permute.xlu2 %31  }
  0x65   :  { %v38_v9 = vpop.permute.xlu2 %37  }
  0x74   :  { %v8_v10 = vpop.permute.xlu0 %7   ;;  %v20_v11 = vpop.permute.xlu1 %19  }
  0x75   :  { %10 = vst.msk [vmem:[#allocation0] ss:$8 sm:$0x7] %vm9_vm1, %v8_v10  }
  0x7c   :  { %v14_v12 = vpop.permute.xlu0 %13   ;;  %v26_v13 = vpop.permute.xlu1 %25  }
  0x7d   :  { %16 = vst.msk [vmem:[#allocation0] ss:$8 sm:$0x7] %vm15_vm2, %v14_v12  }
  0x7e   :  { %22 = vst.msk [vmem:[#allocation0] ss:$8 sm:$0x7] %vm21_vm3, %v20_v11  }
  0x7f   :  { %28 = vst.msk [vmem:[#allocation0] ss:$8 sm:$0x7] %vm27_vm4, %v26_v13  }
  0x80   :  { %34 = vst.msk [vmem:[#allocation0] ss:$8 sm:$0x7] %vm33_vm5, %v32_v8  }
  0x81   :  { %40 = vst.msk [vmem:[#allocation0] ss:$8 sm:$0x7] %vm39_vm6, %v38_v9  }
  0x84   :  { %v44_v14 = vpop.permute.xlu0 %43  }
  0x85   :  { %46 = vst.msk [vmem:[#allocation0] ss:$8 sm:$0x7] %vm45_vm7, %v44_v14  }
  0x8c   :  { %v49_v15 = vld [vmem:[#allocation0] sm:$0x1]  ;;  %v54_v16 = vld [vmem:[#allocation0 + $0x8] sm:$0x1]  ;;  %v60_v17 = vld [vmem:[#allocation0 + $0x10] sm:$0x1] }
  0x8d   :  { %52 = vst [vmem:[%s132_s1] sm:$0x1] %v49_v15 }
  0x8e   :  { %72 = vst [vmem:[%s132_s1 + $0x1] sm:$0x1] %v54_v16 }
  0x8f   :  { %73 = vst [vmem:[%s132_s1 + $0x2] sm:$0x1] %v60_v17 }

// kernel: encoder_forward.1
= control target key start
LH: loop header
LB: loop body
LE: loop exit
PB: predicated region body
PF: predicated region fallthrough
CT: control target
= control target key end

     0   :  { %s4644_s17 = smov 0   ;;  %s8757_s0 = inlined_call_operand.vmem [shape: f32[2,16,128], index: 0, kind: input, shape index: {}]   ;;  %s8758_s1 = inlined_call_operand.vmem [shape: f32[3,128,240], index: 1, kind: input, shape index: {}]   ;;  %s8759_s2 = inlined_call_operand.vmem [shape: f32[1,240], index: 2, kind: input, shape index: {}]   ;;  %s8760_s3 = inlined_call_operand.vmem [shape: f32[3,240,224], index: 3, kind: input, shape index: {}]   ;;  %s8761_s4 = inlined_call_operand.vmem [shape: f32[1,224], index: 4, kind: input, shape index: {}]   ;;  %s8762_s5 = inlined_call_operand.vmem [shape: f32[128,224], index: 5, kind: input, shape index: {}]   ;;  %s8763_s6 = inlined_call_operand.vmem [shape: f32[3,224,416], index: 6, kind: input, shape index: {}]   ;;  %s8764_s7 = inlined_call_operand.vmem [shape: f32[1,416], index: 7, kind: input, shape index: {}]   ;;  %s8765_s8 = inlined_call_operand.vmem [shape: f32[3,416,384], index: 8, kind: input, shape index: {}]   ;;  %s8766_s9 = inlined_call_operand.vmem [shape: f32[1,384], index: 9, kind: input, shape index: {}]   ;;  %s8767_s10 = inlined_call_operand.vmem [shape: f32[224,384], index: 10, kind: input, shape index: {}]   ;;  %s8768_s11 = inlined_call_operand.vmem [shape: f32[2,1,384], index: 11, kind: output, shape index: {}]  }
   0x1 LB: > { %s3784_s18 = sadd.s32 4294967295, %s4582_s17   ;;  %p3788_p0 = scmp.ge.s32.totalorder %s4582_s17, 1  ;;  %s4582_s17 = sphi %s4644_s17, %s21_s17  }
   0x2   : > { %p337_p1 = scmp.lt.s32.totalorder %s4582_s17, 3 }
   0x4   : > { %p338_p2 = pnand %p3788_p0, %p337_p1 }
   0x5   : > { %p4765_p3 = scmp.lt.s32.totalorder (!%p338_p2), %s3784_s18, 1 }
   0x6   : > { %341 = sbr.rel (%p338_p2) target bundleno = 1107 (0x453), region = 64 }
   0xb   : > { %v3821_v0 = vld [vmem:[%s8758_s1 + $0x1f0] sm:$0xff]  ;;  %v3822_v1 = vld [vmem:[%s8758_s1 + $0x1f8] sm:$0xff]  ;;  %v3819_v2 = vld [vmem:[%s8758_s1 + $0x1e0] sm:$0xff]  ;;  %s8771_s18 = smov (!%p4765_p3, %s3784_s18), 1  ;;  %vm454_vm0 = vcmask 1046528   ;;  %vm585_vm1 = vcmask 1045504  }
   0xc   : > { %460 = vmatpush.msra.mxu0 %v3821_v0  ;;  %483 = vmatpush.msra.mxu1 %v3822_v1  ;;  %v3820_v3 = vld [vmem:[%s8758_s1 + $0x1e8] sm:$0xff]  ;;  %v3817_v4 = vld [vmem:[%s8758_s1 + $0x1d0] sm:$0xff]  ;;  %v3818_v5 = vld [vmem:[%s8758_s1 + $0x1d8] sm:$0xff]  ;;  %s4564_s24 = sshll.u32 %s8771_s18, 4  ;;  %vm788_vm2 = vcmask 916480   ;;  %vm1501_vm3 = vcmask 785408  }
   0xd   : > { %v3815_v6 = vld [vmem:[%s8758_s1 + $0x1c0] sm:$0xff]  ;;  %v417_v7 = vld [vmem:[%s8758_s1 + $0xf0] sm:$0xff]  ;;  %v3816_v8 = vld [vmem:[%s8758_s1 + $0x1c8] sm:$0xff]  ;;  %s4845_s22 = scalar_lea.vmem %s8757_s0, %s4564_s24  ;;  %vm2557_vm4 = vcmask 261120   ;;  %s4565_s21 = smul.u32 3, %s8771_s18  ;;  %vm3721_vm5 = vcmask 1040384  }
   0xe   : > { %461 = vmatpush.msra.mxu0 %v3819_v2  ;;  %484 = vmatpush.msra.mxu1 %v3820_v3  ;;  %v418_v9 = vld [vmem:[%s8758_s1 + $0xf8] sm:$0xff]  ;;  %v415_v10 = vld [vmem:[%s8758_s1 + $0xe0] sm:$0xff]  ;;  %v416_v11 = vld [vmem:[%s8758_s1 + $0xe8] sm:$0xff]  ;;  %vm3723_vm6 = vcmask 1041408  }
   0xf   : > { %506 = vmatpush.msra.mxu2 %v417_v7  ;;  %v3813_v12 = vld [vmem:[%s8758_s1 + $0x1b0] sm:$0xff]  ;;  %v3814_v13 = vld [vmem:[%s8758_s1 + $0x1b8] sm:$0xff]  ;;  %529 = vmatpush.msra.mxu3 %v418_v9  ;;  %v411_v16 = vld [vmem:[%s8758_s1 + $0xc0] sm:$0xff]  ;;  %s384_s27 = scalar_lea.vmem %s8768_s11, %s4565_s21 }
  0x10   : > { %462 = vmatpush.msra.mxu0 %v3817_v4  ;;  %485 = vmatpush.msra.mxu1 %v3818_v5  ;;  %v413_v14 = vld [vmem:[%s8758_s1 + $0xd0] sm:$0xff]  ;;  %v414_v15 = vld [vmem:[%s8758_s1 + $0xd8] sm:$0xff]  ;;  %v3811_v17 = vld [vmem:[%s8758_s1 + $0x1a0] sm:$0xff] }
  0x11   : > { %507 = vmatpush.msra.mxu2 %v415_v10  ;;  %v3812_v18 = vld [vmem:[%s8758_s1 + $0x1a8] sm:$0xff]  ;;  %530 = vmatpush.msra.mxu3 %v416_v11  ;;  %v409_v20 = vld [vmem:[%s8758_s1 + $0xb0] sm:$0xff]  ;;  %v3810_v22 = vld [vmem:[%s8758_s1 + $0x198] sm:$0xff] }
  0x12   : > { %463 = vmatpush.msra.mxu0 %v3815_v6  ;;  %486 = vmatpush.msra.mxu1 %v3816_v8  ;;  %v412_v19 = vld [vmem:[%s8758_s1 + $0xc8] sm:$0xff]  ;;  %v3809_v21 = vld [vmem:[%s8758_s1 + $0x190] sm:$0xff]  ;;  %v410_v23 = vld [vmem:[%s8758_s1 + $0xb8] sm:$0xff] }
  0x13   : > { %508 = vmatpush.msra.mxu2 %v413_v14  ;;  %531 = vmatpush.msra.mxu3 %v414_v15  ;;  %v407_v24 = vld [vmem:[%s8758_s1 + $0xa0] sm:$0xff]  ;;  %v3808_v26 = vld [vmem:[%s8758_s1 + $0x188] sm:$0xff]  ;;  %v405_v28 = vld [vmem:[%s8758_s1 + $0x90] sm:$0xff] }
  0x14   : > { %464 = vmatpush.msra.mxu0 %v3813_v12  ;;  %487 = vmatpush.msra.mxu1 %v3814_v13  ;;  %v3807_v25 = vld [vmem:[%s8758_s1 + $0x180] sm:$0xff]  ;;  %v408_v27 = vld [vmem:[%s8758_s1 + $0xa8] sm:$0xff]  ;;  %v3805_v29 = vld [vmem:[%s8758_s1 + $0x170] sm:$0xff] }
  0x15   : > { %509 = vmatpush.msra.mxu2 %v411_v16  ;;  %532 = vmatpush.msra.mxu3 %v412_v19  ;;  %v3806_v30 = vld [vmem:[%s8758_s1 + $0x178] sm:$0xff]  ;;  %v403_v32 = vld [vmem:[%s8758_s1 + $0x80] sm:$0xff]  ;;  %v3804_v34 = vld [vmem:[%s8758_s1 + $0x168] sm:$0xff] }
  0x16   : > { %465 = vmatpush.msra.mxu0 %v3811_v17  ;;  %488 = vmatpush.msra.mxu1 %v3812_v18  ;;  %v406_v31 = vld [vmem:[%s8758_s1 + $0x98] sm:$0xff]  ;;  %v3803_v33 = vld [vmem:[%s8758_s1 + $0x160] sm:$0xff]  ;;  %v404_v35 = vld [vmem:[%s8758_s1 + $0x88] sm:$0xff] }
  0x17   : > { %510 = vmatpush.msra.mxu2 %v409_v20  ;;  %533 = vmatpush.msra.mxu3 %v410_v23  ;;  %v401_v36 = vld [vmem:[%s8758_s1 + $0x70] sm:$0xff]  ;;  %v3802_v38 = vld [vmem:[%s8758_s1 + $0x158] sm:$0xff]  ;;  %v399_v40 = vld [vmem:[%s8758_s1 + $0x60] sm:$0xff] }
  0x18   : > { %466 = vmatpush.msra.mxu0 %v3809_v21  ;;  %489 = vmatpush.msra.mxu1 %v3810_v22  ;;  %v3801_v37 = vld [vmem:[%s8758_s1 + $0x150] sm:$0xff]  ;;  %v402_v39 = vld [vmem:[%s8758_s1 + $0x78] sm:$0xff]  ;;  %v3799_v41 = vld [vmem:[%s8758_s1 + $0x140] sm:$0xff] }
  0x19   : > { %511 = vmatpush.msra.mxu2 %v407_v24  ;;  %534 = vmatpush.msra.mxu3 %v408_v27  ;;  %v3800_v42 = vld [vmem:[%s8758_s1 + $0x148] sm:$0xff]  ;;  %v397_v44 = vld [vmem:[%s8758_s1 + $0x50] sm:$0xff]  ;;  %v3798_v46 = vld [vmem:[%s8758_s1 + $0x138] sm:$0xff] }
  0x1a   : > { %467 = vmatpush.msra.mxu0 %v3807_v25  ;;  %490 = vmatpush.msra.mxu1 %v3808_v26  ;;  %v400_v43 = vld [vmem:[%s8758_s1 + $0x68] sm:$0xff]  ;;  %v3797_v45 = vld [vmem:[%s8758_s1 + $0x130] sm:$0xff]  ;;  %v398_v47 = vld [vmem:[%s8758_s1 + $0x58] sm:$0xff] }
  0x1b   : > { %512 = vmatpush.msra.mxu2 %v405_v28  ;;  %535 = vmatpush.msra.mxu3 %v406_v31  ;;  %v395_v48 = vld [vmem:[%s8758_s1 + $0x40] sm:$0xff]  ;;  %v3796_v50 = vld [vmem:[%s8758_s1 + $0x128] sm:$0xff]  ;;  %v393_v52 = vld [vmem:[%s8758_s1 + $0x30] sm:$0xff] }
  0x1c   : > { %468 = vmatpush.msra.mxu0 %v3805_v29  ;;  %491 = vmatpush.msra.mxu1 %v3806_v30  ;;  %v3795_v49 = vld [vmem:[%s8758_s1 + $0x120] sm:$0xff]  ;;  %v396_v51 = vld [vmem:[%s8758_s1 + $0x48] sm:$0xff]  ;;  %v3793_v53 = vld [vmem:[%s8758_s1 + $0x110] sm:$0xff] }
  0x1d   : > { %513 = vmatpush.msra.mxu2 %v403_v32  ;;  %536 = vmatpush.msra.mxu3 %v404_v35  ;;  %v3794_v54 = vld [vmem:[%s8758_s1 + $0x118] sm:$0xff]  ;;  %v391_v56 = vld [vmem:[%s8758_s1 + $0x20] sm:$0xff]  ;;  %v3792_v58 = vld [vmem:[%s8758_s1 + $0x108] sm:$0xff] }
  0x1e   : > { %469 = vmatpush.msra.mxu0 %v3803_v33  ;;  %492 = vmatpush.msra.mxu1 %v3804_v34  ;;  %v394_v55 = vld [vmem:[%s8758_s1 + $0x38] sm:$0xff]  ;;  %v3791_v57 = vld [vmem:[%s8758_s1 + $0x100] sm:$0xff]  ;;  %v3853_v59 = vld [vmem:[%s8758_s1 + $0x2f0] sm:$0xff] }
  0x1f   : > { %514 = vmatpush.msra.mxu2 %v401_v36  ;;  %537 = vmatpush.msra.mxu3 %v402_v39  ;;  %v3854_v60 = vld [vmem:[%s8758_s1 + $0x2f8] sm:$0xff]  ;;  %v4854_v61 = vld [vmem:[%s4845_s22 + $0x8] sm:$0xff]  ;;  %v389_v63 = vld [vmem:[%s8758_s1 + $0x10] sm:$0xff] }
  0x20   : > { %470 = vmatpush.msra.mxu0 %v3801_v37  ;;  %493 = vmatpush.msra.mxu1 %v3802_v38  ;;  %v392_v62 = vld [vmem:[%s8758_s1 + $0x28] sm:$0xff]  ;;  %v3851_v0 = vld [vmem:[%s8758_s1 + $0x2e0] sm:$0xff]  ;;  %v390_v3 = vld [vmem:[%s8758_s1 + $0x18] sm:$0xff]  ;;  %v456_v6 = vrot.slane %v4854_v61, 1 }
  0x21   : > { %515 = vmatpush.msra.mxu2 %v399_v40  ;;  %538 = vmatpush.msra.mxu3 %v400_v43  ;;  %v3852_v1 = vld [vmem:[%s8758_s1 + $0x2e8] sm:$0xff]  ;;  %v4869_v2 = vld [vmem:[%s4845_s22] sm:$0xff]  ;;  %v3849_v7 = vld [vmem:[%s8758_s1 + $0x2d0] sm:$0xff] }
  0x22   : > { %471 = vmatpush.msra.mxu0 %v3799_v41  ;;  %494 = vmatpush.msra.mxu1 %v3800_v42  ;;  %v387_v4 = vld [vmem:[%s8758_s1] sm:$0xff]  ;;  %v455_v5 = vrot.slane %v4869_v2, 1  ;;  %v3850_v8 = vld [vmem:[%s8758_s1 + $0x2d8] sm:$0xff]  ;;  %v388_v9 = vld [vmem:[%s8758_s1 + $0x8] sm:$0xff] }
  0x23   : > { %516 = vmatpush.msra.mxu2 %v397_v44  ;;  %539 = vmatpush.msra.mxu3 %v398_v47  ;;  %v3847_v10 = vld [vmem:[%s8758_s1 + $0x2c0] sm:$0xff]  ;;  %v3848_v11 = vld [vmem:[%s8758_s1 + $0x2c8] sm:$0xff]  ;;  %v3845_v13 = vld [vmem:[%s8758_s1 + $0x2b0] sm:$0xff]  ;;  %v587_v47 = vrot.slane %v4854_v61, 2 }
  0x24   : > { %472 = vmatpush.msra.mxu0 %v3797_v45  ;;  %495 = vmatpush.msra.mxu1 %v3798_v46  ;;  %v457_v12 = vsel %vm454_vm0, %v455_v5, %v456_v6  ;;  %v3846_v14 = vld [vmem:[%s8758_s1 + $0x2b8] sm:$0xff]  ;;  %v3843_v15 = vld [vmem:[%s8758_s1 + $0x2a0] sm:$0xff]  ;;  %v3844_v16 = vld [vmem:[%s8758_s1 + $0x2a8] sm:$0xff]  ;;  %v586_v46 = vrot.slane %v4869_v2, 2 }
  0x25   : > { %517 = vmatpush.msra.mxu2 %v395_v48  ;;  %540 = vmatpush.msra.mxu3 %v396_v51  ;;  %v3885_v17 = vld [vmem:[%s8760_s3 + $0x2d0] sm:$0xff]  ;;  %v3883_v19 = vld [vmem:[%s8760_s3 + $0x2c0] sm:$0xff]  ;;  %v3842_v21 = vld [vmem:[%s8758_s1 + $0x298] sm:$0xff] }
  0x26   : > { %473 = vmatpush.msra.mxu0 %v3795_v49  ;;  %496 = vmatpush.msra.mxu1 %v3796_v50  ;;  %v3913_v18 = vld [vmem:[%s8760_s3 + $0x3b0] sm:$0xff]  ;;  %v3911_v22 = vld [vmem:[%s8760_s3 + $0x3a0] sm:$0xff]  ;;  %v3840_v24 = vld [vmem:[%s8758_s1 + $0x288] sm:$0xff] }
  0x27   : > { %518 = vmatpush.msra.mxu2 %v393_v52  ;;  %541 = vmatpush.msra.mxu3 %v394_v55  ;;  %v3841_v20 = vld [vmem:[%s8758_s1 + $0x290] sm:$0xff]  ;;  %v3839_v23 = vld [vmem:[%s8758_s1 + $0x280] sm:$0xff]  ;;  %v3838_v26 = vld [vmem:[%s8758_s1 + $0x278] sm:$0xff] }
  0x28   : > { %474 = vmatpush.msra.mxu0 %v3793_v53  ;;  %497 = vmatpush.msra.mxu1 %v3794_v54  ;;  %v3837_v25 = vld [vmem:[%s8758_s1 + $0x270] sm:$0xff]  ;;  %v3835_v28 = vld [vmem:[%s8758_s1 + $0x260] sm:$0xff]  ;;  %v3836_v29 = vld [vmem:[%s8758_s1 + $0x268] sm:$0xff] }
  0x29   : > { %519 = vmatpush.msra.mxu2 %v391_v56  ;;  %542 = vmatpush.msra.mxu3 %v392_v62  ;;  %v3881_v27 = vld [vmem:[%s8760_s3 + $0x2b0] sm:$0xff]  ;;  %v3879_v31 = vld [vmem:[%s8760_s3 + $0x2a0] sm:$0xff]  ;;  %v3834_v33 = vld [vmem:[%s8758_s1 + $0x258] sm:$0xff]  ;;  %v588_v56 = vsel %vm585_vm1, %v586_v46, %v587_v47 }
  0x2a   : > { %475 = vmatpush.msra.mxu0 %v3791_v57  ;;  %498 = vmatpush.msra.mxu1 %v3792_v58  ;;  %v3909_v30 = vld [vmem:[%s8760_s3 + $0x390] sm:$0xff]  ;;  %v3907_v34 = vld [vmem:[%s8760_s3 + $0x380] sm:$0xff]  ;;  %v3832_v37 = vld [vmem:[%s8758_s1 + $0x248] sm:$0xff] }
  0x2b   : > { %520 = vmatpush.msra.mxu2 %v389_v63  ;;  %543 = vmatpush.msra.mxu3 %v390_v3  ;;  %v3833_v32 = vld [vmem:[%s8758_s1 + $0x250] sm:$0xff]  ;;  %v3831_v36 = vld [vmem:[%s8758_s1 + $0x240] sm:$0xff]  ;;  %v3830_v41 = vld [vmem:[%s8758_s1 + $0x238] sm:$0xff] }
  0x2c   : > { %591 = vmatpush.msrb.mxu0 %v3853_v59  ;;  %614 = vmatpush.msrb.mxu1 %v3854_v60  ;;  %v3877_v35 = vld [vmem:[%s8760_s3 + $0x290] sm:$0xff]  ;;  %v3875_v39 = vld [vmem:[%s8760_s3 + $0x280] sm:$0xff]  ;;  %v3828_v45 = vld [vmem:[%s8758_s1 + $0x228] sm:$0xff] }
  0x2d   : > { %521 = vmatpush.msra.mxu2 %v387_v4  ;;  %544 = vmatpush.msra.mxu3 %v388_v9  ;;  %v3905_v38 = vld [vmem:[%s8760_s3 + $0x370] sm:$0xff]  ;;  %v3903_v42 = vld [vmem:[%s8760_s3 + $0x360] sm:$0xff]  ;;  %v3826_v51 = vld [vmem:[%s8758_s1 + $0x218] sm:$0xff] }
  0x2e   : > { %592 = vmatpush.msrb.mxu0 %v3851_v0  ;;  %615 = vmatpush.msrb.mxu1 %v3852_v1  ;;  %v3829_v40 = vld [vmem:[%s8758_s1 + $0x230] sm:$0xff]  ;;  %v3827_v44 = vld [vmem:[%s8758_s1 + $0x220] sm:$0xff]  ;;  %v3824_v55 = vld [vmem:[%s8758_s1 + $0x208] sm:$0xff] }
  0x2f   : > { %522 = vmatmul.f32.vlgmr.msra.gmra.mxu2 %v4869_v2  ;;  %545 = vmatmul.f32.vlgmr.msra.gmra.mxu3 %v4869_v2  ;;  %v3873_v43 = vld [vmem:[%s8760_s3 + $0x270] sm:$0xff]  ;;  %v3871_v49 = vld [vmem:[%s8760_s3 + $0x260] sm:$0xff]  ;;  %v3914_v58 = vld [vmem:[%s8760_s3 + $0x3b8] sm:$0xff] }
  0x30   : > { %593 = vmatpush.msrb.mxu0 %v3849_v7  ;;  %616 = vmatpush.msrb.mxu1 %v3850_v8  ;;  %v3901_v48 = vld [vmem:[%s8760_s3 + $0x350] sm:$0xff]  ;;  %v3899_v52 = vld [vmem:[%s8760_s3 + $0x340] sm:$0xff]  ;;  %v3912_v62 = vld [vmem:[%s8760_s3 + $0x3a8] sm:$0xff] }
  0x31   : > { %476 = vmatmul.f32.vlgmr.msra.gmra.mxu0 %v457_v12  ;;  %499 = vmatmul.f32.vlgmr.msra.gmra.mxu1 %v457_v12  ;;  %v3825_v50 = vld [vmem:[%s8758_s1 + $0x210] sm:$0xff]  ;;  %v3823_v54 = vld [vmem:[%s8758_s1 + $0x200] sm:$0xff]  ;;  %v3910_v2 = vld [vmem:[%s8760_s3 + $0x398] sm:$0xff] }
  0x32   : > { %594 = vmatpush.msrb.mxu0 %v3847_v10  ;;  %617 = vmatpush.msrb.mxu1 %v3848_v11  ;;  %v3869_v53 = vld [vmem:[%s8760_s3 + $0x250] sm:$0xff]  ;;  %v3867_v60 = vld [vmem:[%s8760_s3 + $0x240] sm:$0xff]  ;;  %v3906_v8 = vld [vmem:[%s8760_s3 + $0x378] sm:$0xff] }
  0x33   : > { %793 = vmatpush.msrb.mxu2 %v3885_v17  ;;  %818 = vmatpush.msrb.mxu3 %v3913_v18  ;;  %v685_v57 = vld [vmem:[%s8760_s3 + $0xf0] sm:$0xff]  ;;  %v3895_v63 = vld [vmem:[%s8760_s3 + $0x320] sm:$0xff]  ;;  %v3904_v11 = vld [vmem:[%s8760_s3 + $0x368] sm:$0xff] }
  0x34   : > { %595 = vmatpush.msrb.mxu0 %v3845_v13  ;;  %618 = vmatpush.msrb.mxu1 %v3846_v14  ;;  %v3897_v59 = vld [vmem:[%s8760_s3 + $0x330] sm:$0xff]  ;;  %v3863_v4 = vld [vmem:[%s8760_s3 + $0x220] sm:$0xff]  ;;  %v3902_v13 = vld [vmem:[%s8760_s3 + $0x358] sm:$0xff] }
  0x35   : > { %794 = vmatpush.msrb.mxu2 %v3883_v19  ;;  %819 = vmatpush.msrb.mxu3 %v3911_v22  ;;  %v3865_v0 = vld [vmem:[%s8760_s3 + $0x230] sm:$0xff]  ;;  %v679_v5 = vld [vmem:[%s8760_s3 + $0xc0] sm:$0xff]  ;;  %v3898_v17 = vld [vmem:[%s8760_s3 + $0x338] sm:$0xff] }
  0x36   : > { %596 = vmatpush.msrb.mxu0 %v3843_v15  ;;  %619 = vmatpush.msrb.mxu1 %v3844_v16  ;;  %v681_v1 = vld [vmem:[%s8760_s3 + $0xd0] sm:$0xff]  ;;  %v3891_v9 = vld [vmem:[%s8760_s3 + $0x300] sm:$0xff]  ;;  %v3900_v15 = vld [vmem:[%s8760_s3 + $0x348] sm:$0xff] }
  0x37   : > { %525 = vmatmul.f32.gmra.mxu2 %v4854_v61  ;;  %548 = vmatmul.f32.gmra.mxu3 %v4854_v61  ;;  %v683_v61 = vld [vmem:[%s8760_s3 + $0xe0] sm:$0xff]  ;;  %v3893_v3 = vld [vmem:[%s8760_s3 + $0x310] sm:$0xff]  ;;  %v3896_v19 = vld [vmem:[%s8760_s3 + $0x328] sm:$0xff] }
  0x38   : > { %597 = vmatpush.msrb.mxu0 %v3841_v20  ;;  %620 = vmatpush.msrb.mxu1 %v3842_v21  ;;  %v677_v7 = vld [vmem:[%s8760_s3 + $0xb0] sm:$0xff]  ;;  %v675_v10 = vld [vmem:[%s8760_s3 + $0xa0] sm:$0xff] }
  0x39   : > { %479 = vmatmul.f32.gmra.mxu0 %v456_v6  ;;  %502 = vmatmul.f32.gmra.mxu1 %v456_v6  ;;  %v3908_v6 = vld [vmem:[%s8760_s3 + $0x388] sm:$0xff]  ;;  %v673_v12 = vld [vmem:[%s8760_s3 + $0x90] sm:$0xff]  ;;  %v671_v14 = vld [vmem:[%s8760_s3 + $0x80] sm:$0xff] }
  0x3a   : > { %598 = vmatpush.msrb.mxu0 %v3839_v23  ;;  %621 = vmatpush.msrb.mxu1 %v3840_v24  ;;  %v669_v16 = vld [vmem:[%s8760_s3 + $0x70] sm:$0xff]  ;;  %v667_v18 = vld [vmem:[%s8760_s3 + $0x60] sm:$0xff]  ;;  %v3894_v23 = vld [vmem:[%s8760_s3 + $0x318] sm:$0xff] }
  0x3b   : > { %795 = vmatpush.msrb.mxu2 %v3881_v27  ;;  %820 = vmatpush.msrb.mxu3 %v3909_v30  ;;  %v3861_v20 = vld [vmem:[%s8760_s3 + $0x210] sm:$0xff]  ;;  %v3859_v24 = vld [vmem:[%s8760_s3 + $0x200] sm:$0xff]  ;;  %v3886_v27 = vld [vmem:[%s8760_s3 + $0x2d8] sm:$0xff] }
  0x3c   : > { %599 = vmatpush.msrb.mxu0 %v3837_v25  ;;  %622 = vmatpush.msrb.mxu1 %v3838_v26  ;;  %v3889_v21 = vld [vmem:[%s8760_s3 + $0x2f0] sm:$0xff]  ;;  %v3887_v25 = vld [vmem:[%s8760_s3 + $0x2e0] sm:$0xff] }
  0x3d   : > { %796 = vmatpush.msrb.mxu2 %v3879_v31  ;;  %821 = vmatpush.msrb.mxu3 %v3907_v34  ;;  %v665_v22 = vld [vmem:[%s8760_s3 + $0x50] sm:$0xff]  ;;  %v663_v26 = vld [vmem:[%s8760_s3 + $0x40] sm:$0xff]  ;;  %v3884_v31 = vld [vmem:[%s8760_s3 + $0x2c8] sm:$0xff] }
  0x3e   : > { %600 = vmatpush.msrb.mxu0 %v3835_v28  ;;  %623 = vmatpush.msrb.mxu1 %v3836_v29  ;;  %v3892_v28 = vld [vmem:[%s8760_s3 + $0x308] sm:$0xff]  ;;  %v3857_v29 = vld [vmem:[%s8760_s3 + $0x1f0] sm:$0xff]  ;;  %v659_v34 = vld [vmem:[%s8760_s3 + $0x20] sm:$0xff] }
  0x3f   : > { %797 = vmatpush.msrb.mxu2 %v3877_v35  ;;  %822 = vmatpush.msrb.mxu3 %v3905_v38  ;;  %v661_v30 = vld [vmem:[%s8760_s3 + $0x30] sm:$0xff]  ;;  %v3882_v35 = vld [vmem:[%s8760_s3 + $0x2b8] sm:$0xff] }
  0x40   : > { %601 = vmatpush.msrb.mxu0 %v3833_v32  ;;  %624 = vmatpush.msrb.mxu1 %v3834_v33  ;;  %v3890_v32 = vld [vmem:[%s8760_s3 + $0x2f8] sm:$0xff]  ;;  %v3855_v33 = vld [vmem:[%s8760_s3 + $0x1e0] sm:$0xff]  ;;  %v657_v38 = vld [vmem:[%s8760_s3 + $0x10] sm:$0xff] }
  0x41   : > { %798 = vmatpush.msrb.mxu2 %v3875_v39  ;;  %823 = vmatpush.msrb.mxu3 %v3903_v42  ;;  %v686_v39 = vld [vmem:[%s8760_s3 + $0xf8] sm:$0xff]  ;;  %v655_v42 = vld [vmem:[%s8760_s3] sm:$0xff]  ;;  %v3981_v46 = vld [vmem:[%s8760_s3 + $0x590] sm:$0xff] }
  0x42   : > { %602 = vmatpush.msrb.mxu0 %v3831_v36  ;;  %625 = vmatpush.msrb.mxu1 %v3832_v37  ;;  %v3888_v36 = vld [vmem:[%s8760_s3 + $0x2e8] sm:$0xff]  ;;  %v713_v37 = vld [vmem:[%s8760_s3 + $0x1d0] sm:$0xff] }
  0x43   : > { %799 = vmatpush.msrb.mxu2 %v3873_v43  ;;  %824 = vmatpush.msrb.mxu3 %v3901_v48  ;;  %v684_v43 = vld [vmem:[%s8760_s3 + $0xe8] sm:$0xff] }
  0x44   : > { %603 = vmatpush.msrb.mxu0 %v3829_v40  ;;  %626 = vmatpush.msrb.mxu1 %v3830_v41  ;;  %v3880_v40 = vld [vmem:[%s8760_s3 + $0x2a8] sm:$0xff]  ;;  %v711_v41 = vld [vmem:[%s8760_s3 + $0x1c0] sm:$0xff] }
  0x45   : > { %800 = vmatpush.msrb.mxu2 %v3871_v49  ;;  %825 = vmatpush.msrb.mxu3 %v3899_v52  ;;  %v3876_v48 = vld [vmem:[%s8760_s3 + $0x288] sm:$0xff]  ;;  %v707_v49 = vld [vmem:[%s8760_s3 + $0x1a0] sm:$0xff]  ;;  %v3874_v52 = vld [vmem:[%s8760_s3 + $0x278] sm:$0xff] }
  0x46   : > { %604 = vmatpush.msrb.mxu0 %v3827_v44  ;;  %627 = vmatpush.msrb.mxu1 %v3828_v45  ;;  %v3878_v44 = vld [vmem:[%s8760_s3 + $0x298] sm:$0xff]  ;;  %v709_v45 = vld [vmem:[%s8760_s3 + $0x1b0] sm:$0xff] }
  0x47   : > { %801 = vmatpush.msrb.mxu2 %v3869_v53  ;;  %826 = vmatpush.msrb.mxu3 %v3897_v59  ;;  %v705_v53 = vld [vmem:[%s8760_s3 + $0x190] sm:$0xff]  ;;  %v676_v59 = vld [vmem:[%s8760_s3 + $0xa8] sm:$0xff] }
  0x48   : > { %605 = vmatpush.msrb.mxu0 %v3825_v50  ;;  %628 = vmatpush.msrb.mxu1 %v3826_v51  ;;  %v3979_v50 = vld [vmem:[%s8760_s3 + $0x580] sm:$0xff]  ;;  %v680_v51 = vld [vmem:[%s8760_s3 + $0xc8] sm:$0xff] }
  0x49   : > { %802 = vmatpush.msrb.mxu2 %v3867_v60  ;;  %827 = vmatpush.msrb.mxu3 %v3895_v63  ;;  %v3870_v60 = vld [vmem:[%s8760_s3 + $0x258] sm:$0xff] }
  0x4a   : > { %606 = vmatpush.msrb.mxu0 %v3823_v54  ;;  %629 = vmatpush.msrb.mxu1 %v3824_v55  ;;  %v3977_v54 = vld [vmem:[%s8760_s3 + $0x570] sm:$0xff]  ;;  %v678_v55 = vld [vmem:[%s8760_s3 + $0xb8] sm:$0xff] }
  0x4b   : > { %607 = vmatmul.f32.vlgmr.msrb.gmra.mxu0 %v588_v56  ;;  %630 = vmatmul.f32.vlgmr.msrb.gmra.mxu1 %v588_v56  ;;  %v3872_v56 = vld [vmem:[%s8760_s3 + $0x268] sm:$0xff]  ;;  %v674_v63 = vld [vmem:[%s8760_s3 + $0x98] sm:$0xff] }
  0x4c   : > { %889 = vmatpush.msra.mxu1 %v685_v57  ;;  %864 = vmatpush.msra.mxu0 %v3914_v58  ;;  %v703_v57 = vld [vmem:[%s8760_s3 + $0x180] sm:$0xff] }
  0x4d   : > { %803 = vmatpush.msrb.mxu2 %v3865_v0  ;;  %828 = vmatpush.msrb.mxu3 %v3893_v3  ;;  %v3975_v58 = vld [vmem:[%s8760_s3 + $0x560] sm:$0xff]  ;;  %v3868_v0 = vld [vmem:[%s8760_s3 + $0x248] sm:$0xff] }
  0x4e   : > { %890 = vmatpush.msra.mxu1 %v683_v61  ;;  %865 = vmatpush.msra.mxu0 %v3912_v62  ;;  %v701_v61 = vld [vmem:[%s8760_s3 + $0x170] sm:$0xff]  ;;  %v672_v3 = vld [vmem:[%s8760_s3 + $0x88] sm:$0xff] }
  0x4f   : > { %804 = vmatpush.msrb.mxu2 %v3863_v4  ;;  %829 = vmatpush.msrb.mxu3 %v3891_v9  ;;  %v3973_v62 = vld [vmem:[%s8760_s3 + $0x550] sm:$0xff]  ;;  %v3866_v4 = vld [vmem:[%s8760_s3 + $0x238] sm:$0xff]  ;;  %v695_v9 = vld [vmem:[%s8760_s3 + $0x140] sm:$0xff] }
  0x50   : > { %891 = vmatpush.msra.mxu1 %v681_v1  ;;  %866 = vmatpush.msra.mxu0 %v3910_v2  ;;  %v699_v1 = vld [vmem:[%s8760_s3 + $0x160] sm:$0xff] }
  0x51   : > { %805 = vmatpush.msrb.mxu2 %v3861_v20  ;;  %830 = vmatpush.msrb.mxu3 %v3889_v21  ;;  %v3971_v2 = vld [vmem:[%s8760_s3 + $0x540] sm:$0xff]  ;;  %v664_v21 = vld [vmem:[%s8760_s3 + $0x48] sm:$0xff] }
  0x52   : > { %892 = vmatpush.msra.mxu1 %v679_v5  ;;  %867 = vmatpush.msra.mxu0 %v3908_v6  ;;  %v697_v5 = vld [vmem:[%s8760_s3 + $0x150] sm:$0xff]  ;;  %v3963_v20 = vld [vmem:[%s8760_s3 + $0x500] sm:$0xff] }
  0x53   : > { %610 = vmatmul.f32.gmra.mxu0 %v587_v47  ;;  %633 = vmatmul.f32.gmra.mxu1 %v587_v47  ;;  %v682_v47 = vld [vmem:[%s8760_s3 + $0xd8] sm:$0xff]  ;;  %v3969_v6 = vld [vmem:[%s8760_s3 + $0x530] sm:$0xff] }
  0x54   : > { %893 = vmatpush.msra.mxu1 %v677_v7  ;;  %868 = vmatpush.msra.mxu0 %v3906_v8  ;;  %v670_v7 = vld [vmem:[%s8760_s3 + $0x78] sm:$0xff]  ;;  %v3864_v8 = vld [vmem:[%s8760_s3 + $0x228] sm:$0xff] }
  0x55   : > { %806 = vmatpush.msrb.mxu2 %v3859_v24  ;;  %831 = vmatpush.msrb.mxu3 %v3887_v25  ;;  %v3961_v24 = vld [vmem:[%s8760_s3 + $0x4f0] sm:$0xff]  ;;  %v662_v25 = vld [vmem:[%s8760_s3 + $0x38] sm:$0xff] }
  0x56   : > { %894 = vmatpush.msra.mxu1 %v675_v10  ;;  %869 = vmatpush.msra.mxu0 %v3904_v11  ;;  %v3967_v10 = vld [vmem:[%s8760_s3 + $0x520] sm:$0xff]  ;;  %v668_v11 = vld [vmem:[%s8760_s3 + $0x68] sm:$0xff] }
  0x57   : > { %839 = vmatpush.msra.mxu3 %v3886_v27  ;;  %807 = vmatpush.msrb.mxu2 %v3857_v29  ;;  %v687_v27 = vld [vmem:[%s8760_s3 + $0x100] sm:$0xff]  ;;  %v660_v29 = vld [vmem:[%s8760_s3 + $0x28] sm:$0xff] }
  0x58   : > { %895 = vmatpush.msra.mxu1 %v673_v12  ;;  %870 = vmatpush.msra.mxu0 %v3902_v13  ;;  %v3862_v12 = vld [vmem:[%s8760_s3 + $0x218] sm:$0xff]  ;;  %v693_v13 = vld [vmem:[%s8760_s3 + $0x130] sm:$0xff] }
  0x59   : > { %840 = vmatpush.msra.mxu3 %v3884_v31  ;;  %808 = vmatpush.msrb.mxu2 %v3855_v33  ;;  %v658_v31 = vld [vmem:[%s8760_s3 + $0x18] sm:$0xff] }
  0x5a   : > { %896 = vmatpush.msra.mxu1 %v671_v14  ;;  %871 = vmatpush.msra.mxu0 %v3900_v15  ;;  %v3965_v14 = vld [vmem:[%s8760_s3 + $0x510] sm:$0xff]  ;;  %v666_v15 = vld [vmem:[%s8760_s3 + $0x58] sm:$0xff] }
  0x5b   : > { %841 = vmatpush.msra.mxu3 %v3882_v35  ;;  %914 = vmatpush.msra.mxu2 %v713_v37  ;;  %v656_v35 = vld [vmem:[%s8760_s3 + $0x8] sm:$0xff] }
  0x5c   : > { %897 = vmatpush.msra.mxu1 %v669_v16  ;;  %872 = vmatpush.msra.mxu0 %v3898_v17 }
  0x5d   : > { %842 = vmatpush.msra.mxu3 %v3880_v40  ;;  %915 = vmatpush.msra.mxu2 %v711_v41 }
  0x5e   : > { %898 = vmatpush.msra.mxu1 %v667_v18  ;;  %873 = vmatpush.msra.mxu0 %v3896_v19  ;;  %v3860_v18 = vld [vmem:[%s8760_s3 + $0x208] sm:$0xff]  ;;  %v691_v19 = vld [vmem:[%s8760_s3 + $0x120] sm:$0xff] }
  0x5f   : > { %843 = vmatpush.msra.mxu3 %v3878_v44  ;;  %916 = vmatpush.msra.mxu2 %v709_v45 }
  0x60   : > { %899 = vmatpush.msra.mxu1 %v665_v22  ;;  %874 = vmatpush.msra.mxu0 %v3894_v23  ;;  %v3858_v22 = vld [vmem:[%s8760_s3 + $0x1f8] sm:$0xff]  ;;  %v689_v23 = vld [vmem:[%s8760_s3 + $0x110] sm:$0xff] }
  0x61   : > { %844 = vmatpush.msra.mxu3 %v3876_v48  ;;  %917 = vmatpush.msra.mxu2 %v707_v49 }
  0x62   : > { %900 = vmatpush.msra.mxu1 %v663_v26  ;;  %875 = vmatpush.msra.mxu0 %v3892_v28  ;;  %v3856_v26 = vld [vmem:[%s8760_s3 + $0x1e8] sm:$0xff]  ;;  %v3959_v28 = vld [vmem:[%s8760_s3 + $0x4e0] sm:$0xff] }
  0x63   : > { %845 = vmatpush.msra.mxu3 %v3874_v52  ;;  %918 = vmatpush.msra.mxu2 %v705_v53 }
  0x64   : > { %901 = vmatpush.msra.mxu1 %v661_v30  ;;  %876 = vmatpush.msra.mxu0 %v3890_v32  ;;  %v3957_v30 = vld [vmem:[%s8760_s3 + $0x4d0] sm:$0xff] }
  0x65   : > { %846 = vmatpush.msra.mxu3 %v3872_v56  ;;  %919 = vmatpush.msra.mxu2 %v703_v57 }
  0x66   : > { %902 = vmatpush.msra.mxu1 %v659_v34  ;;  %877 = vmatpush.msra.mxu0 %v3888_v36  ;;  %v3955_v34 = vld [vmem:[%s8760_s3 + $0x4c0] sm:$0xff] }
  0x67   : > { %847 = vmatpush.msra.mxu3 %v3870_v60  ;;  %920 = vmatpush.msra.mxu2 %v701_v61  ;;  %v1190_v60 = vld [vmem:[%s8762_s5 + $0xd0] sm:$0xff] }
  0x68   : > { %903 = vmatpush.msra.mxu1 %v657_v38  ;;  %935 = vmatpush.msrb.mxu0 %v686_v39  ;;  %v641_v38 = vld [vmem:[%s8759_s2] sm:$0x3] }
  0x69   : > { %848 = vmatpush.msra.mxu3 %v3868_v0  ;;  %921 = vmatpush.msra.mxu2 %v699_v1  ;;  %v643_v40 = vperm.slane %v641_v38, 0  ;;  %v1188_v0 = vld [vmem:[%s8762_s5 + $0xc0] sm:$0xff] }
  0x6a   : > { %904 = vmatpush.msra.mxu1 %v655_v42  ;;  %936 = vmatpush.msrb.mxu0 %v684_v43 }
  0x6b   : > { %849 = vmatpush.msra.mxu3 %v3866_v4  ;;  %922 = vmatpush.msra.mxu2 %v697_v5 }
  0x6c   : > { %1079 = vmatpush.msrb.mxu1 %v3981_v46  ;;  %937 = vmatpush.msrb.mxu0 %v682_v47  ;;  %v644_v47 = vperm.slane %v641_v38, 1  ;;  %v3939_v38 = vld [vmem:[%s8760_s3 + $0x440] sm:$0xff] }
  0x6d   : > { %850 = vmatpush.msra.mxu3 %v3864_v8  ;;  %923 = vmatpush.msra.mxu2 %v695_v9  ;;  %v714_v8 = vld [vmem:[%s8760_s3 + $0x1d8] sm:$0xff] }
  0x6e   : > { %1080 = vmatpush.msrb.mxu1 %v3979_v50  ;;  %938 = vmatpush.msrb.mxu0 %v680_v51  ;;  %v1194_v51 = vld [vmem:[%s8762_s5 + $0xf0] sm:$0xff] }
  0x6f   : > { %851 = vmatpush.msra.mxu3 %v3862_v12  ;;  %924 = vmatpush.msra.mxu2 %v693_v13  ;;  %v3982_v12 = vld [vmem:[%s8760_s3 + $0x598] sm:$0xff]  ;;  %v712_v13 = vld [vmem:[%s8760_s3 + $0x1c8] sm:$0xff] }
  0x70   : > { %1081 = vmatpush.msrb.mxu1 %v3977_v54  ;;  %939 = vmatpush.msrb.mxu0 %v678_v55  ;;  %v1192_v55 = vld [vmem:[%s8762_s5 + $0xe0] sm:$0xff] }
  0x71   : > { %852 = vmatpush.msra.mxu3 %v3860_v18  ;;  %925 = vmatpush.msra.mxu2 %v691_v19  ;;  %v710_v18 = vld [vmem:[%s8760_s3 + $0x1b8] sm:$0xff] }
  0x72   : > { %1082 = vmatpush.msrb.mxu1 %v3975_v58  ;;  %940 = vmatpush.msrb.mxu0 %v676_v59 }
  0x73   : > { %853 = vmatpush.msra.mxu3 %v3858_v22  ;;  %926 = vmatpush.msra.mxu2 %v689_v23  ;;  %v708_v23 = vld [vmem:[%s8760_s3 + $0x1a8] sm:$0xff] }
  0x74   : > { %1083 = vmatpush.msrb.mxu1 %v3973_v62  ;;  %941 = vmatpush.msrb.mxu0 %v674_v63 }
  0x75   : > { %854 = vmatpush.msra.mxu3 %v3856_v26  ;;  %927 = vmatpush.msra.mxu2 %v687_v27  ;;  %v706_v26 = vld [vmem:[%s8760_s3 + $0x198] sm:$0xff]  ;;  %v3945_v27 = vld [vmem:[%s8760_s3 + $0x470] sm:$0xff] }
  0x76   : > { %1084 = vmatpush.msrb.mxu1 %v3971_v2  ;;  %942 = vmatpush.msrb.mxu0 %v672_v3  ;;  %v1186_v3 = vld [vmem:[%s8762_s5 + $0xb0] sm:$0xff] }
  0x78   : > { %1085 = vmatpush.msrb.mxu1 %v3969_v6  ;;  %943 = vmatpush.msrb.mxu0 %v670_v7 }
  0x7a   : > { %1086 = vmatpush.msrb.mxu1 %v3967_v10  ;;  %944 = vmatpush.msrb.mxu0 %v668_v11  ;;  %v3953_v11 = vld [vmem:[%s8760_s3 + $0x4b0] sm:$0xff] }
  0x7c   : > { %1087 = vmatpush.msrb.mxu1 %v3965_v14  ;;  %945 = vmatpush.msrb.mxu0 %v666_v15  ;;  %v1184_v15 = vld [vmem:[%s8762_s5 + $0xa0] sm:$0xff] }
  0x7e   : > { %1088 = vmatpush.msrb.mxu1 %v3963_v20  ;;  %946 = vmatpush.msrb.mxu0 %v664_v21  ;;  %v3949_v20 = vld [vmem:[%s8760_s3 + $0x490] sm:$0xff]  ;;  %v3978_v21 = vld [vmem:[%s8760_s3 + $0x578] sm:$0xff] }
  0x80   : > { %1089 = vmatpush.msrb.mxu1 %v3961_v24  ;;  %947 = vmatpush.msrb.mxu0 %v662_v25  ;;  %v1182_v24 = vld [vmem:[%s8762_s5 + $0x90] sm:$0xff]  ;;  %v3947_v25 = vld [vmem:[%s8760_s3 + $0x480] sm:$0xff] }
  0x82   : > { %1090 = vmatpush.msrb.mxu1 %v3959_v28  ;;  %948 = vmatpush.msrb.mxu0 %v660_v29  ;;  %v3976_v28 = vld [vmem:[%s8760_s3 + $0x568] sm:$0xff]  ;;  %v1180_v29 = vld [vmem:[%s8762_s5 + $0x80] sm:$0xff] }
  0x84   : > { %1091 = vmatpush.msrb.mxu1 %v3957_v30  ;;  %949 = vmatpush.msrb.mxu0 %v658_v31  ;;  %v704_v30 = vld [vmem:[%s8760_s3 + $0x188] sm:$0xff]  ;;  %v3943_v31 = vld [vmem:[%s8760_s3 + $0x460] sm:$0xff] }
  0x86   : > { %1092 = vmatpush.msrb.mxu1 %v3955_v34  ;;  %950 = vmatpush.msrb.mxu0 %v656_v35  ;;  %v3941_v34 = vld [vmem:[%s8760_s3 + $0x450] sm:$0xff]  ;;  %v3972_v35 = vld [vmem:[%s8760_s3 + $0x548] sm:$0xff] }
  0xae   : > { %v477_v16 = vpop.f32.mrf.mxu0  ;;  %v500_v17 = vpop.f32.mrf.mxu1 }
  0xb2   : > { %v523_v36 = vpop.f32.mrf.mxu2  ;;  %v546_v37 = vpop.f32.mrf.mxu3 }
  0xb3   : > { %v524_v39 = vadd.f32 %v523_v36, %v477_v16  ;;  %v547_v43 = vadd.f32 %v546_v37, %v500_v17  ;;  %v3951_v16 = vld [vmem:[%s8760_s3 + $0x4a0] sm:$0xff]  ;;  %v3980_v17 = vld [vmem:[%s8760_s3 + $0x588] sm:$0xff]  ;;  %v1178_v36 = vld [vmem:[%s8762_s5 + $0x70] sm:$0xff] }
  0xb4   : > { %v700_v37 = vld [vmem:[%s8760_s3 + $0x168] sm:$0xff] }
  0xb6   : > { %v480_v32 = vpop.f32.mrf.mxu0  ;;  %v503_v33 = vpop.f32.mrf.mxu1 }
  0xba   : > { %v526_v48 = vpop.f32.mrf.mxu2  ;;  %v549_v49 = vpop.f32.mrf.mxu3 }
  0xbb   : > { %v527_v52 = vadd.f32 %v526_v48, %v480_v32  ;;  %v550_v53 = vadd.f32 %v549_v49, %v503_v33  ;;  %v3974_v32 = vld [vmem:[%s8760_s3 + $0x558] sm:$0xff]  ;;  %v3933_v48 = vld [vmem:[%s8760_s3 + $0x410] sm:$0xff] }
  0xbc   : > { %v702_v33 = vld [vmem:[%s8760_s3 + $0x178] sm:$0xff] }
  0xbd   : > { %v3966_v49 = vld [vmem:[%s8760_s3 + $0x518] sm:$0xff] }
  0xc8   : > { %v608_v41 = vpop.f32.mrf.mxu0  ;;  %v631_v42 = vpop.f32.mrf.mxu1 }
  0xc9   : > { %v637_v44 = vadd.f32 %v608_v41, %v524_v39  ;;  %v638_v46 = vadd.f32 %v631_v42, %v547_v43  ;;  %v698_v39 = vld [vmem:[%s8760_s3 + $0x158] sm:$0xff]  ;;  %v696_v42 = vld [vmem:[%s8760_s3 + $0x148] sm:$0xff]  ;;  %v1176_v43 = vld [vmem:[%s8762_s5 + $0x60] sm:$0xff] }
  0xca   : > { %v3970_v41 = vld [vmem:[%s8760_s3 + $0x538] sm:$0xff] }
  0xcb   : > { %v647_v45 = vadd.f32 %v643_v40, %v637_v44  ;;  %v648_v54 = vadd.f32 %v644_v47, %v638_v46  ;;  %v3935_v44 = vld [vmem:[%s8760_s3 + $0x420] sm:$0xff]  ;;  %v694_v46 = vld [vmem:[%s8760_s3 + $0x138] sm:$0xff] }
  0xcd   : > { %v5337_v50 = vmax.f32 %v647_v45, 0.0  ;;  %v5349_v61 = vmax.f32 %v648_v54, 0.0  ;;  %v3968_v45 = vld [vmem:[%s8760_s3 + $0x528] sm:$0xff] }
  0xce   : > { %v3964_v54 = vld [vmem:[%s8760_s3 + $0x508] sm:$0xff] }
  0xcf   : > { %905 = vmatmul.f32.vlgmr.msra.gmra.mxu1 %v5337_v50  ;;  %v780_v4 = vrot.slane %v5337_v50, 1  ;;  %v783_v6 = vrot.slane %v5349_v61, 1  ;;  %v1045_v19 = vrot.slane %v5349_v61, 2 }
  0xd0   : > { %v611_v56 = vpop.f32.mrf.mxu0  ;;  %v634_v57 = vpop.f32.mrf.mxu1  ;;  %1196 = vmatpush.msra.mxu1 %v1194_v51  ;;  %v692_v51 = vld [vmem:[%s8760_s3 + $0x128] sm:$0xff] }
  0xd1   : > { %v639_v58 = vadd.f32 %v611_v56, %v527_v52  ;;  %v640_v59 = vadd.f32 %v634_v57, %v550_v53  ;;  %v1172_v52 = vld [vmem:[%s8762_s5 + $0x40] sm:$0xff]  ;;  %v3929_v56 = vld [vmem:[%s8760_s3 + $0x3f0] sm:$0xff]  ;;  %v3962_v57 = vld [vmem:[%s8760_s3 + $0x4f8] sm:$0xff] }
  0xd2   : > { %1197 = vmatpush.msra.mxu1 %v1192_v55  ;;  %v3931_v53 = vld [vmem:[%s8760_s3 + $0x400] sm:$0xff]  ;;  %v690_v55 = vld [vmem:[%s8760_s3 + $0x118] sm:$0xff] }
  0xd3   : > { %v649_v62 = vadd.f32 %v643_v40, %v639_v58  ;;  %v650_v63 = vadd.f32 %v644_v47, %v640_v59  ;;  %v3937_v40 = vld [vmem:[%s8760_s3 + $0x430] sm:$0xff]  ;;  %v688_v58 = vld [vmem:[%s8760_s3 + $0x108] sm:$0xff] }
  0xd4   : > { %1198 = vmatpush.msra.mxu1 %v1190_v60  ;;  %v1174_v47 = vld [vmem:[%s8762_s5 + $0x50] sm:$0xff]  ;;  %v3927_v60 = vld [vmem:[%s8760_s3 + $0x3e0] sm:$0xff] }
  0xd5   : > { %v5354_v1 = vmax.f32 %v649_v62, 0.0  ;;  %v5356_v2 = vmax.f32 %v650_v63, 0.0  ;;  %v1170_v59 = vld [vmem:[%s8762_s5 + $0x30] sm:$0xff]  ;;  %v3954_v62 = vld [vmem:[%s8760_s3 + $0x4b8] sm:$0xff]  ;;  %v3960_v63 = vld [vmem:[%s8760_s3 + $0x4e8] sm:$0xff] }
  0xd6   : > { %1199 = vmatpush.msra.mxu1 %v1188_v0  ;;  %v1168_v0 = vld [vmem:[%s8762_s5 + $0x20] sm:$0xff] }
  0xd7   : > { %908 = vmatmul.f32.gmra.mxu1 %v5354_v1  ;;  %v5364_v5 = vrot.slane %v5354_v1, 1  ;;  %v784_v7 = vrot.slane %v5356_v2, 1  ;;  %v5388_v14 = vrot.slane %v5356_v2, 2 }
  0xd8   : > { %1200 = vmatpush.msra.mxu1 %v1186_v3  ;;  %v3925_v3 = vld [vmem:[%s8760_s3 + $0x3d0] sm:$0xff] }
  0xd9   : > { %v5373_v9 = vsel %vm454_vm0, %v780_v4, %v5364_v5  ;;  %v785_v10 = vsel %vm454_vm0, %v783_v6, %v784_v7  ;;  %v5412_v22 = vsel %vm585_vm1, %v1045_v19, %v5388_v14  ;;  %v3952_v4 = vld [vmem:[%s8760_s3 + $0x4a8] sm:$0xff]  ;;  %v1166_v6 = vld [vmem:[%s8762_s5 + $0x10] sm:$0xff] }
  0xda   : > { %809 = vmatmul.f32.vlgmr.msrb.gmra.mxu2 %v5373_v9  ;;  %3915 = vmatmul.msk.f32.vlgmr.msrb.gmra.mxu3 %vm788_vm2, %v785_v10  ;;  %v1189_v19 = vld [vmem:[%s8762_s5 + $0xc8] sm:$0xff] }
  0xdb   : > { %3917 = vmatmul.msk.f32.vlgmr.msra.gmra.mxu0 %vm788_vm2, %v785_v10  ;;  %960 = vmatpush.msrb.mxu2 %v714_v8  ;;  %v3950_v8 = vld [vmem:[%s8760_s3 + $0x498] sm:$0xff]  ;;  %v3956_v10 = vld [vmem:[%s8760_s3 + $0x4c8] sm:$0xff] }
  0xdc   : > { %1054 = vmatpush.msrb.mxu3 %v3953_v11  ;;  %1125 = vmatpush.msra.mxu0 %v3982_v12  ;;  %v1195_v11 = vld [vmem:[%s8762_s5 + $0xf8] sm:$0xff]  ;;  %v1042_v12 = vrot.slane %v5337_v50, 2 }
  0xdd   : > { %961 = vmatpush.msrb.mxu2 %v712_v13  ;;  %1201 = vmatpush.msra.mxu1 %v1184_v15  ;;  %v1193_v15 = vld [vmem:[%s8762_s5 + $0xe8] sm:$0xff] }
  0xde   : > { %1055 = vmatpush.msrb.mxu3 %v3951_v16  ;;  %1126 = vmatpush.msra.mxu0 %v3980_v17  ;;  %v3946_v16 = vld [vmem:[%s8760_s3 + $0x478] sm:$0xff] }
  0xdf   : > { %962 = vmatpush.msrb.mxu2 %v710_v18  ;;  %3983 = vmatmul.msk.f32.vlgmr.msrb.gmra.mxu1 %vm788_vm2, %v5412_v22  ;;  %v1191_v17 = vld [vmem:[%s8762_s5 + $0xd8] sm:$0xff]  ;;  %v4574_v18 = vld [vmem:[%s4845_s22] sm:$0xff] }
  0xe0   : > { %1056 = vmatpush.msrb.mxu3 %v3949_v20  ;;  %1127 = vmatpush.msra.mxu0 %v3978_v21  ;;  %v3942_v20 = vld [vmem:[%s8760_s3 + $0x458] sm:$0xff] }
  0xe1   : > { %963 = vmatpush.msrb.mxu2 %v708_v23  ;;  %1202 = vmatpush.msra.mxu1 %v1182_v24  ;;  %v1187_v21 = vld [vmem:[%s8762_s5 + $0xb8] sm:$0xff]  ;;  %v1185_v23 = vld [vmem:[%s8762_s5 + $0xa8] sm:$0xff] }
  0xe2   : > { %1057 = vmatpush.msrb.mxu3 %v3947_v25  ;;  %812 = vmatmul.f32.gmra.mxu2 %v5364_v5  ;;  %v3938_v24 = vld [vmem:[%s8760_s3 + $0x438] sm:$0xff] }
  0xe3   : > { %3916 = vmatmul.msk.f32.gmra.mxu3 %vm788_vm2, %v784_v7  ;;  %3918 = vmatmul.msk.f32.gmra.mxu0 %vm788_vm2, %v784_v7  ;;  %v3923_v7 = vld [vmem:[%s8760_s3 + $0x3c0] sm:$0xff]  ;;  %v1183_v25 = vld [vmem:[%s8762_s5 + $0x98] sm:$0xff] }
  0xe4   : > { %964 = vmatpush.msrb.mxu2 %v706_v26  ;;  %1058 = vmatpush.msrb.mxu3 %v3945_v27  ;;  %v4575_v26 = vld [vmem:[%s4845_s22 + $0x8] sm:$0xff]  ;;  %v3934_v27 = vld [vmem:[%s8760_s3 + $0x418] sm:$0xff] }
  0xe5   : > { %1128 = vmatpush.msra.mxu0 %v3976_v28  ;;  %1203 = vmatpush.msra.mxu1 %v1180_v29  ;;  %v1179_v28 = vld [vmem:[%s8762_s5 + $0x78] sm:$0xff]  ;;  %v3932_v29 = vld [vmem:[%s8760_s3 + $0x408] sm:$0xff] }
  0xe6   : > { %965 = vmatpush.msrb.mxu2 %v704_v30  ;;  %1059 = vmatpush.msrb.mxu3 %v3943_v31  ;;  %v1177_v30 = vld [vmem:[%s8762_s5 + $0x68] sm:$0xff]  ;;  %v3930_v31 = vld [vmem:[%s8760_s3 + $0x3f8] sm:$0xff] }
  0xe7   : > { %3984 = vmatmul.msk.f32.gmra.mxu1 %vm788_vm2, %v5388_v14  ;;  %1129 = vmatpush.msra.mxu0 %v3974_v32  ;;  %v1175_v32 = vld [vmem:[%s8762_s5 + $0x58] sm:$0xff] }
  0xe8   : > { %966 = vmatpush.msrb.mxu2 %v702_v33  ;;  %1060 = vmatpush.msrb.mxu3 %v3941_v34  ;;  %v3928_v33 = vld [vmem:[%s8760_s3 + $0x3e8] sm:$0xff] }
  0xe9   : > { %1130 = vmatpush.msra.mxu0 %v3972_v35  ;;  %1204 = vmatpush.msra.mxu1 %v1178_v36  ;;  %v1173_v34 = vld [vmem:[%s8762_s5 + $0x48] sm:$0xff]  ;;  %v3926_v35 = vld [vmem:[%s8760_s3 + $0x3d8] sm:$0xff] }
  0xea   : > { %967 = vmatpush.msrb.mxu2 %v700_v37  ;;  %1061 = vmatpush.msrb.mxu3 %v3939_v38  ;;  %v1171_v36 = vld [vmem:[%s8762_s5 + $0x38] sm:$0xff]  ;;  %v3924_v37 = vld [vmem:[%s8760_s3 + $0x3c8] sm:$0xff] }
  0xeb   : > { %855 = vmatmul.f32.vlgmr.msra.gmra.mxu3 %v5373_v9  ;;  %3919 = vmatmul.msk.f32.vlgmr.msra.gmra.mxu2 %vm788_vm2, %v5349_v61  ;;  %v5568_v9 = vrot.slane %v5354_v1, 2  ;;  %v1169_v38 = vld [vmem:[%s8762_s5 + $0x28] sm:$0xff] }
  0xec   : > { %951 = vmatmul.f32.vlgmr.msrb.gmra.mxu0 %v5337_v50  ;;  %968 = vmatpush.msrb.mxu2 %v698_v39  ;;  %v1164_v50 = vld [vmem:[%s8762_s5] sm:$0xff]  ;;  %v1167_v39 = vld [vmem:[%s8762_s5 + $0x18] sm:$0xff] }
  0xed   : > { %1062 = vmatpush.msrb.mxu3 %v3937_v40  ;;  %1131 = vmatpush.msra.mxu0 %v3970_v41  ;;  %v5582_v13 = vsel %vm585_vm1, %v1042_v12, %v5568_v9  ;;  %v1165_v40 = vld [vmem:[%s8762_s5 + $0x8] sm:$0xff]  ;;  %v4047_v41 = vld [vmem:[%s8763_s6 + $0x560] sm:$0xff]  ;;  %v4046_v12 = vld [vmem:[%s8763_s6 + $0x558] sm:$0xff] }
  0xee   : > { %969 = vmatpush.msrb.mxu2 %v696_v42  ;;  %1205 = vmatpush.msra.mxu1 %v1176_v43  ;;  %v4043_v42 = vld [vmem:[%s8763_s6 + $0x540] sm:$0xff] }
  0xef   : > { %1063 = vmatpush.msrb.mxu3 %v3935_v44  ;;  %1132 = vmatpush.msra.mxu0 %v3968_v45  ;;  %v4039_v43 = vld [vmem:[%s8763_s6 + $0x520] sm:$0xff] }
  0xf0   : > { %970 = vmatpush.msrb.mxu2 %v694_v46  ;;  %1206 = vmatpush.msra.mxu1 %v1174_v47  ;;  %v4035_v44 = vld [vmem:[%s8763_s6 + $0x500] sm:$0xff]  ;;  %v4048_v46 = vld [vmem:[%s8763_s6 + $0x568] sm:$0xff] }
  0xf1   : > { %1064 = vmatpush.msrb.mxu3 %v3933_v48  ;;  %1133 = vmatpush.msra.mxu0 %v3966_v49  ;;  %v4031_v45 = vld [vmem:[%s8763_s6 + $0x4e0] sm:$0xff]  ;;  %v4044_v48 = vld [vmem:[%s8763_s6 + $0x548] sm:$0xff] }
  0xf2   : > { %971 = vmatpush.msrb.mxu2 %v692_v51  ;;  %1207 = vmatpush.msra.mxu1 %v1172_v52  ;;  %v4027_v47 = vld [vmem:[%s8763_s6 + $0x4c0] sm:$0xff]  ;;  %v4040_v51 = vld [vmem:[%s8763_s6 + $0x528] sm:$0xff] }
  0xf3   : > { %1065 = vmatpush.msrb.mxu3 %v3931_v53  ;;  %1134 = vmatpush.msra.mxu0 %v3964_v54  ;;  %v4023_v49 = vld [vmem:[%s8763_s6 + $0x4a0] sm:$0xff]  ;;  %v4036_v53 = vld [vmem:[%s8763_s6 + $0x508] sm:$0xff] }
  0xf4   : > { %858 = vmatmul.f32.gmra.mxu3 %v5364_v5  ;;  %3920 = vmatmul.msk.f32.gmra.mxu2 %vm788_vm2, %v5356_v2  ;;  %v3958_v5 = vld [vmem:[%s8760_s3 + $0x4d8] sm:$0xff]  ;;  %v4019_v52 = vld [vmem:[%s8763_s6 + $0x480] sm:$0xff] }
  0xf5   : > { %954 = vmatmul.f32.gmra.mxu0 %v5354_v1  ;;  %972 = vmatpush.msrb.mxu2 %v690_v55  ;;  %v3948_v1 = vld [vmem:[%s8760_s3 + $0x488] sm:$0xff]  ;;  %v4015_v54 = vld [vmem:[%s8763_s6 + $0x460] sm:$0xff] }
  0xf6   : > { %1066 = vmatpush.msrb.mxu3 %v3929_v56  ;;  %1135 = vmatpush.msra.mxu0 %v3962_v57  ;;  %v4032_v55 = vld [vmem:[%s8763_s6 + $0x4e8] sm:$0xff]  ;;  %v4011_v56 = vld [vmem:[%s8763_s6 + $0x440] sm:$0xff] }
  0xf7   : > { %973 = vmatpush.msrb.mxu2 %v688_v58  ;;  %1208 = vmatpush.msra.mxu1 %v1170_v59  ;;  %v4028_v57 = vld [vmem:[%s8763_s6 + $0x4c8] sm:$0xff]  ;;  %v4007_v58 = vld [vmem:[%s8763_s6 + $0x420] sm:$0xff] }
  0xf8   : > { %1067 = vmatpush.msrb.mxu3 %v3927_v60  ;;  %1136 = vmatpush.msra.mxu0 %v3960_v63  ;;  %v4024_v59 = vld [vmem:[%s8763_s6 + $0x4a8] sm:$0xff]  ;;  %v4003_v60 = vld [vmem:[%s8763_s6 + $0x400] sm:$0xff] }
  0xf9   : > { %1100 = vmatpush.msra.mxu2 %v3954_v62  ;;  %1209 = vmatpush.msra.mxu1 %v1168_v0  ;;  %v4020_v62 = vld [vmem:[%s8763_s6 + $0x488] sm:$0xff]  ;;  %v3999_v63 = vld [vmem:[%s8763_s6 + $0x3e0] sm:$0xff] }
  0xfa   : > { %1068 = vmatpush.msrb.mxu3 %v3925_v3  ;;  %1137 = vmatpush.msra.mxu0 %v3958_v5  ;;  %v4016_v0 = vld [vmem:[%s8763_s6 + $0x468] sm:$0xff]  ;;  %v3995_v3 = vld [vmem:[%s8763_s6 + $0x3c0] sm:$0xff] }
  0xfb   : > { %1101 = vmatpush.msra.mxu2 %v3952_v4  ;;  %1210 = vmatpush.msra.mxu1 %v1166_v6  ;;  %v4012_v4 = vld [vmem:[%s8763_s6 + $0x448] sm:$0xff]  ;;  %v3991_v5 = vld [vmem:[%s8763_s6 + $0x3a0] sm:$0xff] }
  0xfc   : > { %1069 = vmatpush.msrb.mxu3 %v3923_v7  ;;  %1138 = vmatpush.msra.mxu0 %v3956_v10  ;;  %v4008_v6 = vld [vmem:[%s8763_s6 + $0x428] sm:$0xff]  ;;  %v4050_v10 = vld [vmem:[%s8763_s6 + $0x578] sm:$0xff] }
  0xfd   : > { %1102 = vmatpush.msra.mxu2 %v3950_v8  ;;  %1070 = vmatmul.f32.vlgmr.msrb.gmra.mxu3 %v5582_v13  ;;  %v3987_v8 = vld [vmem:[%s8763_s6 + $0x380] sm:$0xff] }
  0xfe   : > { %1219 = vmatpush.msra.mxu3 %v1195_v11  ;;  %3921 = vmatmul.msk.f32.vlgmr.msrb.gmra.mxu2 %vm788_vm2, %v5349_v61  ;;  %v3944_v61 = vld [vmem:[%s8760_s3 + $0x468] sm:$0xff] }
  0xff   : > { %3985 = vmatmul.msk.f32.vlgmr.msra.gmra.mxu0 %vm788_vm2, %v5412_v22  ;;  %1103 = vmatpush.msra.mxu2 %v3948_v1  ;;  %v3940_v22 = vld [vmem:[%s8760_s3 + $0x448] sm:$0xff]  ;;  %v4095_v1 = vld [vmem:[%s8763_s6 + $0x6e0] sm:$0xff] }
 0x100   : > { %1220 = vmatpush.msra.mxu3 %v1193_v15  ;;  %1211 = vmatpush.msra.mxu1 %v1164_v50  ;;  %v4000_v11 = vld [vmem:[%s8763_s6 + $0x3e8] sm:$0xff]  ;;  %v4042_v50 = vld [vmem:[%s8763_s6 + $0x538] sm:$0xff] }
 0x101   : > { %1104 = vmatpush.msra.mxu2 %v3946_v16  ;;  %1212 = vmatmul.f32.vlgmr.msra.gmra.mxu1 %v4574_v18  ;;  %v4091_v16 = vld [vmem:[%s8763_s6 + $0x6c0] sm:$0xff] }
 0x102   : > { %1221 = vmatpush.msra.mxu3 %v1191_v17  ;;  %1506 = vmatpush.msrb.mxu0 %v4047_v41  ;;  %v3992_v17 = vld [vmem:[%s8763_s6 + $0x3a8] sm:$0xff] }
 0x103   : > { %1105 = vmatpush.msra.mxu2 %v3944_v61  ;;  %1552 = vmatpush.msrb.mxu1 %v4048_v46  ;;  %v4038_v61 = vld [vmem:[%s8763_s6 + $0x518] sm:$0xff] }
 0x104   : > { %1222 = vmatpush.msra.mxu3 %v1189_v19  ;;  %1507 = vmatpush.msrb.mxu0 %v4043_v42  ;;  %v3988_v19 = vld [vmem:[%s8763_s6 + $0x388] sm:$0xff]  ;;  %v4014_v42 = vld [vmem:[%s8763_s6 + $0x458] sm:$0xff] }
 0x105   : > { %1106 = vmatpush.msra.mxu2 %v3942_v20  ;;  %1073 = vmatmul.f32.gmra.mxu3 %v5568_v9 }
 0x106   : > { %1223 = vmatpush.msra.mxu3 %v1187_v21  ;;  %3922 = vmatmul.msk.f32.gmra.mxu2 %vm788_vm2, %v5356_v2  ;;  %v3936_v2 = vld [vmem:[%s8760_s3 + $0x428] sm:$0xff] }
 0x107   : > { %3986 = vmatmul.msk.f32.gmra.mxu0 %vm788_vm2, %v5388_v14  ;;  %1107 = vmatpush.msra.mxu2 %v3940_v22  ;;  %v1181_v14 = vld [vmem:[%s8762_s5 + $0x88] sm:$0xff]  ;;  %v4034_v22 = vld [vmem:[%s8763_s6 + $0x4f8] sm:$0xff] }
 0x108   : > { %1224 = vmatpush.msra.mxu3 %v1185_v23  ;;  %1508 = vmatpush.msrb.mxu0 %v4039_v43  ;;  %v4098_v23 = vld [vmem:[%s8763_s6 + $0x6f8] sm:$0xff] }
 0x109   : > { %1215 = vmatmul.f32.gmra.mxu1 %v4575_v26  ;;  %1108 = vmatpush.msra.mxu2 %v3938_v24  ;;  %v4083_v24 = vld [vmem:[%s8763_s6 + $0x680] sm:$0xff]  ;;  %v4078_v43 = vld [vmem:[%s8763_s6 + $0x658] sm:$0xff] }
 0x10a   : > { %1225 = vmatpush.msra.mxu3 %v1183_v25  ;;  %1509 = vmatpush.msrb.mxu0 %v4035_v44  ;;  %v4030_v25 = vld [vmem:[%s8763_s6 + $0x4d8] sm:$0xff]  ;;  %v4063_v44 = vld [vmem:[%s8763_s6 + $0x5e0] sm:$0xff] }
 0x10b   : > { %1109 = vmatpush.msra.mxu2 %v3936_v2  ;;  %1553 = vmatpush.msrb.mxu1 %v4044_v48  ;;  %v4079_v2 = vld [vmem:[%s8763_s6 + $0x660] sm:$0xff]  ;;  %v4074_v48 = vld [vmem:[%s8763_s6 + $0x638] sm:$0xff] }
 0x10c   : > { %1226 = vmatpush.msra.mxu3 %v1181_v14  ;;  %1510 = vmatpush.msrb.mxu0 %v4031_v45  ;;  %v4096_v14 = vld [vmem:[%s8763_s6 + $0x6e8] sm:$0xff] }
 0x10d   : > { %1110 = vmatpush.msra.mxu2 %v3934_v27  ;;  %1554 = vmatpush.msrb.mxu1 %v4040_v51  ;;  %v4080_v45 = vld [vmem:[%s8763_s6 + $0x668] sm:$0xff] }
 0x10e   : > { %1227 = vmatpush.msra.mxu3 %v1179_v28  ;;  %1511 = vmatpush.msrb.mxu0 %v4027_v47  ;;  %v4026_v28 = vld [vmem:[%s8763_s6 + $0x4b8] sm:$0xff]  ;;  %v4076_v51 = vld [vmem:[%s8763_s6 + $0x648] sm:$0xff] }
 0x10f   : > { %1111 = vmatpush.msra.mxu2 %v3932_v29  ;;  %1555 = vmatpush.msrb.mxu1 %v4036_v53  ;;  %v4090_v29 = vld [vmem:[%s8763_s6 + $0x6b8] sm:$0xff] }
 0x110   : > { %1228 = vmatpush.msra.mxu3 %v1177_v30  ;;  %1512 = vmatpush.msrb.mxu0 %v4023_v49  ;;  %v4075_v30 = vld [vmem:[%s8763_s6 + $0x640] sm:$0xff]  ;;  %v4010_v47 = vld [vmem:[%s8763_s6 + $0x438] sm:$0xff] }
 0x111   : > { %1112 = vmatpush.msra.mxu2 %v3930_v31  ;;  %1556 = vmatpush.msrb.mxu1 %v4032_v55  ;;  %v4092_v31 = vld [vmem:[%s8763_s6 + $0x6c8] sm:$0xff]  ;;  %v4059_v49 = vld [vmem:[%s8763_s6 + $0x5c0] sm:$0xff]  ;;  %v4070_v53 = vld [vmem:[%s8763_s6 + $0x618] sm:$0xff] }
 0x112   : > { %1229 = vmatpush.msra.mxu3 %v1175_v32  ;;  %1513 = vmatpush.msrb.mxu0 %v4019_v52  ;;  %v4022_v32 = vld [vmem:[%s8763_s6 + $0x498] sm:$0xff]  ;;  %v4072_v55 = vld [vmem:[%s8763_s6 + $0x628] sm:$0xff] }
 0x113   : > { %1113 = vmatpush.msra.mxu2 %v3928_v33  ;;  %1557 = vmatpush.msrb.mxu1 %v4028_v57  ;;  %v4086_v33 = vld [vmem:[%s8763_s6 + $0x698] sm:$0xff] }
 0x114   : > { %1230 = vmatpush.msra.mxu3 %v1173_v34  ;;  %1514 = vmatpush.msrb.mxu0 %v4015_v54  ;;  %v4071_v34 = vld [vmem:[%s8763_s6 + $0x620] sm:$0xff]  ;;  %v4006_v52 = vld [vmem:[%s8763_s6 + $0x418] sm:$0xff] }
 0x115   : > { %1114 = vmatpush.msra.mxu2 %v3926_v35  ;;  %1558 = vmatpush.msrb.mxu1 %v4024_v59  ;;  %v4088_v35 = vld [vmem:[%s8763_s6 + $0x6a8] sm:$0xff]  ;;  %v4055_v54 = vld [vmem:[%s8763_s6 + $0x5a0] sm:$0xff]  ;;  %v4002_v57 = vld [vmem:[%s8763_s6 + $0x3f8] sm:$0xff] }
 0x116   : > { %1231 = vmatpush.msra.mxu3 %v1171_v36  ;;  %1515 = vmatpush.msrb.mxu0 %v4011_v56  ;;  %v4018_v36 = vld [vmem:[%s8763_s6 + $0x478] sm:$0xff]  ;;  %v4051_v59 = vld [vmem:[%s8763_s6 + $0x580] sm:$0xff] }
 0x117   : > { %1115 = vmatpush.msra.mxu2 %v3924_v37  ;;  %1559 = vmatpush.msrb.mxu1 %v4020_v62  ;;  %v4082_v37 = vld [vmem:[%s8763_s6 + $0x678] sm:$0xff]  ;;  %v4049_v62 = vld [vmem:[%s8763_s6 + $0x570] sm:$0xff] }
 0x118   : > { %1232 = vmatpush.msra.mxu3 %v1169_v38  ;;  %1116 = vmatmul.f32.vlgmr.msra.gmra.mxu2 %v5582_v13  ;;  %v3996_v13 = vld [vmem:[%s8763_s6 + $0x3c8] sm:$0xff]  ;;  %v4067_v38 = vld [vmem:[%s8763_s6 + $0x600] sm:$0xff] }
 0x119   : > { %1516 = vmatpush.msrb.mxu0 %v4007_v58  ;;  %1560 = vmatpush.msrb.mxu1 %v4016_v0  ;;  %v4066_v58 = vld [vmem:[%s8763_s6 + $0x5f8] sm:$0xff] }
 0x11a   : > { %1233 = vmatpush.msra.mxu3 %v1167_v39  ;;  %1533 = vmatpush.msrb.mxu2 %v4095_v1  ;;  %v4084_v39 = vld [vmem:[%s8763_s6 + $0x688] sm:$0xff]  ;;  %v4062_v0 = vld [vmem:[%s8763_s6 + $0x5d8] sm:$0xff] }
 0x11b   : > { %1517 = vmatpush.msrb.mxu0 %v4003_v60  ;;  %1561 = vmatpush.msrb.mxu1 %v4012_v4  ;;  %v4068_v60 = vld [vmem:[%s8763_s6 + $0x608] sm:$0xff]  ;;  %v4045_v4 = vld [vmem:[%s8763_s6 + $0x550] sm:$0xff]  ;;  %v3990_v1 = vld [vmem:[%s8763_s6 + $0x398] sm:$0xff] }
 0x11c   : > { %1234 = vmatpush.msra.mxu3 %v1165_v40  ;;  %1534 = vmatpush.msrb.mxu2 %v4091_v16  ;;  %v4037_v16 = vld [vmem:[%s8763_s6 + $0x510] sm:$0xff] }
 0x11d   : > { %1235 = vmatmul.f32.vlgmr.msra.gmra.mxu3 %v4574_v18  ;;  %1518 = vmatpush.msrb.mxu0 %v3999_v63  ;;  %v4087_v18 = vld [vmem:[%s8763_s6 + $0x6a0] sm:$0xff]  ;;  %v3998_v63 = vld [vmem:[%s8763_s6 + $0x3d8] sm:$0xff] }
 0x11e   : > { %1562 = vmatpush.msrb.mxu1 %v4008_v6  ;;  %1535 = vmatpush.msrb.mxu2 %v4087_v18  ;;  %v4052_v18 = vld [vmem:[%s8763_s6 + $0x588] sm:$0xff] }
 0x11f   : > { %1519 = vmatpush.msrb.mxu0 %v3995_v3  ;;  %1579 = vmatpush.msrb.mxu3 %v4096_v14  ;;  %v4064_v3 = vld [vmem:[%s8763_s6 + $0x5e8] sm:$0xff]  ;;  %v4025_v14 = vld [vmem:[%s8763_s6 + $0x4b0] sm:$0xff] }
 0x120   : > { %1119 = vmatmul.f32.gmra.mxu2 %v5568_v9  ;;  %v4004_v9 = vld [vmem:[%s8763_s6 + $0x408] sm:$0xff] }
 0x121   : > { %1520 = vmatpush.msrb.mxu0 %v3991_v5  ;;  %1563 = vmatpush.msrb.mxu1 %v4004_v9  ;;  %v3994_v5 = vld [vmem:[%s8763_s6 + $0x3b8] sm:$0xff] }
 0x122   : > { %1536 = vmatpush.msrb.mxu2 %v4083_v24  ;;  %1580 = vmatpush.msrb.mxu3 %v4092_v31  ;;  %v4058_v9 = vld [vmem:[%s8763_s6 + $0x5b8] sm:$0xff]  ;;  %v4021_v31 = vld [vmem:[%s8763_s6 + $0x490] sm:$0xff] }
 0x123   : > { %1521 = vmatpush.msrb.mxu0 %v3987_v8  ;;  %1564 = vmatpush.msrb.mxu1 %v4000_v11  ;;  %v4041_v11 = vld [vmem:[%s8763_s6 + $0x530] sm:$0xff] }
 0x124   : > { %1537 = vmatpush.msrb.mxu2 %v4079_v2  ;;  %1581 = vmatpush.msrb.mxu3 %v4088_v35  ;;  %v4017_v35 = vld [vmem:[%s8763_s6 + $0x470] sm:$0xff] }
 0x125   : > { %1238 = vmatmul.f32.gmra.mxu3 %v4575_v26  ;;  %1644 = vmatpush.msra.mxu0 %v4050_v10  ;;  %v4094_v26 = vld [vmem:[%s8763_s6 + $0x6d8] sm:$0xff]  ;;  %v4060_v10 = vld [vmem:[%s8763_s6 + $0x5c8] sm:$0xff] }
 0x126   : > { %1565 = vmatpush.msrb.mxu1 %v3996_v13  ;;  %1538 = vmatpush.msrb.mxu2 %v4075_v30  ;;  %v4054_v13 = vld [vmem:[%s8763_s6 + $0x598] sm:$0xff] }
 0x127   : > { %1645 = vmatpush.msra.mxu0 %v4046_v12  ;;  %1582 = vmatpush.msrb.mxu3 %v4084_v39 }
 0x128   : > { %1566 = vmatpush.msrb.mxu1 %v3992_v17  ;;  %1539 = vmatpush.msrb.mxu2 %v4071_v34 }
 0x129   : > { %1646 = vmatpush.msra.mxu0 %v4042_v50  ;;  %1583 = vmatpush.msrb.mxu3 %v4080_v45  ;;  %v4056_v50 = vld [vmem:[%s8763_s6 + $0x5a8] sm:$0xff]  ;;  %v4073_v45 = vld [vmem:[%s8763_s6 + $0x630] sm:$0xff] }
 0x12a   : > { %1567 = vmatpush.msrb.mxu1 %v3988_v19  ;;  %1540 = vmatpush.msrb.mxu2 %v4067_v38  ;;  %v4033_v19 = vld [vmem:[%s8763_s6 + $0x4f0] sm:$0xff] }
 0x12b   : > { %1647 = vmatpush.msra.mxu0 %v4038_v61  ;;  %1584 = vmatpush.msrb.mxu3 %v4076_v51 }
 0x12c   : > { %1671 = vmatpush.msra.mxu1 %v4098_v23  ;;  %1541 = vmatpush.msrb.mxu2 %v4063_v44  ;;  %v4009_v44 = vld [vmem:[%s8763_s6 + $0x430] sm:$0xff] }
 0x12d   : > { %1648 = vmatpush.msra.mxu0 %v4034_v22  ;;  %1585 = vmatpush.msrb.mxu3 %v4072_v55  ;;  %v4097_v22 = vld [vmem:[%s8763_s6 + $0x6f0] sm:$0xff] }
 0x12e   : > { %1672 = vmatpush.msra.mxu1 %v4094_v26  ;;  %1542 = vmatpush.msrb.mxu2 %v4059_v49  ;;  %v5988_v26 = vld [vmem:[%s8761_s4] sm:$0x3] }
 0x12f   : > { %1649 = vmatpush.msra.mxu0 %v4030_v25  ;;  %1586 = vmatpush.msrb.mxu3 %v4068_v60  ;;  %v1152_v30 = vperm.slane %v5988_v26, 0 }
 0x130   : > { %1673 = vmatpush.msra.mxu1 %v4090_v29  ;;  %1543 = vmatpush.msrb.mxu2 %v4055_v54 }
 0x131   : > { %1650 = vmatpush.msra.mxu0 %v4026_v28  ;;  %1587 = vmatpush.msrb.mxu3 %v4064_v3  ;;  %v4089_v28 = vld [vmem:[%s8763_s6 + $0x6b0] sm:$0xff] }
 0x132   : > { %1674 = vmatpush.msra.mxu1 %v4086_v33  ;;  %1544 = vmatpush.msrb.mxu2 %v4051_v59 }
 0x133   : > { %1651 = vmatpush.msra.mxu0 %v4022_v32  ;;  %1588 = vmatpush.msrb.mxu3 %v4060_v10  ;;  %v4085_v32 = vld [vmem:[%s8763_s6 + $0x690] sm:$0xff] }
 0x134   : > { %1675 = vmatpush.msra.mxu1 %v4082_v37  ;;  %1598 = vmatpush.msra.mxu2 %v4049_v62  ;;  %v3997_v62 = vld [vmem:[%s8763_s6 + $0x3d0] sm:$0xff] }
 0x135   : > { %1652 = vmatpush.msra.mxu0 %v4018_v36  ;;  %1589 = vmatpush.msrb.mxu3 %v4056_v50  ;;  %v4081_v36 = vld [vmem:[%s8763_s6 + $0x670] sm:$0xff] }
 0x136   : > { %1676 = vmatpush.msra.mxu1 %v4078_v43  ;;  %1599 = vmatpush.msra.mxu2 %v4045_v4  ;;  %v3993_v4 = vld [vmem:[%s8763_s6 + $0x3b0] sm:$0xff] }
 0x137   : > { %1653 = vmatpush.msra.mxu0 %v4014_v42  ;;  %1590 = vmatpush.msrb.mxu3 %v4052_v18  ;;  %v4053_v10 = vld [vmem:[%s8763_s6 + $0x590] sm:$0xff] }
 0x138   : > { %1677 = vmatpush.msra.mxu1 %v4074_v48  ;;  %1600 = vmatpush.msra.mxu2 %v4041_v11 }
 0x139   : > { %1654 = vmatpush.msra.mxu0 %v4010_v47  ;;  %1625 = vmatpush.msra.mxu3 %v4097_v22 }
 0x13a   : > { %1678 = vmatpush.msra.mxu1 %v4070_v53  ;;  %1601 = vmatpush.msra.mxu2 %v4037_v16  ;;  %v4069_v53 = vld [vmem:[%s8763_s6 + $0x610] sm:$0xff]  ;;  %v1325_v16 = vld [vmem:[%s8763_s6 + $0x1e8] sm:$0xff] }
 0x13b   : > { %1655 = vmatpush.msra.mxu0 %v4006_v52 }
 0x13c   : > { %1679 = vmatpush.msra.mxu1 %v4066_v58  ;;  %1602 = vmatpush.msra.mxu2 %v4033_v19  ;;  %v4065_v58 = vld [vmem:[%s8763_s6 + $0x5f0] sm:$0xff] }
 0x13d   : > { %1656 = vmatpush.msra.mxu0 %v4002_v57  ;;  %v4001_v57 = vld [vmem:[%s8763_s6 + $0x3f0] sm:$0xff] }
 0x13e   : > { %1680 = vmatpush.msra.mxu1 %v4062_v0 }
 0x13f   : > { %1657 = vmatpush.msra.mxu0 %v3998_v63  ;;  %v4061_v63 = vld [vmem:[%s8763_s6 + $0x5d0] sm:$0xff] }
 0x140   : > { %1681 = vmatpush.msra.mxu1 %v4058_v9  ;;  %v3989_v9 = vld [vmem:[%s8763_s6 + $0x390] sm:$0xff] }
 0x141   : > { %1658 = vmatpush.msra.mxu0 %v3994_v5  ;;  %v4057_v5 = vld [vmem:[%s8763_s6 + $0x5b0] sm:$0xff] }
 0x142   : > { %1682 = vmatpush.msra.mxu1 %v4054_v13 }
 0x143   : > { %1659 = vmatpush.msra.mxu0 %v3990_v1 }
 0x14c   : > { %v5760_v7 = vpop.f32.mrf.mxu1 }
 0x154   : > { %v5803_v20 = vpop.f32.mrf.mxu1 }
 0x158   : > { %v5908_v56 = vpop.f32.mrf.mxu0 }
 0x15c   : > { %v5866_v40 = vpop.f32.mrf.mxu1 }
 0x15d   : > { %v5783_v15 = vpop.f32.mrf.mxu3  ;;  %v5805_v21 = vpop.f32.mrf.mxu2 }
 0x15e   : > { %v834_v17 = vadd.f32 %v5783_v15, %v5805_v21  ;;  %v4029_v15 = vld [vmem:[%s8763_s6 + $0x4d0] sm:$0xff] }
 0x15f   : > { %v4093_v21 = vld [vmem:[%s8763_s6 + $0x6d0] sm:$0xff]  ;;  %1603 = vmatpush.msra.mxu2 %v4029_v15  ;;  %v1369_v15 = vld [vmem:[%s8763_s6 + $0x348] sm:$0xff] }
 0x160   : > { %v5967_v61 = vpop.f32.mrf.mxu0  ;;  %v907_v24 = vadd.f32 %v5760_v7, %v834_v17  ;;  %1626 = vmatpush.msra.mxu3 %v4093_v21  ;;  %v1373_v17 = vld [vmem:[%s8763_s6 + $0x368] sm:$0xff] }
 0x161   : > { %1604 = vmatpush.msra.mxu2 %v4025_v14  ;;  %v1361_v14 = vld [vmem:[%s8763_s6 + $0x308] sm:$0xff] }
 0x162   : > { %1627 = vmatpush.msra.mxu3 %v4089_v28 }
 0x163   : > { %1605 = vmatpush.msra.mxu2 %v4021_v31  ;;  %v1357_v31 = vld [vmem:[%s8763_s6 + $0x2e8] sm:$0xff] }
 0x164   : > { %v5940_v6 = vpop.f32.mrf.mxu1  ;;  %1628 = vmatpush.msra.mxu3 %v4085_v32 }
 0x165   : > { %v5868_v41 = vpop.f32.mrf.mxu2  ;;  %1606 = vmatpush.msra.mxu2 %v4017_v35 }
 0x166   : > { %v5828_v27 = vpop.f32.mrf.mxu3  ;;  %1629 = vmatpush.msra.mxu3 %v4081_v36 }
 0x167   : > { %v837_v34 = vadd.f32 %v5828_v27, %v5868_v41  ;;  %v4077_v27 = vld [vmem:[%s8763_s6 + $0x650] sm:$0xff] }
 0x168   : > { %1630 = vmatpush.msra.mxu3 %v4077_v27  ;;  %v1297_v27 = vld [vmem:[%s8763_s6 + $0x108] sm:$0xff] }
 0x169   : > { %v6012_v37 = vpop.f32.mrf.mxu0  ;;  %v910_v43 = vadd.f32 %v5803_v20, %v837_v34  ;;  %v4005_v20 = vld [vmem:[%s8763_s6 + $0x410] sm:$0xff] }
 0x16a   : > { %1631 = vmatpush.msra.mxu3 %v4073_v45  ;;  %v1341_v45 = vld [vmem:[%s8763_s6 + $0x268] sm:$0xff] }
 0x16c   : > { %1632 = vmatpush.msra.mxu3 %v4069_v53 }
 0x16e   : > { %v5882_v46 = vpop.f32.mrf.mxu3  ;;  %v929_v8 = vpop.f32.mrf.mxu2  ;;  %1633 = vmatpush.msra.mxu3 %v4065_v58  ;;  %v1333_v58 = vld [vmem:[%s8763_s6 + $0x228] sm:$0xff] }
 0x16f   : > { %v930_v29 = vadd.f32 %v929_v8, %v907_v24  ;;  %v880_v19 = vadd.f32 %v5908_v56, %v5882_v46  ;;  %v1317_v46 = vld [vmem:[%s8763_s6 + $0x1a8] sm:$0xff] }
 0x170   : > { %1634 = vmatpush.msra.mxu3 %v4061_v63  ;;  %v1365_v56 = vld [vmem:[%s8763_s6 + $0x328] sm:$0xff] }
 0x171   : > { %v953_v24 = vadd.f32 %v6012_v37, %v880_v19  ;;  %v1349_v37 = vld [vmem:[%s8763_s6 + $0x2a8] sm:$0xff]  ;;  %v1320_v19 = vld [vmem:[%s8763_s6 + $0x1c0] sm:$0xff] }
 0x172   : > { %v955_v0 = vpop.f32.mrf.mxu0  ;;  %1635 = vmatpush.msra.mxu3 %v4057_v5  ;;  %v1329_v63 = vld [vmem:[%s8763_s6 + $0x208] sm:$0xff] }
 0x174   : > { %1636 = vmatpush.msra.mxu3 %v4053_v10 }
 0x177   : > { %v5951_v12 = vpop.f32.mrf.mxu3  ;;  %v932_v25 = vpop.f32.mrf.mxu2 }
 0x178   : > { %v933_v49 = vadd.f32 %v932_v25, %v910_v43  ;;  %v883_v28 = vadd.f32 %v5967_v61, %v5951_v12  ;;  %v1305_v12 = vld [vmem:[%s8763_s6 + $0x148] sm:$0xff] }
 0x179   : > { %v1353_v61 = vld [vmem:[%s8763_s6 + $0x2c8] sm:$0xff] }
 0x17a   : > { %v956_v34 = vadd.f32 %v955_v0, %v883_v28  ;;  %v1307_v28 = vld [vmem:[%s8763_s6 + $0x158] sm:$0xff] }
 0x17c   : > { %v1140_v22 = vpop.f32.mrf.mxu0 }
 0x17e   : > { %v1213_v23 = vpop.f32.mrf.mxu1 }
 0x17f   : > { %v1246_v41 = vrot.slane %v1213_v23, 2  ;;  %v1321_v23 = vld [vmem:[%s8763_s6 + $0x1c8] sm:$0xff] }
 0x180   : > { %v1071_v2 = vpop.f32.mrf.mxu3 }
 0x181   : > { %v1095_v7 = vadd.f32 %v5866_v40, %v1071_v2  ;;  %v4013_v40 = vld [vmem:[%s8763_s6 + $0x450] sm:$0xff]  ;;  %v975_v47 = vpop.f32.mrf.mxu2  ;;  %v1313_v2 = vld [vmem:[%s8763_s6 + $0x188] sm:$0xff] }
 0x182   : > { %1607 = vmatpush.msra.mxu2 %v4013_v40 }
 0x183   : > { %v1146_v33 = vadd.f32 %v1095_v7, %v930_v29  ;;  %v976_v29 = vadd.f32 %v975_v47, %v953_v24  ;;  %v1311_v24 = vld [vmem:[%s8763_s6 + $0x178] sm:$0xff] }
 0x184   : > { %1608 = vmatpush.msra.mxu2 %v4009_v44  ;;  %v1143_v35 = vpop.f32.mrf.mxu0  ;;  %v1293_v44 = vld [vmem:[%s8763_s6 + $0xe8] sm:$0xff] }
 0x185   : > { %v1156_v39 = vadd.f32 %v1152_v30, %v1146_v33  ;;  %v1153_v33 = vperm.slane %v5988_v26, 1  ;;  %v1301_v26 = vld [vmem:[%s8763_s6 + $0x128] sm:$0xff] }
 0x186   : > { %v1216_v38 = vpop.f32.mrf.mxu1  ;;  %1609 = vmatpush.msra.mxu2 %v4005_v20  ;;  %v1337_v20 = vld [vmem:[%s8763_s6 + $0x248] sm:$0xff] }
 0x187   : > { %v1247_v42 = vrot.slane %v1216_v38, 2  ;;  %v1160_v51 = vmax.f32 %v1156_v39, 0.0 }
 0x188   : > { %v1074_v48 = vpop.f32.mrf.mxu3  ;;  %1610 = vmatpush.msra.mxu2 %v4001_v57  ;;  %v1285_v57 = vld [vmem:[%s8763_s6 + $0xa8] sm:$0xff] }
 0x189   : > { %v1098_v52 = vadd.f32 %v5940_v6, %v1074_v48  ;;  %v1248_v54 = vsel %vm585_vm1, %v1246_v41, %v1247_v42  ;;  %v978_v11 = vpop.f32.mrf.mxu2  ;;  %v1345_v41 = vld [vmem:[%s8763_s6 + $0x288] sm:$0xff] }
 0x18a   : > { %v1256_v59 = vadd.f32 %v1248_v54, %v1160_v51  ;;  %1611 = vmatpush.msra.mxu2 %v3997_v62  ;;  %v979_v38 = vadd.f32 %v978_v11, %v956_v34  ;;  %v1281_v62 = vld [vmem:[%s8763_s6 + $0x88] sm:$0xff]  ;;  %v1324_v11 = vld [vmem:[%s8763_s6 + $0x1e0] sm:$0xff]  ;;  %v1363_v34 = vld [vmem:[%s8763_s6 + $0x318] sm:$0xff] }
 0x18b   : > { %v1148_v55 = vadd.f32 %v1098_v52, %v933_v49  ;;  %v1289_v52 = vld [vmem:[%s8763_s6 + $0xc8] sm:$0xff] }
 0x18c   : > { %1612 = vmatpush.msra.mxu2 %v3993_v4  ;;  %v6053_v6 = vmax.f32 %v1256_v59, 0.0  ;;  %v1277_v4 = vld [vmem:[%s8763_s6 + $0x68] sm:$0xff] }
 0x18d   : > { %v1158_v60 = vadd.f32 %v1152_v30, %v1148_v55  ;;  %v1309_v30 = vld [vmem:[%s8763_s6 + $0x168] sm:$0xff] }
 0x18e   : > { %1613 = vmatpush.msra.mxu2 %v3989_v9  ;;  %v1493_v13 = vrot.slane %v6053_v6, 1 }
 0x18f   : > { %v1162_v3 = vmax.f32 %v1158_v60, 0.0 }
 0x191   : > { %v1258_v8 = vadd.f32 %v1247_v42, %v1162_v3  ;;  %v1327_v3 = vld [vmem:[%s8763_s6 + $0x1f8] sm:$0xff] }
 0x193   : > { %v6061_v1 = vmax.f32 %v1258_v8, 0.0  ;;  %v1323_v8 = vld [vmem:[%s8763_s6 + $0x1d8] sm:$0xff] }
 0x195   : > { %v6065_v50 = vrot.slane %v6061_v1, 1 }
 0x197   : > { %v6075_v18 = vsel %vm454_vm0, %v1493_v13, %v6065_v50  ;;  %v1372_v13 = vld [vmem:[%s8763_s6 + $0x360] sm:$0xff] }
 0x198   : > { %1522 = vmatmul.f32.vlgmr.msrb.gmra.mxu0 %v6075_v18  ;;  %1568 = vmatmul.f32.vlgmr.msrb.gmra.mxu1 %v6075_v18 }
 0x199   : > { %1740 = vmatpush.msrb.mxu1 %v1325_v16  ;;  %1767 = vmatpush.msrb.mxu0 %v1373_v17  ;;  %v1273_v16 = vld [vmem:[%s8763_s6 + $0x48] sm:$0xff]  ;;  %v1319_v17 = vld [vmem:[%s8763_s6 + $0x1b8] sm:$0xff] }
 0x19b   : > { %v1117_v21 = vpop.f32.mrf.mxu2  ;;  %1741 = vmatpush.msrb.mxu1 %v1321_v23  ;;  %1768 = vmatpush.msrb.mxu0 %v1369_v15  ;;  %v1269_v23 = vld [vmem:[%s8763_s6 + $0x28] sm:$0xff]  ;;  %v1315_v15 = vld [vmem:[%s8763_s6 + $0x198] sm:$0xff] }
 0x19c   : > { %v1141_v25 = vadd.f32 %v1140_v22, %v1117_v21  ;;  %v1368_v22 = vld [vmem:[%s8763_s6 + $0x340] sm:$0xff] }
 0x19d   : > { %1742 = vmatpush.msrb.mxu1 %v1317_v46  ;;  %1769 = vmatpush.msrb.mxu0 %v1365_v56  ;;  %v1316_v21 = vld [vmem:[%s8763_s6 + $0x1a0] sm:$0xff]  ;;  %v1265_v56 = vld [vmem:[%s8763_s6 + $0x8] sm:$0xff] }
 0x19e   : > { %v1147_v32 = vadd.f32 %v1141_v25, %v976_v29  ;;  %v1364_v46 = vld [vmem:[%s8763_s6 + $0x320] sm:$0xff]  ;;  %v1375_v25 = vld [vmem:[%s8763_s6 + $0x378] sm:$0xff] }
 0x19f   : > { %1743 = vmatpush.msrb.mxu1 %v1313_v2  ;;  %1770 = vmatpush.msrb.mxu0 %v1361_v14  ;;  %v1312_v2 = vld [vmem:[%s8763_s6 + $0x180] sm:$0xff]  ;;  %v1371_v29 = vld [vmem:[%s8763_s6 + $0x358] sm:$0xff] }
 0x1a0   : > { %v1236_v7 = vpop.f32.mrf.mxu3  ;;  %1525 = vmatmul.f32.gmra.mxu0 %v6065_v50  ;;  %1571 = vmatmul.f32.gmra.mxu1 %v6065_v50  ;;  %v1157_v40 = vadd.f32 %v1153_v33, %v1147_v32  ;;  %v1360_v14 = vld [vmem:[%s8763_s6 + $0x300] sm:$0xff]  ;;  %v1367_v32 = vld [vmem:[%s8763_s6 + $0x338] sm:$0xff] }
 0x1a1   : > { %1744 = vmatpush.msrb.mxu1 %v1309_v30  ;;  %1771 = vmatpush.msrb.mxu0 %v1357_v31  ;;  %v1249_v47 = vrot.slane %v1236_v7, 2  ;;  %v1308_v7 = vld [vmem:[%s8763_s6 + $0x160] sm:$0xff]  ;;  %v1303_v31 = vld [vmem:[%s8763_s6 + $0x138] sm:$0xff] }
 0x1a2   : > { %v1161_v51 = vmax.f32 %v1157_v40, 0.0  ;;  %v1356_v30 = vld [vmem:[%s8763_s6 + $0x2e0] sm:$0xff]  ;;  %v1291_v40 = vld [vmem:[%s8763_s6 + $0xd8] sm:$0xff] }
 0x1a3   : > { %v1120_v36 = vpop.f32.mrf.mxu2  ;;  %1745 = vmatpush.msrb.mxu1 %v1305_v12  ;;  %1772 = vmatpush.msrb.mxu0 %v1353_v61  ;;  %v1352_v12 = vld [vmem:[%s8763_s6 + $0x2c0] sm:$0xff]  ;;  %v1299_v61 = vld [vmem:[%s8763_s6 + $0x118] sm:$0xff] }
 0x1a4   : > { %v1144_v39 = vadd.f32 %v1143_v35, %v1120_v36  ;;  %v1300_v35 = vld [vmem:[%s8763_s6 + $0x120] sm:$0xff] }
 0x1a5   : > { %1746 = vmatpush.msrb.mxu1 %v1301_v26  ;;  %1773 = vmatpush.msrb.mxu0 %v1349_v37  ;;  %v1348_v36 = vld [vmem:[%s8763_s6 + $0x2a0] sm:$0xff]  ;;  %v1295_v26 = vld [vmem:[%s8763_s6 + $0xf8] sm:$0xff] }
 0x1a6   : > { %v1149_v42 = vadd.f32 %v1144_v39, %v979_v38  ;;  %v1359_v37 = vld [vmem:[%s8763_s6 + $0x2f8] sm:$0xff]  ;;  %v1296_v38 = vld [vmem:[%s8763_s6 + $0x100] sm:$0xff] }
 0x1a7   : > { %1747 = vmatpush.msrb.mxu1 %v1297_v27  ;;  %1774 = vmatpush.msrb.mxu0 %v1345_v41  ;;  %v1344_v39 = vld [vmem:[%s8763_s6 + $0x280] sm:$0xff]  ;;  %v1355_v27 = vld [vmem:[%s8763_s6 + $0x2d8] sm:$0xff] }
 0x1a8   : > { %v1239_v43 = vpop.f32.mrf.mxu3  ;;  %v1159_v48 = vadd.f32 %v1153_v33, %v1149_v42  ;;  %1660 = vmatmul.f32.vlgmr.msra.gmra.mxu0 %v6075_v18  ;;  %v1304_v33 = vld [vmem:[%s8763_s6 + $0x140] sm:$0xff] }
 0x1a9   : > { %v1250_v49 = vrot.slane %v1239_v43, 2  ;;  %1748 = vmatpush.msrb.mxu1 %v1293_v44  ;;  %1775 = vmatpush.msrb.mxu0 %v1341_v45  ;;  %v1292_v41 = vld [vmem:[%s8763_s6 + $0xe0] sm:$0xff]  ;;  %v1287_v43 = vld [vmem:[%s8763_s6 + $0xb8] sm:$0xff] }
 0x1aa   : > { %v1163_v53 = vmax.f32 %v1159_v48, 0.0  ;;  %v1340_v42 = vld [vmem:[%s8763_s6 + $0x260] sm:$0xff]  ;;  %v1351_v44 = vld [vmem:[%s8763_s6 + $0x2b8] sm:$0xff] }
 0x1ab   : > { %v1251_v54 = vsel %vm585_vm1, %v1249_v47, %v1250_v49  ;;  %1749 = vmatpush.msrb.mxu1 %v1289_v52  ;;  %1776 = vmatpush.msrb.mxu0 %v1337_v20  ;;  %v1288_v45 = vld [vmem:[%s8763_s6 + $0xc0] sm:$0xff]  ;;  %v1347_v48 = vld [vmem:[%s8763_s6 + $0x298] sm:$0xff] }
 0x1ac   : > { %v1257_v55 = vadd.f32 %v1251_v54, %v1161_v51  ;;  %v1259_v59 = vadd.f32 %v1250_v49, %v1163_v53  ;;  %v1336_v47 = vld [vmem:[%s8763_s6 + $0x240] sm:$0xff]  ;;  %v1279_v52 = vld [vmem:[%s8763_s6 + $0x78] sm:$0xff] }
 0x1ad   : > { %1750 = vmatpush.msrb.mxu1 %v1285_v57  ;;  %1777 = vmatpush.msrb.mxu0 %v1333_v58  ;;  %v1284_v49 = vld [vmem:[%s8763_s6 + $0xa0] sm:$0xff]  ;;  %v1343_v20 = vld [vmem:[%s8763_s6 + $0x278] sm:$0xff]  ;;  %v1326_v57 = vld [vmem:[%s8763_s6 + $0x1f0] sm:$0xff] }
 0x1ae   : > { %v6149_v60 = vmax.f32 %v1257_v55, 0.0  ;;  %v6157_v0 = vmax.f32 %v1259_v59, 0.0  ;;  %v1332_v51 = vld [vmem:[%s8763_s6 + $0x220] sm:$0xff]  ;;  %v1275_v55 = vld [vmem:[%s8763_s6 + $0x58] sm:$0xff] }
 0x1af   : > { %1751 = vmatpush.msrb.mxu1 %v1281_v62  ;;  %1778 = vmatpush.msrb.mxu0 %v1329_v63  ;;  %v1280_v53 = vld [vmem:[%s8763_s6 + $0x80] sm:$0xff]  ;;  %v1339_v58 = vld [vmem:[%s8763_s6 + $0x258] sm:$0xff]  ;;  %v1322_v62 = vld [vmem:[%s8763_s6 + $0x1d0] sm:$0xff] }
 0x1b0   : > { %v1496_v5 = vrot.slane %v6149_v60, 1  ;;  %v6170_v9 = vrot.slane %v6157_v0, 1  ;;  %1663 = vmatmul.f32.gmra.mxu0 %v6065_v50  ;;  %v1328_v54 = vld [vmem:[%s8763_s6 + $0x200] sm:$0xff]  ;;  %v1271_v63 = vld [vmem:[%s8763_s6 + $0x38] sm:$0xff] }
 0x1b1   : > { %1832 = vmatpush.msra.mxu0 %v1327_v3  ;;  %1752 = vmatpush.msrb.mxu1 %v1277_v4  ;;  %v1276_v59 = vld [vmem:[%s8763_s6 + $0x60] sm:$0xff]  ;;  %v1335_v3 = vld [vmem:[%s8763_s6 + $0x238] sm:$0xff] }
 0x1b2   : > { %v6175_v10 = vsel %vm454_vm0, %v1496_v5, %v6170_v9  ;;  %v1272_v4 = vld [vmem:[%s8763_s6 + $0x40] sm:$0xff]  ;;  %v1318_v5 = vld [vmem:[%s8763_s6 + $0x1b0] sm:$0xff] }
 0x1b3   : > { %1833 = vmatpush.msra.mxu0 %v1323_v8  ;;  %4099 = vmatmul.msk.f32.vlgmr.msrb.gmra.mxu2 %vm1501_vm3, %v6175_v10  ;;  %v1331_v8 = vld [vmem:[%s8763_s6 + $0x218] sm:$0xff] }
 0x1b4   : > { %4101 = vmatmul.msk.f32.vlgmr.msrb.gmra.mxu3 %vm1501_vm3, %v6175_v10  ;;  %4105 = vmatmul.msk.f32.vlgmr.msra.gmra.mxu1 %vm1501_vm3, %v6175_v10 }
 0x1b5   : > { %1694 = vmatpush.msrb.mxu3 %v1324_v11  ;;  %1721 = vmatpush.msrb.mxu2 %v1372_v13  ;;  %v4224_v11 = vld [vmem:[%s8763_s6 + $0xa68] sm:$0xff]  ;;  %v1314_v13 = vld [vmem:[%s8763_s6 + $0x190] sm:$0xff] }
 0x1b6   : > { %1753 = vmatpush.msrb.mxu1 %v1273_v16  ;;  %1834 = vmatpush.msra.mxu0 %v1319_v17  ;;  %v1264_v16 = vld [vmem:[%s8763_s6] sm:$0xff]  ;;  %v4172_v17 = vld [vmem:[%s8763_s6 + $0x8c8] sm:$0xff] }
 0x1b7   : > { %1695 = vmatpush.msrb.mxu3 %v1320_v19  ;;  %1722 = vmatpush.msrb.mxu2 %v1368_v22  ;;  %v4220_v19 = vld [vmem:[%s8763_s6 + $0xa48] sm:$0xff]  ;;  %v1310_v22 = vld [vmem:[%s8763_s6 + $0x170] sm:$0xff] }
 0x1b8   : > { %1754 = vmatpush.msrb.mxu1 %v1269_v23  ;;  %1835 = vmatpush.msra.mxu0 %v1315_v15  ;;  %v1374_v23 = vld [vmem:[%s8763_s6 + $0x370] sm:$0xff]  ;;  %v4168_v15 = vld [vmem:[%s8763_s6 + $0x8a8] sm:$0xff] }
 0x1b9   : > { %1696 = vmatpush.msrb.mxu3 %v1316_v21  ;;  %1723 = vmatpush.msrb.mxu2 %v1364_v46  ;;  %v4216_v21 = vld [vmem:[%s8763_s6 + $0xa28] sm:$0xff]  ;;  %v1306_v46 = vld [vmem:[%s8763_s6 + $0x150] sm:$0xff] }
 0x1ba   : > { %1755 = vmatpush.msrb.mxu1 %v1265_v56  ;;  %1836 = vmatpush.msra.mxu0 %v1311_v24  ;;  %v1370_v56 = vld [vmem:[%s8763_s6 + $0x350] sm:$0xff]  ;;  %v4164_v24 = vld [vmem:[%s8763_s6 + $0x888] sm:$0xff] }
 0x1bb   : > { %1697 = vmatpush.msrb.mxu3 %v1312_v2  ;;  %1724 = vmatpush.msrb.mxu2 %v1360_v14  ;;  %v1302_v2 = vld [vmem:[%s8763_s6 + $0x130] sm:$0xff] }
 0x1bc   : > { %1859 = vmatpush.msra.mxu1 %v1375_v25  ;;  %4109 = vmatmul.msk.f32.vlgmr.msrb.gmra.mxu0 %vm1501_vm3, %v6149_v60  ;;  %v4212_v25 = vld [vmem:[%s8763_s6 + $0xa08] sm:$0xff]  ;;  %v1366_v14 = vld [vmem:[%s8763_s6 + $0x330] sm:$0xff] }
 0x1bd   : > { %1837 = vmatpush.msra.mxu0 %v1307_v28  ;;  %4100 = vmatmul.msk.f32.gmra.mxu2 %vm1501_vm3, %v6170_v9  ;;  %v4160_v28 = vld [vmem:[%s8763_s6 + $0x868] sm:$0xff] }
 0x1be   : > { %1860 = vmatpush.msra.mxu1 %v1371_v29  ;;  %4102 = vmatmul.msk.f32.gmra.mxu3 %vm1501_vm3, %v6170_v9  ;;  %v4208_v29 = vld [vmem:[%s8763_s6 + $0x9e8] sm:$0xff] }
 0x1bf   : > { %4106 = vmatmul.msk.f32.gmra.mxu1 %vm1501_vm3, %v6170_v9  ;;  %1698 = vmatpush.msrb.mxu3 %v1308_v7  ;;  %v1298_v7 = vld [vmem:[%s8763_s6 + $0x110] sm:$0xff] }
 0x1c0   : > { %1725 = vmatpush.msrb.mxu2 %v1356_v30  ;;  %1838 = vmatpush.msra.mxu0 %v1303_v31  ;;  %v1362_v30 = vld [vmem:[%s8763_s6 + $0x310] sm:$0xff]  ;;  %v4156_v31 = vld [vmem:[%s8763_s6 + $0x848] sm:$0xff] }
 0x1c1   : > { %1861 = vmatpush.msra.mxu1 %v1367_v32  ;;  %1699 = vmatpush.msrb.mxu3 %v1304_v33  ;;  %v4204_v32 = vld [vmem:[%s8763_s6 + $0x9c8] sm:$0xff]  ;;  %v1294_v33 = vld [vmem:[%s8763_s6 + $0xf0] sm:$0xff] }
 0x1c2   : > { %1726 = vmatpush.msrb.mxu2 %v1352_v12  ;;  %1839 = vmatpush.msra.mxu0 %v1299_v61  ;;  %v1358_v12 = vld [vmem:[%s8763_s6 + $0x2f0] sm:$0xff]  ;;  %v4152_v61 = vld [vmem:[%s8763_s6 + $0x828] sm:$0xff] }
 0x1c3   : > { %1862 = vmatpush.msra.mxu1 %v1363_v34  ;;  %1700 = vmatpush.msrb.mxu3 %v1300_v35  ;;  %v4200_v34 = vld [vmem:[%s8763_s6 + $0x9a8] sm:$0xff]  ;;  %v1290_v35 = vld [vmem:[%s8763_s6 + $0xd0] sm:$0xff] }
 0x1c4   : > { %1727 = vmatpush.msrb.mxu2 %v1348_v36  ;;  %1840 = vmatpush.msra.mxu0 %v1295_v26  ;;  %v1354_v36 = vld [vmem:[%s8763_s6 + $0x2d0] sm:$0xff]  ;;  %v4148_v26 = vld [vmem:[%s8763_s6 + $0x808] sm:$0xff] }
 0x1c5   : > { %1863 = vmatpush.msra.mxu1 %v1359_v37  ;;  %1701 = vmatpush.msrb.mxu3 %v1296_v38  ;;  %v4196_v37 = vld [vmem:[%s8763_s6 + $0x988] sm:$0xff]  ;;  %v1286_v38 = vld [vmem:[%s8763_s6 + $0xb0] sm:$0xff] }
 0x1c6   : > { %1728 = vmatpush.msrb.mxu2 %v1344_v39  ;;  %4110 = vmatmul.msk.f32.gmra.mxu0 %vm1501_vm3, %v6157_v0  ;;  %v1350_v39 = vld [vmem:[%s8763_s6 + $0x2b0] sm:$0xff] }
 0x1c7   : > { %1841 = vmatpush.msra.mxu0 %v1291_v40  ;;  %1864 = vmatpush.msra.mxu1 %v1355_v27  ;;  %v4144_v40 = vld [vmem:[%s8763_s6 + $0x7e8] sm:$0xff] }
 0x1c8   : > { %1614 = vmatmul.f32.vlgmr.msra.gmra.mxu2 %v6075_v18  ;;  %4103 = vmatmul.msk.f32.vlgmr.msra.gmra.mxu3 %vm1501_vm3, %v6175_v10  ;;  %v1283_v18 = vld [vmem:[%s8763_s6 + $0x98] sm:$0xff]  ;;  %v4176_v10 = vld [vmem:[%s8763_s6 + $0x8e8] sm:$0xff] }
 0x1c9   : > { %1702 = vmatpush.msrb.mxu3 %v1292_v41  ;;  %1729 = vmatpush.msrb.mxu2 %v1340_v42  ;;  %v4192_v27 = vld [vmem:[%s8763_s6 + $0x968] sm:$0xff]  ;;  %v1282_v41 = vld [vmem:[%s8763_s6 + $0x90] sm:$0xff] }
 0x1ca   : > { %1756 = vmatmul.f32.vlgmr.msrb.gmra.mxu1 %v6053_v6  ;;  %1842 = vmatpush.msra.mxu0 %v1287_v43  ;;  %v1346_v42 = vld [vmem:[%s8763_s6 + $0x290] sm:$0xff]  ;;  %v4140_v43 = vld [vmem:[%s8763_s6 + $0x7c8] sm:$0xff] }
 0x1cb   : > { %1865 = vmatpush.msra.mxu1 %v1351_v44  ;;  %1703 = vmatpush.msrb.mxu3 %v1288_v45  ;;  %v4188_v44 = vld [vmem:[%s8763_s6 + $0x948] sm:$0xff]  ;;  %v1278_v45 = vld [vmem:[%s8763_s6 + $0x70] sm:$0xff] }
 0x1cc   : > { %1730 = vmatpush.msrb.mxu2 %v1336_v47  ;;  %1843 = vmatpush.msra.mxu0 %v1283_v18  ;;  %v1342_v47 = vld [vmem:[%s8763_s6 + $0x270] sm:$0xff]  ;;  %v4136_v18 = vld [vmem:[%s8763_s6 + $0x7a8] sm:$0xff] }
 0x1cd   : > { %1866 = vmatpush.msra.mxu1 %v1347_v48  ;;  %1704 = vmatpush.msrb.mxu3 %v1284_v49  ;;  %v4184_v48 = vld [vmem:[%s8763_s6 + $0x928] sm:$0xff]  ;;  %v1274_v49 = vld [vmem:[%s8763_s6 + $0x50] sm:$0xff] }
 0x1ce   : > { %1731 = vmatpush.msrb.mxu2 %v1332_v51  ;;  %1844 = vmatpush.msra.mxu0 %v1279_v52  ;;  %v1338_v51 = vld [vmem:[%s8763_s6 + $0x250] sm:$0xff]  ;;  %v4132_v52 = vld [vmem:[%s8763_s6 + $0x788] sm:$0xff] }
 0x1cf   : > { %1867 = vmatpush.msra.mxu1 %v1343_v20  ;;  %1705 = vmatpush.msrb.mxu3 %v1280_v53  ;;  %v4180_v20 = vld [vmem:[%s8763_s6 + $0x908] sm:$0xff]  ;;  %v1994_v53 = vrot.slane %v6149_v60, 2 }
 0x1d0   : > { %1732 = vmatpush.msrb.mxu2 %v1328_v54  ;;  %1845 = vmatpush.msra.mxu0 %v1275_v55  ;;  %v6530_v54 = vrot.slane %v6157_v0, 2  ;;  %v1270_v55 = vld [vmem:[%s8763_s6 + $0x30] sm:$0xff] }
 0x1d1   : > { %1868 = vmatpush.msra.mxu1 %v1339_v58  ;;  %1617 = vmatmul.f32.gmra.mxu2 %v6065_v50  ;;  %v1267_v50 = vld [vmem:[%s8763_s6 + $0x18] sm:$0xff]  ;;  %v4128_v58 = vld [vmem:[%s8763_s6 + $0x768] sm:$0xff] }
 0x1d2   : > { %1786 = vmatpush.msra.mxu2 %v1326_v57  ;;  %4104 = vmatmul.msk.f32.gmra.mxu3 %vm1501_vm3, %v6170_v9  ;;  %v1268_v9 = vld [vmem:[%s8763_s6 + $0x20] sm:$0xff]  ;;  %v1334_v57 = vld [vmem:[%s8763_s6 + $0x230] sm:$0xff] }
 0x1d3   : > { %1706 = vmatpush.msrb.mxu3 %v1276_v59  ;;  %1759 = vmatmul.f32.gmra.mxu1 %v6061_v1  ;;  %v4178_v59 = vld [vmem:[%s8763_s6 + $0x8f8] sm:$0xff] }
 0x1d4   : > { %1787 = vmatpush.msra.mxu2 %v1322_v62  ;;  %1846 = vmatpush.msra.mxu0 %v1271_v63  ;;  %v1266_v62 = vld [vmem:[%s8763_s6 + $0x10] sm:$0xff]  ;;  %v6549_v63 = vsel %vm585_vm1, %v1994_v53, %v6530_v54  ;;  %v4126_v53 = vld [vmem:[%s8763_s6 + $0x758] sm:$0xff] }
 0x1d5   : > { %1869 = vmatpush.msra.mxu1 %v1335_v3  ;;  %1707 = vmatpush.msrb.mxu3 %v1272_v4  ;;  %v1330_v3 = vld [vmem:[%s8763_s6 + $0x210] sm:$0xff]  ;;  %v4174_v4 = vld [vmem:[%s8763_s6 + $0x8d8] sm:$0xff] }
 0x1d6   : > { %1788 = vmatpush.msra.mxu2 %v1318_v5  ;;  %1847 = vmatpush.msra.mxu0 %v1267_v50  ;;  %v4175_v5 = vld [vmem:[%s8763_s6 + $0x8e0] sm:$0xff] }
 0x1d7   : > { %1870 = vmatpush.msra.mxu1 %v1331_v8  ;;  %1708 = vmatpush.msrb.mxu3 %v1268_v9  ;;  %v4223_v50 = vld [vmem:[%s8763_s6 + $0xa60] sm:$0xff]  ;;  %v4124_v8 = vld [vmem:[%s8763_s6 + $0x748] sm:$0xff]  ;;  %v4170_v9 = vld [vmem:[%s8763_s6 + $0x8b8] sm:$0xff] }
 0x1d8   : > { %1848 = vmatmul.f32.vlgmr.msra.gmra.mxu0 %v6053_v6  ;;  %1789 = vmatpush.msra.mxu2 %v1314_v13  ;;  %v4120_v13 = vld [vmem:[%s8763_s6 + $0x728] sm:$0xff] }
 0x1d9   : > { %2049 = vmatpush.msrb.mxu1 %v4176_v10  ;;  %2076 = vmatpush.msrb.mxu0 %v4224_v11  ;;  %v4171_v10 = vld [vmem:[%s8763_s6 + $0x8c0] sm:$0xff] }
 0x1da   : > { %1709 = vmatpush.msrb.mxu3 %v1264_v16  ;;  %1790 = vmatpush.msra.mxu2 %v1310_v22  ;;  %v4219_v11 = vld [vmem:[%s8763_s6 + $0xa40] sm:$0xff]  ;;  %v4166_v16 = vld [vmem:[%s8763_s6 + $0x898] sm:$0xff]  ;;  %v6593_v22 = vrot.slane %v6061_v1, 2 }
 0x1db   : > { %2050 = vmatpush.msrb.mxu1 %v4172_v17  ;;  %2077 = vmatpush.msrb.mxu0 %v4220_v19  ;;  %v4167_v17 = vld [vmem:[%s8763_s6 + $0x8a0] sm:$0xff] }
 0x1dc   : > { %1813 = vmatpush.msra.mxu3 %v1374_v23  ;;  %4107 = vmatmul.msk.f32.vlgmr.msrb.gmra.mxu2 %vm1501_vm3, %v6149_v60  ;;  %v4215_v19 = vld [vmem:[%s8763_s6 + $0xa20] sm:$0xff]  ;;  %v4116_v23 = vld [vmem:[%s8763_s6 + $0x708] sm:$0xff] }
 0x1dd   : > { %1710 = vmatmul.f32.vlgmr.msrb.gmra.mxu3 %v6053_v6  ;;  %4113 = vmatmul.msk.f32.vlgmr.msra.gmra.mxu1 %vm1501_vm3, %v6149_v60 }
 0x1de   : > { %2051 = vmatpush.msrb.mxu1 %v4168_v15  ;;  %2078 = vmatpush.msrb.mxu0 %v4216_v21  ;;  %v1991_v15 = vrot.slane %v6053_v6, 2  ;;  %v4162_v21 = vld [vmem:[%s8763_s6 + $0x878] sm:$0xff] }
 0x1df   : > { %1791 = vmatpush.msra.mxu2 %v1306_v46  ;;  %1814 = vmatpush.msra.mxu3 %v1370_v56  ;;  %v4226_v46 = vld [vmem:[%s8763_s6 + $0xa78] sm:$0xff]  ;;  %v4163_v56 = vld [vmem:[%s8763_s6 + $0x880] sm:$0xff] }
 0x1e0   : > { %2052 = vmatpush.msrb.mxu1 %v4164_v24  ;;  %2079 = vmatpush.msrb.mxu0 %v4212_v25  ;;  %v6610_v24 = vsel %vm585_vm1, %v1991_v15, %v6593_v22  ;;  %v4211_v25 = vld [vmem:[%s8763_s6 + $0xa00] sm:$0xff]  ;;  %v4217_v15 = vld [vmem:[%s8763_s6 + $0xa30] sm:$0xff] }
 0x1e1   : > { %1792 = vmatpush.msra.mxu2 %v1302_v2  ;;  %1815 = vmatpush.msra.mxu3 %v1366_v14  ;;  %v4158_v2 = vld [vmem:[%s8763_s6 + $0x858] sm:$0xff] }
 0x1e2   : > { %1851 = vmatmul.f32.gmra.mxu0 %v6061_v1  ;;  %2053 = vmatpush.msrb.mxu1 %v4160_v28  ;;  %v4222_v14 = vld [vmem:[%s8763_s6 + $0xa58] sm:$0xff]  ;;  %v4207_v28 = vld [vmem:[%s8763_s6 + $0x9e0] sm:$0xff] }
 0x1e3   : > { %2080 = vmatpush.msrb.mxu0 %v4208_v29  ;;  %1793 = vmatpush.msra.mxu2 %v1298_v7  ;;  %v4159_v29 = vld [vmem:[%s8763_s6 + $0x860] sm:$0xff]  ;;  %v4154_v7 = vld [vmem:[%s8763_s6 + $0x838] sm:$0xff] }
 0x1e4   : > { %1816 = vmatpush.msra.mxu3 %v1362_v30  ;;  %2054 = vmatpush.msrb.mxu1 %v4156_v31  ;;  %v4218_v30 = vld [vmem:[%s8763_s6 + $0xa38] sm:$0xff]  ;;  %v4203_v31 = vld [vmem:[%s8763_s6 + $0x9c0] sm:$0xff] }
 0x1e5   : > { %2081 = vmatpush.msrb.mxu0 %v4204_v32  ;;  %1794 = vmatpush.msra.mxu2 %v1294_v33  ;;  %v4155_v32 = vld [vmem:[%s8763_s6 + $0x840] sm:$0xff]  ;;  %v4150_v33 = vld [vmem:[%s8763_s6 + $0x818] sm:$0xff] }
 0x1e6   : > { %1817 = vmatpush.msra.mxu3 %v1358_v12  ;;  %4108 = vmatmul.msk.f32.gmra.mxu2 %vm1501_vm3, %v6157_v0  ;;  %v4214_v12 = vld [vmem:[%s8763_s6 + $0xa18] sm:$0xff] }
 0x1e7   : > { %1713 = vmatmul.f32.gmra.mxu3 %v6061_v1  ;;  %4114 = vmatmul.msk.f32.gmra.mxu1 %vm1501_vm3, %v6157_v0 }
 0x1e8   : > { %2055 = vmatpush.msrb.mxu1 %v4152_v61  ;;  %2082 = vmatpush.msrb.mxu0 %v4200_v34  ;;  %v4199_v61 = vld [vmem:[%s8763_s6 + $0x9a0] sm:$0xff] }
 0x1e9   : > { %1795 = vmatpush.msra.mxu2 %v1290_v35  ;;  %1818 = vmatpush.msra.mxu3 %v1354_v36  ;;  %v4151_v34 = vld [vmem:[%s8763_s6 + $0x820] sm:$0xff]  ;;  %v4146_v35 = vld [vmem:[%s8763_s6 + $0x7f8] sm:$0xff] }
 0x1ea   : > { %2056 = vmatpush.msrb.mxu1 %v4148_v26  ;;  %2083 = vmatpush.msrb.mxu0 %v4196_v37  ;;  %v4210_v36 = vld [vmem:[%s8763_s6 + $0x9f8] sm:$0xff]  ;;  %v4147_v26 = vld [vmem:[%s8763_s6 + $0x800] sm:$0xff] }
 0x1eb   : > { %1796 = vmatpush.msra.mxu2 %v1286_v38  ;;  %1819 = vmatpush.msra.mxu3 %v1350_v39  ;;  %v4195_v37 = vld [vmem:[%s8763_s6 + $0x980] sm:$0xff]  ;;  %v4142_v38 = vld [vmem:[%s8763_s6 + $0x7d8] sm:$0xff] }
 0x1ec   : > { %2057 = vmatpush.msrb.mxu1 %v4144_v40  ;;  %2084 = vmatpush.msrb.mxu0 %v4192_v27  ;;  %v4206_v39 = vld [vmem:[%s8763_s6 + $0x9d8] sm:$0xff]  ;;  %v4143_v40 = vld [vmem:[%s8763_s6 + $0x7e0] sm:$0xff] }
 0x1ed   : > { %1797 = vmatpush.msra.mxu2 %v1282_v41  ;;  %1820 = vmatpush.msra.mxu3 %v1346_v42  ;;  %v4191_v27 = vld [vmem:[%s8763_s6 + $0x960] sm:$0xff]  ;;  %v4138_v41 = vld [vmem:[%s8763_s6 + $0x7b8] sm:$0xff] }
 0x1ee   : > { %2058 = vmatpush.msrb.mxu1 %v4140_v43  ;;  %2085 = vmatpush.msrb.mxu0 %v4188_v44  ;;  %v4202_v42 = vld [vmem:[%s8763_s6 + $0x9b8] sm:$0xff]  ;;  %v4139_v43 = vld [vmem:[%s8763_s6 + $0x7c0] sm:$0xff] }
 0x1ef   : > { %1798 = vmatpush.msra.mxu2 %v1278_v45  ;;  %1821 = vmatpush.msra.mxu3 %v1342_v47  ;;  %v4187_v44 = vld [vmem:[%s8763_s6 + $0x940] sm:$0xff]  ;;  %v4134_v45 = vld [vmem:[%s8763_s6 + $0x798] sm:$0xff] }
 0x1f0   : > { %2059 = vmatpush.msrb.mxu1 %v4136_v18  ;;  %2086 = vmatpush.msrb.mxu0 %v4184_v48  ;;  %v4198_v47 = vld [vmem:[%s8763_s6 + $0x998] sm:$0xff]  ;;  %v4135_v18 = vld [vmem:[%s8763_s6 + $0x7a0] sm:$0xff] }
 0x1f1   : > { %1799 = vmatpush.msra.mxu2 %v1274_v49  ;;  %1822 = vmatpush.msra.mxu3 %v1338_v51  ;;  %v4183_v48 = vld [vmem:[%s8763_s6 + $0x920] sm:$0xff]  ;;  %v4130_v49 = vld [vmem:[%s8763_s6 + $0x778] sm:$0xff] }
 0x1f2   : > { %2060 = vmatpush.msrb.mxu1 %v4132_v52  ;;  %2087 = vmatpush.msrb.mxu0 %v4180_v20  ;;  %v4194_v51 = vld [vmem:[%s8763_s6 + $0x978] sm:$0xff]  ;;  %v4131_v52 = vld [vmem:[%s8763_s6 + $0x780] sm:$0xff] }
 0x1f3   : > { %1800 = vmatpush.msra.mxu2 %v1270_v55  ;;  %1823 = vmatpush.msra.mxu3 %v1334_v57  ;;  %v4179_v20 = vld [vmem:[%s8763_s6 + $0x900] sm:$0xff]  ;;  %v4177_v55 = vld [vmem:[%s8763_s6 + $0x8f0] sm:$0xff]  ;;  %v4190_v57 = vld [vmem:[%s8763_s6 + $0x958] sm:$0xff] }
 0x1f4   : > { %4229 = vmatmul.msk.f32.vlgmr.msrb.gmra.mxu0 %vm1501_vm3, %v6549_v63  ;;  %2061 = vmatpush.msrb.mxu1 %v4128_v58  ;;  %v4127_v58 = vld [vmem:[%s8763_s6 + $0x760] sm:$0xff] }
 0x1f5   : > { %2141 = vmatpush.msra.mxu0 %v4178_v59  ;;  %1801 = vmatpush.msra.mxu2 %v1266_v62  ;;  %v4122_v59 = vld [vmem:[%s8763_s6 + $0x738] sm:$0xff]  ;;  %v4173_v62 = vld [vmem:[%s8763_s6 + $0x8d0] sm:$0xff] }
 0x1f6   : > { %1824 = vmatpush.msra.mxu3 %v1330_v3  ;;  %1802 = vmatmul.f32.vlgmr.msra.gmra.mxu2 %v6053_v6  ;;  %v4186_v3 = vld [vmem:[%s8763_s6 + $0x938] sm:$0xff] }
 0x1f7   : > { %2142 = vmatpush.msra.mxu0 %v4174_v4  ;;  %4111 = vmatmul.msk.f32.vlgmr.msra.gmra.mxu3 %vm1501_vm3, %v6149_v60  ;;  %v4123_v4 = vld [vmem:[%s8763_s6 + $0x740] sm:$0xff] }
 0x1f8   : > { %2003 = vmatpush.msrb.mxu3 %v4175_v5  ;;  %2030 = vmatpush.msrb.mxu2 %v4223_v50  ;;  %v4118_v5 = vld [vmem:[%s8763_s6 + $0x718] sm:$0xff]  ;;  %v4169_v50 = vld [vmem:[%s8763_s6 + $0x8b0] sm:$0xff] }
 0x1f9   : > { %2062 = vmatpush.msrb.mxu1 %v4124_v8  ;;  %2143 = vmatpush.msra.mxu0 %v4170_v9  ;;  %v4182_v8 = vld [vmem:[%s8763_s6 + $0x918] sm:$0xff]  ;;  %v4119_v9 = vld [vmem:[%s8763_s6 + $0x720] sm:$0xff] }
 0x1fa   : > { %2004 = vmatpush.msrb.mxu3 %v4171_v10  ;;  %2031 = vmatpush.msrb.mxu2 %v4219_v11  ;;  %v4165_v10 = vld [vmem:[%s8763_s6 + $0x890] sm:$0xff]  ;;  %v4115_v11 = vld [vmem:[%s8763_s6 + $0x700] sm:$0xff] }
 0x1fb   : > { %2063 = vmatpush.msrb.mxu1 %v4120_v13  ;;  %2144 = vmatpush.msra.mxu0 %v4166_v16  ;;  %v4161_v13 = vld [vmem:[%s8763_s6 + $0x870] sm:$0xff] }
 0x1fc   : > { %2005 = vmatpush.msrb.mxu3 %v4167_v17  ;;  %2032 = vmatpush.msrb.mxu2 %v4215_v19  ;;  %v4225_v16 = vld [vmem:[%s8763_s6 + $0xa70] sm:$0xff] }
 0x1fd   : > { %2064 = vmatpush.msrb.mxu1 %v4116_v23  ;;  %4230 = vmatmul.msk.f32.gmra.mxu0 %vm1501_vm3, %v6530_v54  ;;  %v4157_v17 = vld [vmem:[%s8763_s6 + $0x850] sm:$0xff] }
 0x1fe   : > { %2065 = vmatmul.f32.vlgmr.msrb.gmra.mxu1 %v6610_v24  ;;  %2145 = vmatpush.msra.mxu0 %v4162_v21  ;;  %v4221_v19 = vld [vmem:[%s8763_s6 + $0xa50] sm:$0xff] }
 0x1ff   : > { %2168 = vmatpush.msra.mxu1 %v4226_v46  ;;  %2006 = vmatpush.msrb.mxu3 %v4163_v56  ;;  %v4153_v23 = vld [vmem:[%s8763_s6 + $0x830] sm:$0xff] }
 0x200   : > { %2033 = vmatpush.msrb.mxu2 %v4211_v25  ;;  %2146 = vmatpush.msra.mxu0 %v4158_v2  ;;  %v4149_v46 = vld [vmem:[%s8763_s6 + $0x810] sm:$0xff] }
 0x201   : > { %2169 = vmatpush.msra.mxu1 %v4222_v14  ;;  %1805 = vmatmul.f32.gmra.mxu2 %v6061_v1  ;;  %v4213_v56 = vld [vmem:[%s8763_s6 + $0xa10] sm:$0xff] }
 0x202   : > { %4112 = vmatmul.msk.f32.gmra.mxu3 %vm1501_vm3, %v6157_v0  ;;  %2034 = vmatpush.msrb.mxu2 %v4207_v28  ;;  %v4145_v2 = vld [vmem:[%s8763_s6 + $0x7f0] sm:$0xff] }
 0x203   : > { %2007 = vmatpush.msrb.mxu3 %v4159_v29  ;;  %2147 = vmatpush.msra.mxu0 %v4154_v7  ;;  %v4209_v14 = vld [vmem:[%s8763_s6 + $0x9f0] sm:$0xff] }
 0x204   : > { %2170 = vmatpush.msra.mxu1 %v4218_v30  ;;  %2035 = vmatpush.msrb.mxu2 %v4203_v31  ;;  %v4141_v28 = vld [vmem:[%s8763_s6 + $0x7d0] sm:$0xff] }
 0x205   : > { %2008 = vmatpush.msrb.mxu3 %v4155_v32  ;;  %2148 = vmatpush.msra.mxu0 %v4150_v33  ;;  %v4205_v29 = vld [vmem:[%s8763_s6 + $0x9d0] sm:$0xff] }
 0x206   : > { %2171 = vmatpush.msra.mxu1 %v4214_v12  ;;  %2036 = vmatpush.msrb.mxu2 %v4199_v61  ;;  %v4137_v7 = vld [vmem:[%s8763_s6 + $0x7b0] sm:$0xff] }
 0x207   : > { %2009 = vmatpush.msrb.mxu3 %v4151_v34  ;;  %2068 = vmatmul.f32.gmra.mxu1 %v6593_v22  ;;  %v4201_v30 = vld [vmem:[%s8763_s6 + $0x9b0] sm:$0xff] }
 0x208   : > { %2149 = vmatpush.msra.mxu0 %v4146_v35  ;;  %2172 = vmatpush.msra.mxu1 %v4210_v36  ;;  %v4133_v31 = vld [vmem:[%s8763_s6 + $0x790] sm:$0xff] }
 0x209   : > { %2010 = vmatpush.msrb.mxu3 %v4147_v26  ;;  %2037 = vmatpush.msrb.mxu2 %v4195_v37  ;;  %v4197_v32 = vld [vmem:[%s8763_s6 + $0x990] sm:$0xff] }
 0x20a   : > { %2150 = vmatpush.msra.mxu0 %v4142_v38  ;;  %2173 = vmatpush.msra.mxu1 %v4206_v39  ;;  %v4129_v12 = vld [vmem:[%s8763_s6 + $0x770] sm:$0xff] }
 0x20b   : > { %2011 = vmatpush.msrb.mxu3 %v4143_v40  ;;  %2038 = vmatpush.msrb.mxu2 %v4191_v27  ;;  %v4193_v61 = vld [vmem:[%s8763_s6 + $0x970] sm:$0xff] }
 0x20c   : > { %2151 = vmatpush.msra.mxu0 %v4138_v41  ;;  %2174 = vmatpush.msra.mxu1 %v4202_v42  ;;  %v4125_v35 = vld [vmem:[%s8763_s6 + $0x750] sm:$0xff] }
 0x20d   : > { %2012 = vmatpush.msrb.mxu3 %v4139_v43  ;;  %2039 = vmatpush.msrb.mxu2 %v4187_v44  ;;  %v4189_v36 = vld [vmem:[%s8763_s6 + $0x950] sm:$0xff] }
 0x20e   : > { %2152 = vmatpush.msra.mxu0 %v4134_v45  ;;  %2175 = vmatpush.msra.mxu1 %v4198_v47  ;;  %v4121_v26 = vld [vmem:[%s8763_s6 + $0x730] sm:$0xff] }
 0x20f   : > { %2013 = vmatpush.msrb.mxu3 %v4135_v18  ;;  %2040 = vmatpush.msrb.mxu2 %v4183_v48  ;;  %v4185_v37 = vld [vmem:[%s8763_s6 + $0x930] sm:$0xff] }
 0x210   : > { %2153 = vmatpush.msra.mxu0 %v4130_v49  ;;  %2176 = vmatpush.msra.mxu1 %v4194_v51  ;;  %v4117_v38 = vld [vmem:[%s8763_s6 + $0x710] sm:$0xff]  ;;  %v4328_v51 = vld [vmem:[%s8765_s8 + $0x7c8] sm:$0xff] }
 0x211   : > { %2014 = vmatpush.msrb.mxu3 %v4131_v52  ;;  %2041 = vmatpush.msrb.mxu2 %v4179_v20  ;;  %v4181_v39 = vld [vmem:[%s8763_s6 + $0x910] sm:$0xff] }
 0x212   : > { %4227 = vmatmul.msk.f32.vlgmr.msrb.gmra.mxu2 %vm1501_vm3, %v6549_v63  ;;  %2154 = vmatpush.msra.mxu0 %v4126_v53  ;;  %v4325_v52 = vld [vmem:[%s8765_s8 + $0x7b0] sm:$0xff]  ;;  %v4278_v53 = vld [vmem:[%s8765_s8 + $0x638] sm:$0xff] }
 0x213   : > { %2095 = vmatpush.msra.mxu2 %v4177_v55  ;;  %2177 = vmatpush.msra.mxu1 %v4190_v57  ;;  %v4277_v20 = vld [vmem:[%s8765_s8 + $0x630] sm:$0xff]  ;;  %v4322_v55 = vld [vmem:[%s8765_s8 + $0x798] sm:$0xff] }
 0x214   : > { %2015 = vmatpush.msrb.mxu3 %v4127_v58  ;;  %2155 = vmatpush.msra.mxu0 %v4122_v59  ;;  %v4274_v57 = vld [vmem:[%s8765_s8 + $0x618] sm:$0xff]  ;;  %v4275_v58 = vld [vmem:[%s8765_s8 + $0x620] sm:$0xff] }
 0x215   : > { %2096 = vmatpush.msra.mxu2 %v4173_v62  ;;  %2178 = vmatpush.msra.mxu1 %v4186_v3  ;;  %v6786_v21 = vpop.f32.mrf.mxu0  ;;  %v6794_v25 = vpop.f32.mrf.mxu1  ;;  %v4319_v59 = vld [vmem:[%s8765_s8 + $0x780] sm:$0xff]  ;;  %v4272_v3 = vld [vmem:[%s8765_s8 + $0x608] sm:$0xff] }
 0x216   : > { %2016 = vmatpush.msrb.mxu3 %v4123_v4  ;;  %2156 = vmatpush.msra.mxu0 %v4118_v5  ;;  %v4271_v62 = vld [vmem:[%s8765_s8 + $0x600] sm:$0xff]  ;;  %v4316_v4 = vld [vmem:[%s8765_s8 + $0x768] sm:$0xff] }
 0x217   : > { %2097 = vmatpush.msra.mxu2 %v4169_v50  ;;  %2179 = vmatpush.msra.mxu1 %v4182_v8  ;;  %v4268_v8 = vld [vmem:[%s8765_s8 + $0x5e8] sm:$0xff] }
 0x218   : > { %2017 = vmatpush.msrb.mxu3 %v4119_v9  ;;  %2157 = vmatmul.f32.vlgmr.msra.gmra.mxu0 %v6610_v24  ;;  %v4269_v9 = vld [vmem:[%s8765_s8 + $0x5f0] sm:$0xff] }
 0x219   : > { %4233 = vmatmul.msk.f32.vlgmr.msra.gmra.mxu1 %vm1501_vm3, %v6549_v63  ;;  %2098 = vmatpush.msra.mxu2 %v4165_v10 }
 0x21a   : > { %2018 = vmatpush.msrb.mxu3 %v4115_v11  ;;  %4228 = vmatmul.msk.f32.gmra.mxu2 %vm1501_vm3, %v6530_v54 }
 0x21b   : > { %2019 = vmatmul.f32.vlgmr.msrb.gmra.mxu3 %v6610_v24  ;;  %2099 = vmatpush.msra.mxu2 %v4161_v13  ;;  %v4313_v13 = vld [vmem:[%s8765_s8 + $0x750] sm:$0xff] }
 0x21c   : > { %2122 = vmatpush.msra.mxu3 %v4225_v16 }
 0x21d   : > { %2100 = vmatpush.msra.mxu2 %v4157_v17  ;;  %v6824_v33 = vpop.f32.mrf.mxu0  ;;  %v6832_v34 = vpop.f32.mrf.mxu1  ;;  %v4265_v17 = vld [vmem:[%s8765_s8 + $0x5d0] sm:$0xff] }
 0x21e   : > { %2123 = vmatpush.msra.mxu3 %v4221_v19  ;;  %v4266_v19 = vld [vmem:[%s8765_s8 + $0x5d8] sm:$0xff] }
 0x21f   : > { %2101 = vmatpush.msra.mxu2 %v4153_v23 }
 0x220   : > { %2124 = vmatpush.msra.mxu3 %v4217_v15  ;;  %2160 = vmatmul.f32.gmra.mxu0 %v6593_v22  ;;  %v4310_v15 = vld [vmem:[%s8765_s8 + $0x738] sm:$0xff] }
 0x221   : > { %4234 = vmatmul.msk.f32.gmra.mxu1 %vm1501_vm3, %v6530_v54  ;;  %2102 = vmatpush.msra.mxu2 %v4149_v46 }
 0x222   : > { %2125 = vmatpush.msra.mxu3 %v4213_v56  ;;  %v4262_v56 = vld [vmem:[%s8765_s8 + $0x5b8] sm:$0xff] }
 0x223   : > { %2022 = vmatmul.f32.gmra.mxu3 %v6593_v22  ;;  %2103 = vmatpush.msra.mxu2 %v4145_v2  ;;  %v4263_v2 = vld [vmem:[%s8765_s8 + $0x5c0] sm:$0xff] }
 0x224   : > { %2126 = vmatpush.msra.mxu3 %v4209_v14  ;;  %v4307_v14 = vld [vmem:[%s8765_s8 + $0x720] sm:$0xff] }
 0x225   : > { %2104 = vmatpush.msra.mxu2 %v4141_v28  ;;  %v1661_v40 = vpop.f32.mrf.mxu0  ;;  %v4259_v28 = vld [vmem:[%s8765_s8 + $0x5a0] sm:$0xff] }
 0x226   : > { %2127 = vmatpush.msra.mxu3 %v4205_v29  ;;  %v4260_v29 = vld [vmem:[%s8765_s8 + $0x5a8] sm:$0xff] }
 0x227   : > { %2105 = vmatpush.msra.mxu2 %v4137_v7  ;;  %v4304_v7 = vld [vmem:[%s8765_s8 + $0x708] sm:$0xff] }
 0x228   : > { %2128 = vmatpush.msra.mxu3 %v4201_v30  ;;  %v4256_v30 = vld [vmem:[%s8765_s8 + $0x588] sm:$0xff] }
 0x229   : > { %2106 = vmatpush.msra.mxu2 %v4133_v31  ;;  %v4257_v31 = vld [vmem:[%s8765_s8 + $0x590] sm:$0xff] }
 0x22a   : > { %2129 = vmatpush.msra.mxu3 %v4197_v32  ;;  %v4301_v32 = vld [vmem:[%s8765_s8 + $0x6f0] sm:$0xff] }
 0x22b   : > { %2107 = vmatpush.msra.mxu2 %v4129_v12  ;;  %v4253_v12 = vld [vmem:[%s8765_s8 + $0x570] sm:$0xff] }
 0x22c   : > { %2130 = vmatpush.msra.mxu3 %v4193_v61  ;;  %v4254_v61 = vld [vmem:[%s8765_s8 + $0x578] sm:$0xff] }
 0x22d   : > { %2108 = vmatpush.msra.mxu2 %v4125_v35  ;;  %v1664_v44 = vpop.f32.mrf.mxu0  ;;  %v4298_v35 = vld [vmem:[%s8765_s8 + $0x6d8] sm:$0xff] }
 0x22e   : > { %2131 = vmatpush.msra.mxu3 %v4189_v36 }
 0x22f   : > { %2109 = vmatpush.msra.mxu2 %v4121_v26  ;;  %v4250_v26 = vld [vmem:[%s8765_s8 + $0x558] sm:$0xff] }
 0x230   : > { %2132 = vmatpush.msra.mxu3 %v4185_v37  ;;  %v4251_v37 = vld [vmem:[%s8765_s8 + $0x560] sm:$0xff] }
 0x231   : > { %2110 = vmatpush.msra.mxu2 %v4117_v38  ;;  %v1684_v27 = vpop.f32.mrf.mxu1 }
 0x232   : > { %2133 = vmatpush.msra.mxu3 %v4181_v39  ;;  %2111 = vmatmul.f32.vlgmr.msra.gmra.mxu2 %v6610_v24  ;;  %v6853_v41 = vadd.f32 %v1684_v27, %v1661_v40  ;;  %v4295_v39 = vld [vmem:[%s8765_s8 + $0x6c0] sm:$0xff]  ;;  %v4248_v27 = vld [vmem:[%s8765_s8 + $0x548] sm:$0xff] }
 0x233   : > { %4231 = vmatmul.msk.f32.vlgmr.msra.gmra.mxu3 %vm1501_vm3, %v6549_v63  ;;  %2580 = vmatpush.msrb.mxu2 %v4328_v51  ;;  %v4247_v40 = vld [vmem:[%s8765_s8 + $0x540] sm:$0xff]  ;;  %v4241_v51 = vld [vmem:[%s8765_s8 + $0x510] sm:$0xff] }
 0x235   : > { %2581 = vmatpush.msrb.mxu2 %v4325_v52  ;;  %v4238_v52 = vld [vmem:[%s8765_s8 + $0x4f8] sm:$0xff] }
 0x236   : > { %v6857_v42 = vpop.f32.mrf.mxu2 }
 0x237   : > { %v6859_v43 = vpop.f32.mrf.mxu3  ;;  %2582 = vmatpush.msrb.mxu2 %v4322_v55  ;;  %v4235_v55 = vld [vmem:[%s8765_s8 + $0x4e0] sm:$0xff] }
 0x239   : > { %2583 = vmatpush.msrb.mxu2 %v4319_v59  ;;  %v6919_v10 = vpop.f32.mrf.mxu0  ;;  %v4330_v59 = vld [vmem:[%s8765_s8 + $0x7d8] sm:$0xff] }
 0x23a   : > { %2114 = vmatmul.f32.gmra.mxu2 %v6593_v22  ;;  %v4281_v22 = vld [vmem:[%s8765_s8 + $0x650] sm:$0xff] }
 0x23b   : > { %4232 = vmatmul.msk.f32.gmra.mxu3 %vm1501_vm3, %v6530_v54  ;;  %v4280_v54 = vld [vmem:[%s8765_s8 + $0x648] sm:$0xff]  ;;  %2640 = vmatpush.msrb.mxu0 %v4281_v22  ;;  %v4286_v22 = vld [vmem:[%s8765_s8 + $0x678] sm:$0xff] }
 0x23c   : > { %v1687_v45 = vpop.f32.mrf.mxu1  ;;  %2560 = vmatpush.msrb.mxu3 %v4280_v54  ;;  %2584 = vmatpush.msrb.mxu2 %v4316_v4  ;;  %v4242_v54 = vld [vmem:[%s8765_s8 + $0x518] sm:$0xff] }
 0x23d   : > { %v6864_v47 = vadd.f32 %v1687_v45, %v1664_v44  ;;  %2641 = vmatpush.msrb.mxu0 %v4278_v53  ;;  %v4292_v44 = vld [vmem:[%s8765_s8 + $0x6a8] sm:$0xff]  ;;  %v4283_v53 = vld [vmem:[%s8765_s8 + $0x660] sm:$0xff]  ;;  %v4326_v4 = vld [vmem:[%s8765_s8 + $0x7b8] sm:$0xff] }
 0x23e   : > { %2561 = vmatpush.msrb.mxu3 %v4277_v20  ;;  %2585 = vmatpush.msrb.mxu2 %v4313_v13  ;;  %v4244_v45 = vld [vmem:[%s8765_s8 + $0x528] sm:$0xff]  ;;  %v4239_v20 = vld [vmem:[%s8765_s8 + $0x500] sm:$0xff]  ;;  %v1593_v13 = vadd.f32 %v6859_v43, %v6794_v25  ;;  %v4317_v25 = vld [vmem:[%s8765_s8 + $0x770] sm:$0xff] }
 0x23f   : > { %2642 = vmatpush.msrb.mxu0 %v4275_v58  ;;  %v4329_v58 = vld [vmem:[%s8765_s8 + $0x7d0] sm:$0xff]  ;;  %v4318_v43 = vld [vmem:[%s8765_s8 + $0x778] sm:$0xff] }
 0x240   : > { %v6866_v18 = vpop.f32.mrf.mxu2  ;;  %2562 = vmatpush.msrb.mxu3 %v4274_v57  ;;  %2586 = vmatpush.msrb.mxu2 %v4310_v15  ;;  %v4236_v57 = vld [vmem:[%s8765_s8 + $0x4e8] sm:$0xff]  ;;  %v4321_v15 = vld [vmem:[%s8765_s8 + $0x790] sm:$0xff] }
 0x241   : > { %v6868_v24 = vpop.f32.mrf.mxu3  ;;  %2643 = vmatpush.msrb.mxu0 %v4272_v3 }
 0x242   : > { %2563 = vmatpush.msrb.mxu3 %v4271_v62  ;;  %2587 = vmatpush.msrb.mxu2 %v4307_v14 }
 0x243   : > { %2644 = vmatpush.msrb.mxu0 %v4269_v9  ;;  %v6937_v46 = vpop.f32.mrf.mxu0  ;;  %v4324_v9 = vld [vmem:[%s8765_s8 + $0x7a8] sm:$0xff] }
 0x244   : > { %2564 = vmatpush.msrb.mxu3 %v4268_v8  ;;  %2588 = vmatpush.msrb.mxu2 %v4304_v7  ;;  %v4323_v8 = vld [vmem:[%s8765_s8 + $0x7a0] sm:$0xff] }
 0x245   : > { %2645 = vmatpush.msrb.mxu0 %v4266_v19  ;;  %v4320_v19 = vld [vmem:[%s8765_s8 + $0x788] sm:$0xff]  ;;  %v4315_v7 = vld [vmem:[%s8765_s8 + $0x760] sm:$0xff] }
 0x246   : > { %2565 = vmatpush.msrb.mxu3 %v4265_v17  ;;  %2589 = vmatpush.msrb.mxu2 %v4301_v32  ;;  %v1596_v32 = vadd.f32 %v6868_v24, %v6832_v34 }
 0x247   : > { %v6911_v5 = vpop.f32.mrf.mxu1  ;;  %2646 = vmatpush.msrb.mxu0 %v4263_v2 }
 0x248   : > { %2566 = vmatpush.msrb.mxu3 %v4262_v56  ;;  %2590 = vmatpush.msrb.mxu2 %v4298_v35  ;;  %v1758_v2 = vadd.f32 %v6911_v5, %v1593_v13  ;;  %v4314_v5 = vld [vmem:[%s8765_s8 + $0x758] sm:$0xff]  ;;  %v4312_v35 = vld [vmem:[%s8765_s8 + $0x748] sm:$0xff] }
 0x249   : > { %2647 = vmatpush.msrb.mxu0 %v4260_v29 }
 0x24a   : > { %2567 = vmatpush.msrb.mxu3 %v4259_v28  ;;  %2591 = vmatpush.msrb.mxu2 %v4295_v39  ;;  %v4388_v28 = vld [vmem:[%s8765_s8 + $0x9a8] sm:$0xff]  ;;  %v4309_v39 = vld [vmem:[%s8765_s8 + $0x730] sm:$0xff] }
 0x24b   : > { %v1615_v48 = vpop.f32.mrf.mxu2  ;;  %v1638_v49 = vpop.f32.mrf.mxu3  ;;  %2648 = vmatpush.msrb.mxu0 %v4257_v31  ;;  %v4385_v31 = vld [vmem:[%s8765_s8 + $0x990] sm:$0xff] }
 0x24c   : > { %v6870_v63 = vadd.f32 %v1638_v49, %v1615_v48  ;;  %2568 = vmatpush.msrb.mxu3 %v4256_v30  ;;  %2592 = vmatpush.msrb.mxu2 %v4292_v44  ;;  %v4245_v48 = vld [vmem:[%s8765_s8 + $0x530] sm:$0xff]  ;;  %v7083_v30 = vld [vmem:[%s8764_s7] sm:$0xf]  ;;  %v4376_v44 = vld [vmem:[%s8765_s8 + $0x948] sm:$0xff] }
 0x24d   : > { %2649 = vmatpush.msrb.mxu0 %v4254_v61  ;;  %v4289_v49 = vld [vmem:[%s8765_s8 + $0x690] sm:$0xff]  ;;  %v4311_v61 = vld [vmem:[%s8765_s8 + $0x740] sm:$0xff]  ;;  %v2198_v24 = vperm.slane %v7083_v30, 1  ;;  %2600 = vmatpush.msrb.mxu1 %v4376_v44  ;;  %v4368_v44 = vld [vmem:[%s8765_s8 + $0x908] sm:$0xff] }
 0x24e   : > { %2569 = vmatpush.msrb.mxu3 %v4253_v12  ;;  %2593 = vmatpush.msrb.mxu2 %v4289_v49  ;;  %v1781_v12 = vadd.f32 %v6919_v10, %v1758_v2  ;;  %v4308_v10 = vld [vmem:[%s8765_s8 + $0x728] sm:$0xff]  ;;  %v4293_v2 = vld [vmem:[%s8765_s8 + $0x6b0] sm:$0xff] }
 0x24f   : > { %2650 = vmatpush.msrb.mxu0 %v4251_v37 }
 0x250   : > { %v6932_v23 = vpop.f32.mrf.mxu1  ;;  %2570 = vmatpush.msrb.mxu3 %v4250_v26  ;;  %2594 = vmatpush.msrb.mxu2 %v4286_v22  ;;  %v4382_v26 = vld [vmem:[%s8765_s8 + $0x978] sm:$0xff] }
 0x251   : > { %2651 = vmatpush.msrb.mxu0 %v4248_v27  ;;  %v1761_v37 = vadd.f32 %v6932_v23, %v1596_v32  ;;  %v4379_v23 = vld [vmem:[%s8765_s8 + $0x960] sm:$0xff] }
 0x252   : > { %2571 = vmatpush.msrb.mxu3 %v4247_v40  ;;  %2595 = vmatpush.msrb.mxu2 %v4283_v53  ;;  %v4302_v53 = vld [vmem:[%s8765_s8 + $0x6f8] sm:$0xff] }
 0x253   : > { %2652 = vmatpush.msrb.mxu0 %v4245_v48 }
 0x254   : > { %v1618_v50 = vpop.f32.mrf.mxu2  ;;  %2572 = vmatpush.msrb.mxu3 %v4244_v45  ;;  %2632 = vmatpush.msra.mxu2 %v4388_v28  ;;  %v4305_v45 = vld [vmem:[%s8765_s8 + $0x710] sm:$0xff] }
 0x255   : > { %v1641_v11 = vpop.f32.mrf.mxu3  ;;  %v6975_v36 = vpop.f32.mrf.mxu0  ;;  %2653 = vmatpush.msrb.mxu0 %v4242_v54  ;;  %v1784_v54 = vadd.f32 %v6937_v46, %v1761_v37  ;;  %v4370_v46 = vld [vmem:[%s8765_s8 + $0x918] sm:$0xff]  ;;  %v4355_v37 = vld [vmem:[%s8765_s8 + $0x8a0] sm:$0xff] }
 0x256   : > { %v6924_v16 = vadd.f32 %v1641_v11, %v1618_v50  ;;  %2573 = vmatpush.msrb.mxu3 %v4241_v51  ;;  %v4327_v50 = vld [vmem:[%s8765_s8 + $0x7c0] sm:$0xff]  ;;  %2633 = vmatpush.msra.mxu2 %v4385_v31  ;;  %v4306_v51 = vld [vmem:[%s8765_s8 + $0x718] sm:$0xff] }
 0x257   : > { %2654 = vmatpush.msrb.mxu0 %v4239_v20  ;;  %v4373_v20 = vld [vmem:[%s8765_s8 + $0x930] sm:$0xff]  ;;  %v4291_v31 = vld [vmem:[%s8765_s8 + $0x6a0] sm:$0xff] }
 0x258   : > { %2574 = vmatpush.msrb.mxu3 %v4238_v52  ;;  %2634 = vmatpush.msra.mxu2 %v4382_v26  ;;  %v4288_v26 = vld [vmem:[%s8765_s8 + $0x688] sm:$0xff] }
 0x259   : > { %2655 = vmatpush.msrb.mxu0 %v4236_v57  ;;  %2601 = vmatpush.msrb.mxu1 %v4373_v20  ;;  %v4346_v20 = vld [vmem:[%s8765_s8 + $0x858] sm:$0xff] }
 0x25a   : > { %v6983_v38 = vpop.f32.mrf.mxu1  ;;  %2575 = vmatpush.msrb.mxu3 %v4235_v55  ;;  %2635 = vmatpush.msra.mxu2 %v4379_v23  ;;  %v4303_v55 = vld [vmem:[%s8765_s8 + $0x700] sm:$0xff] }
 0x25b   : > { %2740 = vmatpush.msra.mxu0 %v4330_v59  ;;  %2602 = vmatpush.msrb.mxu1 %v4370_v46  ;;  %v4300_v59 = vld [vmem:[%s8765_s8 + $0x6e8] sm:$0xff] }
 0x25c   : > { %2660 = vmatpush.msra.mxu3 %v4329_v58  ;;  %v4299_v58 = vld [vmem:[%s8765_s8 + $0x6e0] sm:$0xff] }
 0x25d   : > { %2741 = vmatpush.msra.mxu0 %v4327_v50 }
 0x25e   : > { %2661 = vmatpush.msra.mxu3 %v4326_v4 }
 0x25f   : > { %v7036_v62 = vpop.f32.mrf.mxu0  ;;  %v7052_v11 = vpop.f32.mrf.mxu2  ;;  %2742 = vmatpush.msra.mxu0 %v4324_v9  ;;  %v4296_v9 = vld [vmem:[%s8765_s8 + $0x6c8] sm:$0xff] }
 0x260   : > { %2662 = vmatpush.msra.mxu3 %v4323_v8  ;;  %v7056_v17 = vpop.f32.mrf.mxu3  ;;  %v4367_v8 = vld [vmem:[%s8765_s8 + $0x900] sm:$0xff] }
 0x261   : > { %2743 = vmatpush.msra.mxu0 %v4321_v15  ;;  %2603 = vmatpush.msrb.mxu1 %v4367_v8  ;;  %v4356_v8 = vld [vmem:[%s8765_s8 + $0x8a8] sm:$0xff] }
 0x262   : > { %2663 = vmatpush.msra.mxu3 %v4320_v19  ;;  %v4297_v19 = vld [vmem:[%s8765_s8 + $0x6d0] sm:$0xff] }
 0x263   : > { %2744 = vmatpush.msra.mxu0 %v4318_v43 }
 0x264   : > { %v7038_v3 = vpop.f32.mrf.mxu1  ;;  %2664 = vmatpush.msra.mxu3 %v4317_v25  ;;  %v4294_v25 = vld [vmem:[%s8765_s8 + $0x6b8] sm:$0xff] }
 0x265   : > { %2745 = vmatpush.msra.mxu0 %v4315_v7  ;;  %v4377_v7 = vld [vmem:[%s8765_s8 + $0x950] sm:$0xff] }
 0x266   : > { %2665 = vmatpush.msra.mxu3 %v4314_v5  ;;  %v4290_v5 = vld [vmem:[%s8765_s8 + $0x698] sm:$0xff] }
 0x267   : > { %2746 = vmatpush.msra.mxu0 %v4312_v35  ;;  %v4287_v35 = vld [vmem:[%s8765_s8 + $0x680] sm:$0xff] }
 0x268   : > { %2666 = vmatpush.msra.mxu3 %v4311_v61  ;;  %v4358_v61 = vld [vmem:[%s8765_s8 + $0x8b8] sm:$0xff] }
 0x269   : > { %v7108_v40 = vpop.f32.mrf.mxu2  ;;  %2747 = vmatpush.msra.mxu0 %v4309_v39  ;;  %v4352_v39 = vld [vmem:[%s8765_s8 + $0x888] sm:$0xff] }
 0x26a   : > { %2667 = vmatpush.msra.mxu3 %v4308_v10  ;;  %v7113_v27 = vpop.f32.mrf.mxu3  ;;  %v4371_v10 = vld [vmem:[%s8765_s8 + $0x920] sm:$0xff] }
 0x26b   : > { %2748 = vmatpush.msra.mxu0 %v4306_v51 }
 0x26c   : > { %2668 = vmatpush.msra.mxu3 %v4305_v45 }
 0x26d   : > { %2749 = vmatpush.msra.mxu0 %v4303_v55 }
 0x26e   : > { %2669 = vmatpush.msra.mxu3 %v4302_v53  ;;  %v4362_v53 = vld [vmem:[%s8765_s8 + $0x8d8] sm:$0xff] }
 0x26f   : > { %2750 = vmatpush.msra.mxu0 %v4300_v59 }
 0x270   : > { %2670 = vmatpush.msra.mxu3 %v4299_v58  ;;  %v2200_v58 = vperm.slane %v7083_v30, 3 }
 0x271   : > { %v2089_v56 = vpop.f32.mrf.mxu0  ;;  %2751 = vmatpush.msra.mxu0 %v4297_v19 }
 0x272   : > { %2671 = vmatpush.msra.mxu3 %v4296_v9  ;;  %v1853_v9 = vadd.f32 %v7036_v62, %v6864_v47  ;;  %v4334_v62 = vld [vmem:[%s8765_s8 + $0x7f8] sm:$0xff] }
 0x273   : > { %2752 = vmatpush.msra.mxu0 %v4294_v25  ;;  %v4353_v25 = vld [vmem:[%s8765_s8 + $0x890] sm:$0xff] }
 0x274   : > { %2672 = vmatpush.msra.mxu3 %v4293_v2 }
 0x275   : > { %2753 = vmatpush.msra.mxu0 %v4291_v31 }
 0x276   : > { %2673 = vmatpush.msra.mxu3 %v4290_v5  ;;  %v4350_v5 = vld [vmem:[%s8765_s8 + $0x878] sm:$0xff] }
 0x277   : > { %2754 = vmatpush.msra.mxu0 %v4288_v26  ;;  %v2197_v26 = vperm.slane %v7083_v30, 0 }
 0x278   : > { %2674 = vmatpush.msra.mxu3 %v4287_v35 }
 0x279   : > { %v7153_v13 = vpop.f32.mrf.mxu2 }
 0x27a   : > { %v2092_v48 = vpop.f32.mrf.mxu0 }
 0x27b   : > { %v2066_v14 = vpop.f32.mrf.mxu1 }
 0x27c   : > { %v2090_v29 = vadd.f32 %v2089_v56, %v2066_v14  ;;  %v4364_v56 = vld [vmem:[%s8765_s8 + $0x8e8] sm:$0xff]  ;;  %v7165_v14 = vpop.f32.mrf.mxu3 }
 0x27d   : > { %2604 = vmatpush.msrb.mxu1 %v4364_v56 }
 0x27e   : > { %v2188_v34 = vadd.f32 %v2090_v29, %v1781_v12  ;;  %v4361_v29 = vld [vmem:[%s8765_s8 + $0x8d0] sm:$0xff]  ;;  %v4374_v12 = vld [vmem:[%s8765_s8 + $0x938] sm:$0xff] }
 0x27f   : > { %2605 = vmatpush.msrb.mxu1 %v4361_v29 }
 0x280   : > { %v2206_v22 = vadd.f32 %v2198_v24, %v2188_v34  ;;  %v4284_v34 = vld [vmem:[%s8765_s8 + $0x668] sm:$0xff] }
 0x281   : > { %2606 = vmatpush.msrb.mxu1 %v4358_v61  ;;  %2675 = vmatpush.msra.mxu3 %v4284_v34  ;;  %v4347_v61 = vld [vmem:[%s8765_s8 + $0x860] sm:$0xff] }
 0x282   : > { %v7143_v4 = vmax.f32 %v2206_v22, 0.0  ;;  %v1850_v22 = vadd.f32 %v6975_v36, %v6853_v41  ;;  %v4359_v41 = vld [vmem:[%s8765_s8 + $0x8c0] sm:$0xff]  ;;  %v1547_v36 = vadd.f32 %v6857_v42, %v6786_v21  ;;  %v4337_v42 = vld [vmem:[%s8765_s8 + $0x810] sm:$0xff] }
 0x283   : > { %2607 = vmatpush.msrb.mxu1 %v4355_v37  ;;  %v4386_v37 = vld [vmem:[%s8765_s8 + $0x998] sm:$0xff] }
 0x284   : > { %v2069_v49 = vpop.f32.mrf.mxu1  ;;  %v2545_v28 = vrot.slane %v7143_v4, 1  ;;  %v7216_v23 = vpop.f32.mrf.mxu2  ;;  %v1873_v55 = vadd.f32 %v6983_v38, %v1850_v22  ;;  %v4340_v38 = vld [vmem:[%s8765_s8 + $0x828] sm:$0xff]  ;;  %v1712_v19 = vadd.f32 %v7056_v17, %v1547_v36  ;;  %v1550_v17 = vadd.f32 %v6866_v18, %v6824_v33  ;;  %v4389_v33 = vld [vmem:[%s8765_s8 + $0x9b0] sm:$0xff] }
 0x285   : > { %v2093_v52 = vadd.f32 %v2092_v48, %v2069_v49  ;;  %2608 = vmatpush.msrb.mxu1 %v4352_v39  ;;  %v4349_v48 = vld [vmem:[%s8765_s8 + $0x870] sm:$0xff]  ;;  %v7224_v49 = vpop.f32.mrf.mxu3  ;;  %v4332_v36 = vld [vmem:[%s8765_s8 + $0x7e8] sm:$0xff] }
 0x287   : > { %v2192_v57 = vadd.f32 %v2093_v52, %v1784_v54  ;;  %v4365_v54 = vld [vmem:[%s8765_s8 + $0x8f0] sm:$0xff]  ;;  %2609 = vmatpush.msrb.mxu1 %v4349_v48 }
 0x289   : > { %v7145_v50 = vadd.f32 %v2198_v24, %v2192_v57  ;;  %v4285_v24 = vld [vmem:[%s8765_s8 + $0x670] sm:$0xff]  ;;  %2610 = vmatpush.msrb.mxu1 %v4346_v20  ;;  %v4343_v57 = vld [vmem:[%s8765_s8 + $0x840] sm:$0xff] }
 0x28a   : > { %2755 = vmatpush.msra.mxu0 %v4285_v24 }
 0x28b   : > { %v2218_v15 = vmax.f32 %v7145_v50, 0.0  ;;  %2611 = vmatpush.msrb.mxu1 %v4343_v57  ;;  %v2351_v50 = vld [vmem:[%s8765_s8 + $0x410] sm:$0xff] }
 0x28d   : > { %v2546_v43 = vrot.slane %v2218_v15, 1  ;;  %2612 = vmatpush.msrb.mxu1 %v4340_v38 }
 0x28f   : > { %v7186_v32 = vsel %vm454_vm0, %v2545_v28, %v2546_v43  ;;  %2613 = vmatpush.msrb.mxu1 %v4337_v42  ;;  %v1876_v43 = vadd.f32 %v7038_v3, %v1853_v9  ;;  %v4331_v3 = vld [vmem:[%s8765_s8 + $0x7e0] sm:$0xff]  ;;  %v2362_v9 = vld [vmem:[%s8765_s8 + $0x468] sm:$0xff] }
 0x290   : > { %2596 = vmatmul.f32.vlgmr.msrb.gmra.mxu2 %v7186_v32  ;;  %v4375_v42 = vld [vmem:[%s8765_s8 + $0x940] sm:$0xff] }
 0x291   : > { %2680 = vmatpush.msrb.mxu2 %v4377_v7  ;;  %2614 = vmatpush.msrb.mxu1 %v4334_v62  ;;  %v1735_v7 = vadd.f32 %v7052_v11, %v1712_v19 }
 0x293   : > { %2681 = vmatpush.msrb.mxu2 %v4374_v12  ;;  %v1715_v12 = vadd.f32 %v7113_v27, %v1550_v17  ;;  %2615 = vmatpush.msrb.mxu1 %v4331_v3  ;;  %v4344_v27 = vld [vmem:[%s8765_s8 + $0x848] sm:$0xff]  ;;  %v4369_v17 = vld [vmem:[%s8765_s8 + $0x910] sm:$0xff]  ;;  %v4363_v3 = vld [vmem:[%s8765_s8 + $0x8e0] sm:$0xff] }
 0x295   : > { %v2158_v45 = vpop.f32.mrf.mxu0  ;;  %2682 = vmatpush.msrb.mxu2 %v4371_v10  ;;  %v2043_v59 = vpop.f32.mrf.mxu2  ;;  %2712 = vmatpush.msra.mxu1 %v4389_v33  ;;  %v1738_v24 = vadd.f32 %v7108_v40, %v1715_v12  ;;  %v4380_v40 = vld [vmem:[%s8765_s8 + $0x968] sm:$0xff]  ;;  %v2347_v12 = vld [vmem:[%s8765_s8 + $0x3f0] sm:$0xff] }
 0x296   : > { %v2181_v51 = vpop.f32.mrf.mxu1 }
 0x297   : > { %v2182_v52 = vadd.f32 %v2181_v51, %v2158_v45  ;;  %2683 = vmatpush.msrb.mxu2 %v4368_v44  ;;  %2713 = vmatpush.msra.mxu1 %v4386_v37  ;;  %v4341_v44 = vld [vmem:[%s8765_s8 + $0x830] sm:$0xff]  ;;  %v4383_v45 = vld [vmem:[%s8765_s8 + $0x980] sm:$0xff] }
 0x299   : > { %2684 = vmatpush.msrb.mxu2 %v4365_v54  ;;  %v2190_v46 = vadd.f32 %v2182_v52, %v1873_v55  ;;  %2714 = vmatpush.msra.mxu1 %v4383_v45  ;;  %v4338_v52 = vld [vmem:[%s8765_s8 + $0x818] sm:$0xff]  ;;  %v4335_v55 = vld [vmem:[%s8765_s8 + $0x800] sm:$0xff] }
 0x29a   : > { %v4351_v45 = vld [vmem:[%s8765_s8 + $0x880] sm:$0xff] }
 0x29b   : > { %2685 = vmatpush.msrb.mxu2 %v4362_v53  ;;  %v2208_v28 = vadd.f32 %v2200_v58, %v2190_v46  ;;  %2715 = vmatpush.msra.mxu1 %v4380_v40 }
 0x29d   : > { %v2161_v21 = vpop.f32.mrf.mxu0  ;;  %2686 = vmatpush.msrb.mxu2 %v4359_v41  ;;  %v7282_v18 = vmax.f32 %v2208_v28, 0.0  ;;  %v2046_v10 = vpop.f32.mrf.mxu2  ;;  %v1804_v28 = vadd.f32 %v7153_v13, %v6870_v63  ;;  %v4366_v63 = vld [vmem:[%s8765_s8 + $0x8f8] sm:$0xff]  ;;  %v2350_v13 = vld [vmem:[%s8765_s8 + $0x408] sm:$0xff] }
 0x29e   : > { %v2184_v56 = vpop.f32.mrf.mxu1  ;;  %v2020_v2 = vpop.f32.mrf.mxu3 }
 0x29f   : > { %v2185_v29 = vadd.f32 %v2184_v56, %v2161_v21  ;;  %v2044_v47 = vadd.f32 %v2043_v59, %v2020_v2  ;;  %2687 = vmatpush.msrb.mxu2 %v4356_v8  ;;  %v2551_v22 = vrot.slane %v7282_v18, 1  ;;  %v4378_v8 = vld [vmem:[%s8765_s8 + $0x958] sm:$0xff]  ;;  %v4387_v21 = vld [vmem:[%s8765_s8 + $0x9a0] sm:$0xff]  ;;  %v2359_v56 = vld [vmem:[%s8765_s8 + $0x450] sm:$0xff] }
 0x2a0   : > { %v4384_v2 = vld [vmem:[%s8765_s8 + $0x988] sm:$0xff] }
 0x2a1   : > { %v2194_v31 = vadd.f32 %v2185_v29, %v1876_v43  ;;  %2688 = vmatpush.msrb.mxu2 %v4353_v25  ;;  %v2187_v35 = vadd.f32 %v2044_v47, %v1735_v7  ;;  %v4372_v25 = vld [vmem:[%s8765_s8 + $0x928] sm:$0xff]  ;;  %v2356_v43 = vld [vmem:[%s8765_s8 + $0x438] sm:$0xff]  ;;  %v4381_v47 = vld [vmem:[%s8765_s8 + $0x970] sm:$0xff] }
 0x2a3   : > { %v7284_v11 = vadd.f32 %v2200_v58, %v2194_v31  ;;  %2689 = vmatpush.msrb.mxu2 %v4350_v5  ;;  %v2205_v51 = vadd.f32 %v2197_v26, %v2187_v35  ;;  %v4390_v58 = vld [vmem:[%s8765_s8 + $0x9b8] sm:$0xff]  ;;  %v2353_v5 = vld [vmem:[%s8765_s8 + $0x420] sm:$0xff]  ;;  %v1827_v31 = vadd.f32 %v7165_v14, %v1804_v28  ;;  %v2199_v14 = vperm.slane %v7083_v30, 2  ;;  %v4336_v28 = vld [vmem:[%s8765_s8 + $0x808] sm:$0xff] }
 0x2a4   : > { %v2344_v35 = vld [vmem:[%s8765_s8 + $0x3d8] sm:$0xff]  ;;  %v2341_v30 = vld [vmem:[%s8765_s8 + $0x3c0] sm:$0xff] }
 0x2a5   : > { %v2220_v34 = vmax.f32 %v7284_v11, 0.0  ;;  %2690 = vmatpush.msrb.mxu2 %v4347_v61  ;;  %v7318_v57 = vmax.f32 %v2205_v51, 0.0  ;;  %v1807_v61 = vadd.f32 %v7216_v23, %v6924_v16  ;;  %v4357_v16 = vld [vmem:[%s8765_s8 + $0x8b0] sm:$0xff] }
 0x2a6   : > { %v2023_v39 = vpop.f32.mrf.mxu3  ;;  %v4443_v11 = vld [vmem:[%s8765_s8 + $0xb30] sm:$0xff] }
 0x2a7   : > { %v2552_v48 = vrot.slane %v2220_v34, 1  ;;  %v2047_v54 = vadd.f32 %v2046_v10, %v2023_v39  ;;  %2691 = vmatpush.msrb.mxu2 %v4344_v27  ;;  %v2542_v59 = vrot.slane %v7318_v57, 1  ;;  %v1830_v23 = vadd.f32 %v7224_v49, %v1807_v61  ;;  %v4354_v10 = vld [vmem:[%s8765_s8 + $0x898] sm:$0xff]  ;;  %v2338_v39 = vld [vmem:[%s8765_s8 + $0x3a8] sm:$0xff]  ;;  %v2335_v49 = vld [vmem:[%s8765_s8 + $0x390] sm:$0xff] }
 0x2a8   : > { %v2264_v61 = vld [vmem:[%s8765_s8 + $0x158] sm:$0xff] }
 0x2a9   : > { %v2191_v20 = vadd.f32 %v2047_v54, %v1738_v24  ;;  %v7311_v53 = vsel %vm454_vm0, %v2551_v22, %v2552_v48  ;;  %2692 = vmatpush.msrb.mxu2 %v4341_v44  ;;  %v4348_v54 = vld [vmem:[%s8765_s8 + $0x868] sm:$0xff]  ;;  %v2332_v22 = vld [vmem:[%s8765_s8 + $0x378] sm:$0xff] }
 0x2aa   : > { %4391 = vmatmul.msk.f32.vlgmr.msra.gmra.mxu2 %vm2557_vm4, %v7311_v53 }
 0x2ab   : > { %v7320_v41 = vadd.f32 %v2197_v26, %v2191_v20  ;;  %2693 = vmatpush.msrb.mxu2 %v4338_v52  ;;  %v4345_v52 = vld [vmem:[%s8765_s8 + $0x850] sm:$0xff]  ;;  %v2329_v20 = vld [vmem:[%s8765_s8 + $0x360] sm:$0xff] }
 0x2ad   : > { %v2217_v46 = vmax.f32 %v7320_v41, 0.0  ;;  %2694 = vmatpush.msrb.mxu2 %v4335_v55  ;;  %v4406_v41 = vld [vmem:[%s8765_s8 + $0xa08] sm:$0xff] }
 0x2af   : > { %v2543_v38 = vrot.slane %v2217_v46, 1  ;;  %2695 = vmatpush.msrb.mxu2 %v4332_v36 }
 0x2b1   : > { %2792 = vmatpush.msra.mxu2 %v4390_v58  ;;  %v7339_v19 = vsel %vm454_vm0, %v2542_v59, %v2543_v38  ;;  %v4282_v58 = vld [vmem:[%s8765_s8 + $0x658] sm:$0xff]  ;;  %v2266_v38 = vld [vmem:[%s8765_s8 + $0x168] sm:$0xff] }
 0x2b2   : > { %2576 = vmatmul.f32.vlgmr.msrb.gmra.mxu3 %v7339_v19  ;;  %2656 = vmatmul.f32.vlgmr.msrb.gmra.mxu0 %v7339_v19 }
 0x2b3   : > { %2760 = vmatpush.msrb.mxu3 %v4378_v8  ;;  %2842 = vmatpush.msrb.mxu0 %v2362_v9  ;;  %v4342_v8 = vld [vmem:[%s8765_s8 + $0x838] sm:$0xff]  ;;  %v2326_v9 = vld [vmem:[%s8765_s8 + $0x348] sm:$0xff] }
 0x2b4   : > { %2793 = vmatpush.msra.mxu2 %v4387_v21  ;;  %v4279_v21 = vld [vmem:[%s8765_s8 + $0x640] sm:$0xff] }
 0x2b5   : > { %2761 = vmatpush.msrb.mxu3 %v4375_v42  ;;  %2843 = vmatpush.msrb.mxu0 %v2359_v56  ;;  %v2112_v29 = vpop.f32.mrf.mxu2  ;;  %v2263_v42 = vld [vmem:[%s8765_s8 + $0x150] sm:$0xff]  ;;  %v4339_v56 = vld [vmem:[%s8765_s8 + $0x820] sm:$0xff] }
 0x2b6   : > { %v2135_v62 = vpop.f32.mrf.mxu3  ;;  %2794 = vmatpush.msra.mxu2 %v4384_v2  ;;  %v2323_v2 = vld [vmem:[%s8765_s8 + $0x330] sm:$0xff] }
 0x2b7   : > { %v2136_v7 = vadd.f32 %v2135_v62, %v2112_v29  ;;  %2762 = vmatpush.msrb.mxu3 %v4372_v25  ;;  %2844 = vmatpush.msrb.mxu0 %v2356_v43  ;;  %v4276_v25 = vld [vmem:[%s8765_s8 + $0x628] sm:$0xff]  ;;  %v2260_v43 = vld [vmem:[%s8765_s8 + $0x138] sm:$0xff]  ;;  %v2257_v62 = vld [vmem:[%s8765_s8 + $0x120] sm:$0xff] }
 0x2b8   : > { %2795 = vmatpush.msra.mxu2 %v4381_v47  ;;  %v2320_v29 = vld [vmem:[%s8765_s8 + $0x318] sm:$0xff]  ;;  %v4273_v47 = vld [vmem:[%s8765_s8 + $0x610] sm:$0xff] }
 0x2b9   : > { %2763 = vmatpush.msrb.mxu3 %v4369_v17  ;;  %2845 = vmatpush.msrb.mxu0 %v2353_v5  ;;  %v2189_v33 = vadd.f32 %v2136_v7, %v1827_v31  ;;  %v4333_v17 = vld [vmem:[%s8765_s8 + $0x7f0] sm:$0xff]  ;;  %v2317_v5 = vld [vmem:[%s8765_s8 + $0x300] sm:$0xff]  ;;  %v4270_v7 = vld [vmem:[%s8765_s8 + $0x5f8] sm:$0xff] }
 0x2ba   : > { %2676 = vmatmul.f32.vlgmr.msra.gmra.mxu3 %v7186_v32  ;;  %2756 = vmatmul.f32.vlgmr.msra.gmra.mxu0 %v7186_v32  ;;  %v4360_v32 = vld [vmem:[%s8765_s8 + $0x8c8] sm:$0xff]  ;;  %v2375_v31 = vld [vmem:[%s8765_s8 + $0x4d0] sm:$0xff] }
 0x2bb   : > { %2764 = vmatpush.msrb.mxu3 %v4366_v63  ;;  %2846 = vmatpush.msrb.mxu0 %v2350_v13  ;;  %v2207_v37 = vadd.f32 %v2199_v14, %v2189_v33  ;;  %v2254_v63 = vld [vmem:[%s8765_s8 + $0x108] sm:$0xff]  ;;  %v2267_v13 = vld [vmem:[%s8765_s8 + $0x170] sm:$0xff]  ;;  %v2372_v33 = vld [vmem:[%s8765_s8 + $0x4b8] sm:$0xff] }
 0x2bd   : > { %2765 = vmatpush.msrb.mxu3 %v4363_v3  ;;  %2847 = vmatpush.msrb.mxu0 %v2347_v12  ;;  %v2115_v26 = vpop.f32.mrf.mxu2  ;;  %v7415_v48 = vmax.f32 %v2207_v37, 0.0  ;;  %v4267_v3 = vld [vmem:[%s8765_s8 + $0x5e0] sm:$0xff]  ;;  %v2251_v12 = vld [vmem:[%s8765_s8 + $0xf0] sm:$0xff]  ;;  %v4258_v37 = vld [vmem:[%s8765_s8 + $0x598] sm:$0xff] }
 0x2be   : > { %v2138_v27 = vpop.f32.mrf.mxu3 }
 0x2bf   : > { %v2139_v24 = vadd.f32 %v2138_v27, %v2115_v26  ;;  %2766 = vmatpush.msrb.mxu3 %v4360_v32  ;;  %2848 = vmatpush.msrb.mxu0 %v2344_v35  ;;  %v2548_v36 = vrot.slane %v7415_v48, 1  ;;  %v2261_v32 = vld [vmem:[%s8765_s8 + $0x140] sm:$0xff]  ;;  %v4261_v26 = vld [vmem:[%s8765_s8 + $0x5b0] sm:$0xff] }
 0x2c0   : > { %v2369_v35 = vld [vmem:[%s8765_s8 + $0x4a0] sm:$0xff] }
 0x2c1   : > { %v2193_v44 = vadd.f32 %v2139_v24, %v1830_v23  ;;  %2767 = vmatpush.msrb.mxu3 %v4357_v16  ;;  %2849 = vmatpush.msrb.mxu0 %v2341_v30  ;;  %v2245_v27 = vld [vmem:[%s8765_s8 + $0xc0] sm:$0xff]  ;;  %v2258_v16 = vld [vmem:[%s8765_s8 + $0x128] sm:$0xff]  ;;  %v2268_v23 = vld [vmem:[%s8765_s8 + $0x178] sm:$0xff] }
 0x2c2   : > { %v2366_v30 = vld [vmem:[%s8765_s8 + $0x488] sm:$0xff] }
 0x2c3   : > { %v7417_v51 = vadd.f32 %v2199_v14, %v2193_v44  ;;  %2768 = vmatpush.msrb.mxu3 %v4354_v10  ;;  %2850 = vmatpush.msrb.mxu0 %v2338_v39  ;;  %v2248_v14 = vld [vmem:[%s8765_s8 + $0xd8] sm:$0xff]  ;;  %v2242_v24 = vld [vmem:[%s8765_s8 + $0xa8] sm:$0xff]  ;;  %v2255_v10 = vld [vmem:[%s8765_s8 + $0x110] sm:$0xff] }
 0x2c4   : > { %v4255_v39 = vld [vmem:[%s8765_s8 + $0x580] sm:$0xff] }
 0x2c5   : > { %v2219_v40 = vmax.f32 %v7417_v51, 0.0  ;;  %2769 = vmatpush.msrb.mxu3 %v4351_v45  ;;  %2851 = vmatpush.msrb.mxu0 %v2335_v49  ;;  %v2265_v44 = vld [vmem:[%s8765_s8 + $0x160] sm:$0xff]  ;;  %v2239_v45 = vld [vmem:[%s8765_s8 + $0x90] sm:$0xff]  ;;  %v2252_v49 = vld [vmem:[%s8765_s8 + $0xf8] sm:$0xff]  ;;  %v3208_v51 = vrot.slane %v7282_v18, 2 }
 0x2c7   : > { %v2549_v55 = vrot.slane %v2219_v40, 1  ;;  %2770 = vmatpush.msrb.mxu3 %v4348_v54  ;;  %2852 = vmatpush.msrb.mxu0 %v2332_v22  ;;  %v4252_v54 = vld [vmem:[%s8765_s8 + $0x568] sm:$0xff] }
 0x2c8   : > { %v2262_v22 = vld [vmem:[%s8765_s8 + $0x148] sm:$0xff] }
 0x2c9   : > { %2771 = vmatpush.msrb.mxu3 %v4345_v52  ;;  %2853 = vmatpush.msrb.mxu0 %v2329_v20  ;;  %v2550_v59 = vsel %vm454_vm0, %v2548_v36, %v2549_v55  ;;  %v2236_v52 = vld [vmem:[%s8765_s8 + $0x78] sm:$0xff]  ;;  %v2249_v20 = vld [vmem:[%s8765_s8 + $0xe0] sm:$0xff]  ;;  %v4249_v55 = vld [vmem:[%s8765_s8 + $0x550] sm:$0xff] }
 0x2ca   : > { %2616 = vmatmul.f32.vlgmr.msrb.gmra.mxu1 %v2550_v59  ;;  %2696 = vmatmul.f32.vlgmr.msrb.gmra.mxu2 %v2550_v59  ;;  %v2259_v36 = vld [vmem:[%s8765_s8 + $0x130] sm:$0xff] }
 0x2cb   : > { %2720 = vmatpush.msrb.mxu1 %v4282_v58  ;;  %2802 = vmatpush.msrb.mxu2 %v2266_v38  ;;  %v2233_v58 = vld [vmem:[%s8765_s8 + $0x60] sm:$0xff]  ;;  %v2246_v38 = vld [vmem:[%s8765_s8 + $0xc8] sm:$0xff] }
 0x2cc   : > { %2772 = vmatpush.msrb.mxu3 %v4342_v8  ;;  %2854 = vmatpush.msrb.mxu0 %v2326_v9  ;;  %v2256_v8 = vld [vmem:[%s8765_s8 + $0x118] sm:$0xff]  ;;  %v2230_v9 = vld [vmem:[%s8765_s8 + $0x48] sm:$0xff] }
 0x2cd   : > { %2721 = vmatpush.msrb.mxu1 %v4279_v21  ;;  %2803 = vmatpush.msrb.mxu2 %v2263_v42  ;;  %v2243_v21 = vld [vmem:[%s8765_s8 + $0xb0] sm:$0xff]  ;;  %v4243_v42 = vld [vmem:[%s8765_s8 + $0x520] sm:$0xff] }
 0x2ce   : > { %2773 = vmatpush.msrb.mxu3 %v4339_v56  ;;  %2855 = vmatpush.msrb.mxu0 %v2323_v2  ;;  %v2253_v56 = vld [vmem:[%s8765_s8 + $0x100] sm:$0xff]  ;;  %v2227_v2 = vld [vmem:[%s8765_s8 + $0x30] sm:$0xff] }
 0x2cf   : > { %2722 = vmatpush.msrb.mxu1 %v4276_v25  ;;  %2804 = vmatpush.msrb.mxu2 %v2260_v43  ;;  %v2240_v25 = vld [vmem:[%s8765_s8 + $0x98] sm:$0xff]  ;;  %v4240_v43 = vld [vmem:[%s8765_s8 + $0x508] sm:$0xff] }
 0x2d0   : > { %2774 = vmatpush.msrb.mxu3 %v4336_v28  ;;  %2856 = vmatpush.msrb.mxu0 %v2320_v29  ;;  %v2250_v28 = vld [vmem:[%s8765_s8 + $0xe8] sm:$0xff]  ;;  %v2224_v29 = vld [vmem:[%s8765_s8 + $0x18] sm:$0xff] }
 0x2d1   : > { %2723 = vmatpush.msrb.mxu1 %v4273_v47  ;;  %2805 = vmatpush.msrb.mxu2 %v2257_v62  ;;  %v2237_v47 = vld [vmem:[%s8765_s8 + $0x80] sm:$0xff]  ;;  %v4237_v62 = vld [vmem:[%s8765_s8 + $0x4f0] sm:$0xff] }
 0x2d2   : > { %2775 = vmatpush.msrb.mxu3 %v4333_v17  ;;  %2857 = vmatpush.msrb.mxu0 %v2317_v5  ;;  %v2247_v17 = vld [vmem:[%s8765_s8 + $0xd0] sm:$0xff]  ;;  %v2221_v5 = vld [vmem:[%s8765_s8] sm:$0xff] }
 0x2d3   : > { %4392 = vmatmul.msk.f32.vlgmr.msra.gmra.mxu1 %vm2557_vm4, %v7311_v53  ;;  %2776 = vmatmul.f32.vlgmr.msrb.gmra.mxu3 %v2550_v59  ;;  %v4246_v59 = vld [vmem:[%s8765_s8 + $0x538] sm:$0xff] }
 0x2d4   : > { %2724 = vmatpush.msrb.mxu1 %v4270_v7  ;;  %4393 = vmatmul.msk.f32.vlgmr.msra.gmra.mxu2 %vm2557_vm4, %v7311_v53  ;;  %v4264_v53 = vld [vmem:[%s8765_s8 + $0x5c8] sm:$0xff] }
 0x2d5   : > { %2806 = vmatpush.msrb.mxu2 %v2254_v63  ;;  %2858 = vmatmul.f32.vlgmr.msrb.gmra.mxu0 %v7415_v48  ;;  %v2234_v7 = vld [vmem:[%s8765_s8 + $0x68] sm:$0xff] }
 0x2d6   : > { %2882 = vmatpush.msra.mxu3 %v2267_v13  ;;  %2954 = vmatpush.msra.mxu0 %v2375_v31  ;;  %v2314_v63 = vld [vmem:[%s8765_s8 + $0x2e8] sm:$0xff]  ;;  %v2315_v13 = vld [vmem:[%s8765_s8 + $0x2f0] sm:$0xff]  ;;  %v2244_v31 = vld [vmem:[%s8765_s8 + $0xb8] sm:$0xff] }
 0x2d7   : > { %2725 = vmatpush.msrb.mxu1 %v4267_v3  ;;  %2807 = vmatpush.msrb.mxu2 %v2251_v12  ;;  %v2231_v3 = vld [vmem:[%s8765_s8 + $0x50] sm:$0xff] }
 0x2d8   : > { %2883 = vmatpush.msra.mxu3 %v2264_v61  ;;  %2955 = vmatpush.msra.mxu0 %v2372_v33  ;;  %v2311_v12 = vld [vmem:[%s8765_s8 + $0x2d0] sm:$0xff]  ;;  %v2312_v61 = vld [vmem:[%s8765_s8 + $0x2d8] sm:$0xff]  ;;  %v2241_v33 = vld [vmem:[%s8765_s8 + $0xa0] sm:$0xff] }
 0x2d9   : > { %2726 = vmatpush.msrb.mxu1 %v4264_v53  ;;  %2808 = vmatpush.msrb.mxu2 %v2248_v14  ;;  %v2308_v53 = vld [vmem:[%s8765_s8 + $0x2b8] sm:$0xff]  ;;  %v2309_v14 = vld [vmem:[%s8765_s8 + $0x2c0] sm:$0xff] }
 0x2da   : > { %2884 = vmatpush.msra.mxu3 %v2261_v32  ;;  %2956 = vmatpush.msra.mxu0 %v2369_v35  ;;  %v2238_v32 = vld [vmem:[%s8765_s8 + $0x88] sm:$0xff]  ;;  %v2225_v35 = vld [vmem:[%s8765_s8 + $0x20] sm:$0xff] }
 0x2db   : > { %2727 = vmatpush.msrb.mxu1 %v4261_v26  ;;  %2809 = vmatpush.msrb.mxu2 %v2245_v27  ;;  %v2305_v26 = vld [vmem:[%s8765_s8 + $0x2a0] sm:$0xff]  ;;  %v2306_v27 = vld [vmem:[%s8765_s8 + $0x2a8] sm:$0xff] }
 0x2dc   : > { %2885 = vmatpush.msra.mxu3 %v2258_v16  ;;  %2957 = vmatpush.msra.mxu0 %v2366_v30  ;;  %v2235_v16 = vld [vmem:[%s8765_s8 + $0x70] sm:$0xff]  ;;  %v2222_v30 = vld [vmem:[%s8765_s8 + $0x8] sm:$0xff] }
 0x2dd   : > { %2728 = vmatpush.msrb.mxu1 %v4258_v37  ;;  %2810 = vmatpush.msrb.mxu2 %v2242_v24  ;;  %v2303_v37 = vld [vmem:[%s8765_s8 + $0x290] sm:$0xff]  ;;  %v2232_v24 = vld [vmem:[%s8765_s8 + $0x58] sm:$0xff] }
 0x2de   : > { %2962 = vmatpush.msrb.mxu0 %v2268_v23  ;;  %2886 = vmatpush.msra.mxu3 %v2255_v10  ;;  %v2302_v23 = vld [vmem:[%s8765_s8 + $0x288] sm:$0xff]  ;;  %v2316_v10 = vld [vmem:[%s8765_s8 + $0x2f8] sm:$0xff] }
 0x2df   : > { %4395 = vmatmul.msk.f32.vlgmr.msra.gmra.mxu0 %vm2557_vm4, %v7282_v18  ;;  %2729 = vmatpush.msrb.mxu1 %v4255_v39  ;;  %v2299_v39 = vld [vmem:[%s8765_s8 + $0x270] sm:$0xff] }
 0x2e0   : > { %2963 = vmatpush.msrb.mxu0 %v2265_v44  ;;  %2811 = vmatpush.msrb.mxu2 %v2239_v45  ;;  %v2300_v44 = vld [vmem:[%s8765_s8 + $0x278] sm:$0xff]  ;;  %v2229_v45 = vld [vmem:[%s8765_s8 + $0x40] sm:$0xff] }
 0x2e1   : > { %2887 = vmatpush.msra.mxu3 %v2252_v49  ;;  %2730 = vmatpush.msrb.mxu1 %v4252_v54  ;;  %v2313_v49 = vld [vmem:[%s8765_s8 + $0x2e0] sm:$0xff]  ;;  %v2296_v54 = vld [vmem:[%s8765_s8 + $0x258] sm:$0xff] }
 0x2e2   : > { %2964 = vmatpush.msrb.mxu0 %v2262_v22  ;;  %2812 = vmatpush.msrb.mxu2 %v2236_v52  ;;  %v2297_v22 = vld [vmem:[%s8765_s8 + $0x260] sm:$0xff]  ;;  %v2226_v52 = vld [vmem:[%s8765_s8 + $0x28] sm:$0xff] }
 0x2e3   : > { %2888 = vmatpush.msra.mxu3 %v2249_v20  ;;  %2731 = vmatpush.msrb.mxu1 %v4249_v55  ;;  %v2310_v20 = vld [vmem:[%s8765_s8 + $0x2c8] sm:$0xff]  ;;  %v2293_v55 = vld [vmem:[%s8765_s8 + $0x240] sm:$0xff] }
 0x2e4   : > { %2965 = vmatpush.msrb.mxu0 %v2259_v36  ;;  %2813 = vmatpush.msrb.mxu2 %v2233_v58  ;;  %v2294_v36 = vld [vmem:[%s8765_s8 + $0x248] sm:$0xff]  ;;  %v2223_v58 = vld [vmem:[%s8765_s8 + $0x10] sm:$0xff] }
 0x2e5   : > { %2889 = vmatpush.msra.mxu3 %v2246_v38  ;;  %2732 = vmatpush.msrb.mxu1 %v4246_v59  ;;  %v2307_v38 = vld [vmem:[%s8765_s8 + $0x2b0] sm:$0xff]  ;;  %v2290_v59 = vld [vmem:[%s8765_s8 + $0x228] sm:$0xff] }
 0x2e6   : > { %2966 = vmatpush.msrb.mxu0 %v2256_v8  ;;  %2814 = vmatpush.msrb.mxu2 %v2230_v9  ;;  %v4490_v8 = vld [vmem:[%s8765_s8 + $0xca8] sm:$0xff]  ;;  %v2291_v9 = vld [vmem:[%s8765_s8 + $0x230] sm:$0xff] }
 0x2e7   : > { %2890 = vmatpush.msra.mxu3 %v2243_v21  ;;  %2733 = vmatpush.msrb.mxu1 %v4243_v42  ;;  %v2304_v21 = vld [vmem:[%s8765_s8 + $0x298] sm:$0xff]  ;;  %v2287_v42 = vld [vmem:[%s8765_s8 + $0x210] sm:$0xff] }
 0x2e8   : > { %2967 = vmatpush.msrb.mxu0 %v2253_v56  ;;  %2815 = vmatpush.msrb.mxu2 %v2227_v2  ;;  %v4487_v56 = vld [vmem:[%s8765_s8 + $0xc90] sm:$0xff]  ;;  %v2288_v2 = vld [vmem:[%s8765_s8 + $0x218] sm:$0xff] }
 0x2e9   : > { %2891 = vmatpush.msra.mxu3 %v2240_v25  ;;  %2734 = vmatpush.msrb.mxu1 %v4240_v43  ;;  %v2301_v25 = vld [vmem:[%s8765_s8 + $0x280] sm:$0xff]  ;;  %v2284_v43 = vld [vmem:[%s8765_s8 + $0x1f8] sm:$0xff] }
 0x2ea   : > { %2968 = vmatpush.msrb.mxu0 %v2250_v28  ;;  %2816 = vmatpush.msrb.mxu2 %v2224_v29  ;;  %v4484_v28 = vld [vmem:[%s8765_s8 + $0xc78] sm:$0xff]  ;;  %v2285_v29 = vld [vmem:[%s8765_s8 + $0x200] sm:$0xff] }
 0x2eb   : > { %2892 = vmatpush.msra.mxu3 %v2237_v47  ;;  %2735 = vmatpush.msrb.mxu1 %v4237_v62  ;;  %v2298_v47 = vld [vmem:[%s8765_s8 + $0x268] sm:$0xff]  ;;  %v2281_v62 = vld [vmem:[%s8765_s8 + $0x1e0] sm:$0xff] }
 0x2ec   : > { %2969 = vmatpush.msrb.mxu0 %v2247_v17  ;;  %2817 = vmatpush.msrb.mxu2 %v2221_v5  ;;  %v4481_v17 = vld [vmem:[%s8765_s8 + $0xc60] sm:$0xff]  ;;  %v2282_v5 = vld [vmem:[%s8765_s8 + $0x1e8] sm:$0xff] }
 0x2ed   : > { %2893 = vmatpush.msra.mxu3 %v2234_v7  ;;  %2736 = vmatmul.f32.vlgmr.msrb.gmra.mxu1 %v7339_v19  ;;  %v2228_v19 = vld [vmem:[%s8765_s8 + $0x38] sm:$0xff]  ;;  %v2295_v7 = vld [vmem:[%s8765_s8 + $0x250] sm:$0xff] }
 0x2ee   : > { %2818 = vmatmul.f32.vlgmr.msrb.gmra.mxu2 %v7318_v57  ;;  %2822 = vmatpush.msra.mxu1 %v2314_v63  ;;  %v2278_v63 = vld [vmem:[%s8765_s8 + $0x1c8] sm:$0xff] }
 0x2ef   : > { %2902 = vmatpush.msra.mxu2 %v2315_v13  ;;  %2970 = vmatpush.msrb.mxu0 %v2244_v31  ;;  %v4478_v13 = vld [vmem:[%s8765_s8 + $0xc48] sm:$0xff]  ;;  %v2279_v31 = vld [vmem:[%s8765_s8 + $0x1d0] sm:$0xff] }
 0x2f0   : > { %2894 = vmatpush.msra.mxu3 %v2231_v3  ;;  %2823 = vmatpush.msra.mxu1 %v2311_v12  ;;  %v2292_v3 = vld [vmem:[%s8765_s8 + $0x238] sm:$0xff]  ;;  %v2275_v12 = vld [vmem:[%s8765_s8 + $0x1b0] sm:$0xff] }
 0x2f1   : > { %2903 = vmatpush.msra.mxu2 %v2312_v61  ;;  %2971 = vmatpush.msrb.mxu0 %v2241_v33  ;;  %v4475_v61 = vld [vmem:[%s8765_s8 + $0xc30] sm:$0xff]  ;;  %v2276_v33 = vld [vmem:[%s8765_s8 + $0x1b8] sm:$0xff] }
 0x2f2   : > { %2895 = vmatpush.msra.mxu3 %v2228_v19  ;;  %2824 = vmatpush.msra.mxu1 %v2308_v53  ;;  %v2289_v19 = vld [vmem:[%s8765_s8 + $0x220] sm:$0xff]  ;;  %v2272_v53 = vld [vmem:[%s8765_s8 + $0x198] sm:$0xff] }
 0x2f3   : > { %2904 = vmatpush.msra.mxu2 %v2309_v14  ;;  %2972 = vmatpush.msrb.mxu0 %v2238_v32  ;;  %v4472_v14 = vld [vmem:[%s8765_s8 + $0xc18] sm:$0xff]  ;;  %v2273_v32 = vld [vmem:[%s8765_s8 + $0x1a0] sm:$0xff] }
 0x2f4   : > { %2896 = vmatpush.msra.mxu3 %v2225_v35  ;;  %2825 = vmatpush.msra.mxu1 %v2305_v26  ;;  %v2286_v35 = vld [vmem:[%s8765_s8 + $0x208] sm:$0xff]  ;;  %v2269_v26 = vld [vmem:[%s8765_s8 + $0x180] sm:$0xff] }
 0x2f5   : > { %2905 = vmatpush.msra.mxu2 %v2306_v27  ;;  %2973 = vmatpush.msrb.mxu0 %v2235_v16  ;;  %v4469_v27 = vld [vmem:[%s8765_s8 + $0xc00] sm:$0xff]  ;;  %v2270_v16 = vld [vmem:[%s8765_s8 + $0x188] sm:$0xff] }
 0x2f6   : > { %2897 = vmatpush.msra.mxu3 %v2222_v30  ;;  %2826 = vmatpush.msra.mxu1 %v2302_v23  ;;  %v2283_v30 = vld [vmem:[%s8765_s8 + $0x1f0] sm:$0xff]  ;;  %v2374_v23 = vld [vmem:[%s8765_s8 + $0x4c8] sm:$0xff] }
 0x2f7   : > { %2898 = vmatmul.f32.vlgmr.msra.gmra.mxu3 %v7318_v57  ;;  %2906 = vmatpush.msra.mxu2 %v2303_v37  ;;  %v2364_v37 = vld [vmem:[%s8765_s8 + $0x478] sm:$0xff] }
 0x2f8   : > { %2974 = vmatpush.msrb.mxu0 %v2232_v24  ;;  %2982 = vmatpush.msrb.mxu3 %v2316_v10  ;;  %v4466_v24 = vld [vmem:[%s8765_s8 + $0xbe8] sm:$0xff]  ;;  %v2280_v10 = vld [vmem:[%s8765_s8 + $0x1d8] sm:$0xff] }
 0x2f9   : > { %2827 = vmatpush.msra.mxu1 %v2299_v39  ;;  %2907 = vmatpush.msra.mxu2 %v2300_v44  ;;  %v2371_v39 = vld [vmem:[%s8765_s8 + $0x4b0] sm:$0xff]  ;;  %v2361_v44 = vld [vmem:[%s8765_s8 + $0x460] sm:$0xff] }
 0x2fa   : > { %2975 = vmatpush.msrb.mxu0 %v2229_v45  ;;  %2983 = vmatpush.msrb.mxu3 %v2313_v49  ;;  %v4463_v45 = vld [vmem:[%s8765_s8 + $0xbd0] sm:$0xff]  ;;  %v2277_v49 = vld [vmem:[%s8765_s8 + $0x1c0] sm:$0xff] }
 0x2fb   : > { %2828 = vmatpush.msra.mxu1 %v2296_v54  ;;  %2908 = vmatpush.msra.mxu2 %v2297_v22  ;;  %v2368_v54 = vld [vmem:[%s8765_s8 + $0x498] sm:$0xff]  ;;  %v2358_v22 = vld [vmem:[%s8765_s8 + $0x448] sm:$0xff] }
 0x2fc   : > { %2976 = vmatpush.msrb.mxu0 %v2226_v52  ;;  %2984 = vmatpush.msrb.mxu3 %v2310_v20  ;;  %v4460_v52 = vld [vmem:[%s8765_s8 + $0xbb8] sm:$0xff]  ;;  %v2274_v20 = vld [vmem:[%s8765_s8 + $0x1a8] sm:$0xff] }
 0x2fd   : > { %2829 = vmatpush.msra.mxu1 %v2293_v55  ;;  %2909 = vmatpush.msra.mxu2 %v2294_v36  ;;  %v2365_v55 = vld [vmem:[%s8765_s8 + $0x480] sm:$0xff]  ;;  %v2355_v36 = vld [vmem:[%s8765_s8 + $0x430] sm:$0xff] }
 0x2fe   : > { %2977 = vmatpush.msrb.mxu0 %v2223_v58  ;;  %2985 = vmatpush.msrb.mxu3 %v2307_v38  ;;  %v4457_v58 = vld [vmem:[%s8765_s8 + $0xba0] sm:$0xff]  ;;  %v2363_v38 = vld [vmem:[%s8765_s8 + $0x470] sm:$0xff] }
 0x2ff   : > { %2978 = vmatmul.f32.vlgmr.msrb.gmra.mxu0 %v7318_v57  ;;  %2830 = vmatpush.msra.mxu1 %v2290_v59  ;;  %v2271_v59 = vld [vmem:[%s8765_s8 + $0x190] sm:$0xff] }
 0x300   : > { %3236 = vmatpush.msra.mxu0 %v4490_v8  ;;  %2910 = vmatpush.msra.mxu2 %v2291_v9  ;;  %v2352_v8 = vld [vmem:[%s8765_s8 + $0x418] sm:$0xff]  ;;  %v4454_v9 = vld [vmem:[%s8765_s8 + $0xb88] sm:$0xff] }
 0x301   : > { %2986 = vmatpush.msrb.mxu3 %v2304_v21  ;;  %2831 = vmatpush.msra.mxu1 %v2287_v42  ;;  %v4538_v21 = vld [vmem:[%s8765_s8 + $0xe28] sm:$0xff]  ;;  %v2360_v42 = vld [vmem:[%s8765_s8 + $0x458] sm:$0xff] }
 0x302   : > { %3237 = vmatpush.msra.mxu0 %v4487_v56  ;;  %2911 = vmatpush.msra.mxu2 %v2288_v2  ;;  %v2349_v56 = vld [vmem:[%s8765_s8 + $0x400] sm:$0xff]  ;;  %v4451_v2 = vld [vmem:[%s8765_s8 + $0xb70] sm:$0xff] }
 0x303   : > { %2987 = vmatpush.msrb.mxu3 %v2301_v25  ;;  %2832 = vmatpush.msra.mxu1 %v2284_v43  ;;  %v4535_v25 = vld [vmem:[%s8765_s8 + $0xe10] sm:$0xff]  ;;  %v2357_v43 = vld [vmem:[%s8765_s8 + $0x440] sm:$0xff] }
 0x304   : > { %3238 = vmatpush.msra.mxu0 %v4484_v28  ;;  %2912 = vmatpush.msra.mxu2 %v2285_v29  ;;  %v2346_v28 = vld [vmem:[%s8765_s8 + $0x3e8] sm:$0xff]  ;;  %v4448_v29 = vld [vmem:[%s8765_s8 + $0xb58] sm:$0xff] }
 0x305   : > { %2988 = vmatpush.msrb.mxu3 %v2298_v47  ;;  %2833 = vmatpush.msra.mxu1 %v2281_v62  ;;  %v4532_v47 = vld [vmem:[%s8765_s8 + $0xdf8] sm:$0xff]  ;;  %v2354_v62 = vld [vmem:[%s8765_s8 + $0x428] sm:$0xff] }
 0x306   : > { %3239 = vmatpush.msra.mxu0 %v4481_v17  ;;  %2913 = vmatpush.msra.mxu2 %v2282_v5  ;;  %v3203_v17 = vrot.slane %v2218_v15, 2  ;;  %v2343_v5 = vld [vmem:[%s8765_s8 + $0x3d0] sm:$0xff]  ;;  %v3202_v15 = vrot.slane %v7143_v4, 2 }
 0x307   : > { %2989 = vmatpush.msrb.mxu3 %v2295_v7  ;;  %2834 = vmatpush.msra.mxu1 %v2278_v63  ;;  %v4445_v7 = vld [vmem:[%s8765_s8 + $0xb40] sm:$0xff] }
 0x308   : > { %3240 = vmatpush.msra.mxu0 %v4478_v13  ;;  %2914 = vmatpush.msra.mxu2 %v2279_v31  ;;  %v4529_v63 = vld [vmem:[%s8765_s8 + $0xde0] sm:$0xff]  ;;  %v2340_v13 = vld [vmem:[%s8765_s8 + $0x3b8] sm:$0xff]  ;;  %v4539_v31 = vld [vmem:[%s8765_s8 + $0xe30] sm:$0xff] }
 0x309   : > { %2990 = vmatpush.msrb.mxu3 %v2292_v3  ;;  %2835 = vmatpush.msra.mxu1 %v2275_v12  ;;  %v4526_v3 = vld [vmem:[%s8765_s8 + $0xdc8] sm:$0xff]  ;;  %v7948_v12 = vsel %vm585_vm1, %v3202_v15, %v3203_v17  ;;  %v3209_v15 = vrot.slane %v2220_v34, 2  ;;  %v3205_v34 = vrot.slane %v7415_v48, 2 }
 0x30a   : > { %3241 = vmatpush.msra.mxu0 %v4475_v61  ;;  %2915 = vmatpush.msra.mxu2 %v2276_v33  ;;  %v2337_v61 = vld [vmem:[%s8765_s8 + $0x3a0] sm:$0xff]  ;;  %v4536_v33 = vld [vmem:[%s8765_s8 + $0xe18] sm:$0xff]  ;;  %v2318_v17 = vld [vmem:[%s8765_s8 + $0x308] sm:$0xff] }
 0x30b   : > { %2991 = vmatpush.msrb.mxu3 %v2289_v19  ;;  %2836 = vmatpush.msra.mxu1 %v2272_v53  ;;  %v4523_v19 = vld [vmem:[%s8765_s8 + $0xdb0] sm:$0xff]  ;;  %v2345_v53 = vld [vmem:[%s8765_s8 + $0x3e0] sm:$0xff] }
 0x30c   : > { %3242 = vmatpush.msra.mxu0 %v4472_v14  ;;  %2916 = vmatpush.msra.mxu2 %v2273_v32  ;;  %v2334_v14 = vld [vmem:[%s8765_s8 + $0x388] sm:$0xff]  ;;  %v4533_v32 = vld [vmem:[%s8765_s8 + $0xe00] sm:$0xff] }
 0x30d   : > { %2992 = vmatpush.msrb.mxu3 %v2286_v35  ;;  %2837 = vmatpush.msra.mxu1 %v2269_v26  ;;  %v4520_v35 = vld [vmem:[%s8765_s8 + $0xd98] sm:$0xff]  ;;  %v2342_v26 = vld [vmem:[%s8765_s8 + $0x3c8] sm:$0xff] }
 0x30e   : > { %3243 = vmatpush.msra.mxu0 %v4469_v27  ;;  %2917 = vmatpush.msra.mxu2 %v2270_v16  ;;  %v2331_v27 = vld [vmem:[%s8765_s8 + $0x370] sm:$0xff]  ;;  %v4530_v16 = vld [vmem:[%s8765_s8 + $0xde8] sm:$0xff] }
 0x30f   : > { %2993 = vmatpush.msrb.mxu3 %v2283_v30  ;;  %2838 = vmatmul.f32.vlgmr.msra.gmra.mxu1 %v7143_v4  ;;  %v4517_v30 = vld [vmem:[%s8765_s8 + $0xd80] sm:$0xff] }
 0x310   : > { %2874 = vmatpush.msrb.mxu1 %v2374_v23  ;;  %2918 = vmatmul.f32.vlgmr.msra.gmra.mxu2 %v7143_v4  ;;  %v2339_v23 = vld [vmem:[%s8765_s8 + $0x3b0] sm:$0xff] }
 0x311   : > { %3002 = vmatpush.msrb.mxu2 %v2364_v37  ;;  %3244 = vmatpush.msra.mxu0 %v4466_v24  ;;  %v2328_v37 = vld [vmem:[%s8765_s8 + $0x358] sm:$0xff]  ;;  %v4527_v24 = vld [vmem:[%s8765_s8 + $0xdd0] sm:$0xff] }
 0x312   : > { %2994 = vmatpush.msrb.mxu3 %v2280_v10  ;;  %2875 = vmatpush.msrb.mxu1 %v2371_v39  ;;  %v4514_v10 = vld [vmem:[%s8765_s8 + $0xd68] sm:$0xff]  ;;  %v2336_v39 = vld [vmem:[%s8765_s8 + $0x398] sm:$0xff] }
 0x313   : > { %3003 = vmatpush.msrb.mxu2 %v2361_v44  ;;  %3245 = vmatpush.msra.mxu0 %v4463_v45  ;;  %v2325_v44 = vld [vmem:[%s8765_s8 + $0x340] sm:$0xff]  ;;  %v4524_v45 = vld [vmem:[%s8765_s8 + $0xdb8] sm:$0xff] }
 0x314   : > { %2995 = vmatpush.msrb.mxu3 %v2277_v49  ;;  %2876 = vmatpush.msrb.mxu1 %v2368_v54  ;;  %v4511_v49 = vld [vmem:[%s8765_s8 + $0xd50] sm:$0xff]  ;;  %v2333_v54 = vld [vmem:[%s8765_s8 + $0x380] sm:$0xff] }
 0x315   : > { %3004 = vmatpush.msrb.mxu2 %v2358_v22  ;;  %3246 = vmatpush.msra.mxu0 %v4460_v52  ;;  %v2322_v22 = vld [vmem:[%s8765_s8 + $0x328] sm:$0xff]  ;;  %v4521_v52 = vld [vmem:[%s8765_s8 + $0xda0] sm:$0xff] }
 0x316   : > { %2996 = vmatpush.msrb.mxu3 %v2274_v20  ;;  %2877 = vmatpush.msrb.mxu1 %v2365_v55  ;;  %v4508_v20 = vld [vmem:[%s8765_s8 + $0xd38] sm:$0xff]  ;;  %v2330_v55 = vld [vmem:[%s8765_s8 + $0x368] sm:$0xff] }
 0x317   : > { %3005 = vmatpush.msrb.mxu2 %v2355_v36  ;;  %3247 = vmatpush.msra.mxu0 %v4457_v58  ;;  %v2319_v36 = vld [vmem:[%s8765_s8 + $0x310] sm:$0xff]  ;;  %v4518_v58 = vld [vmem:[%s8765_s8 + $0xd88] sm:$0xff] }
 0x318   : > { %2922 = vmatpush.msra.mxu1 %v2363_v38  ;;  %2997 = vmatpush.msrb.mxu3 %v2271_v59  ;;  %v4505_v38 = vld [vmem:[%s8765_s8 + $0xd20] sm:$0xff]  ;;  %v2327_v59 = vld [vmem:[%s8765_s8 + $0x350] sm:$0xff] }
 0x319   : > { %4394 = vmatmul.msk.f32.vlgmr.msrb.gmra.mxu1 %vm2557_vm4, %v7282_v18  ;;  %2998 = vmatmul.f32.vlgmr.msrb.gmra.mxu3 %v7143_v4  ;;  %v2348_v4 = vld [vmem:[%s8765_s8 + $0x3f8] sm:$0xff] }
 0x31a   : > { %3006 = vmatpush.msrb.mxu2 %v2352_v8  ;;  %3248 = vmatpush.msra.mxu0 %v4454_v9  ;;  %v4550_v8 = vld [vmem:[%s8765_s8 + $0xe88] sm:$0xff]  ;;  %v4515_v9 = vld [vmem:[%s8765_s8 + $0xd70] sm:$0xff] }
 0x31b   : > { %3256 = vmatpush.msra.mxu3 %v4538_v21  ;;  %2923 = vmatpush.msra.mxu1 %v2360_v42  ;;  %v4502_v21 = vld [vmem:[%s8765_s8 + $0xd08] sm:$0xff]  ;;  %v2324_v42 = vld [vmem:[%s8765_s8 + $0x338] sm:$0xff] }
 0x31c   : > { %3007 = vmatpush.msrb.mxu2 %v2349_v56  ;;  %3249 = vmatpush.msra.mxu0 %v4451_v2  ;;  %v4547_v56 = vld [vmem:[%s8765_s8 + $0xe70] sm:$0xff]  ;;  %v4512_v2 = vld [vmem:[%s8765_s8 + $0xd58] sm:$0xff] }
 0x31d   : > { %3257 = vmatpush.msra.mxu3 %v4535_v25  ;;  %2924 = vmatpush.msra.mxu1 %v2357_v43  ;;  %v4499_v25 = vld [vmem:[%s8765_s8 + $0xcf0] sm:$0xff]  ;;  %v2321_v43 = vld [vmem:[%s8765_s8 + $0x320] sm:$0xff] }
 0x31e   : > { %3008 = vmatpush.msrb.mxu2 %v2346_v28  ;;  %3250 = vmatpush.msra.mxu0 %v4448_v29  ;;  %v4544_v28 = vld [vmem:[%s8765_s8 + $0xe58] sm:$0xff]  ;;  %v4509_v29 = vld [vmem:[%s8765_s8 + $0xd40] sm:$0xff] }
 0x31f   : > { %3258 = vmatpush.msra.mxu3 %v4532_v47  ;;  %2925 = vmatpush.msra.mxu1 %v2354_v62  ;;  %v2597_v47 = vpop.f32.mrf.mxu2  ;;  %v4496_v62 = vld [vmem:[%s8765_s8 + $0xcd8] sm:$0xff] }
 0x320   : > { %3009 = vmatpush.msrb.mxu2 %v2343_v5  ;;  %3251 = vmatpush.msra.mxu0 %v4445_v7  ;;  %v4541_v7 = vld [vmem:[%s8765_s8 + $0xe40] sm:$0xff] }
 0x321   : > { %3259 = vmatpush.msra.mxu3 %v4529_v63  ;;  %2926 = vmatpush.msra.mxu1 %v2351_v50  ;;  %v4506_v63 = vld [vmem:[%s8765_s8 + $0xd28] sm:$0xff] }
 0x322   : > { %3252 = vmatmul.f32.vlgmr.msra.gmra.mxu0 %v7948_v12  ;;  %3010 = vmatpush.msrb.mxu2 %v2340_v13  ;;  %v3206_v13 = vrot.slane %v2219_v40, 2  ;;  %v4503_v40 = vld [vmem:[%s8765_s8 + $0xd10] sm:$0xff] }
 0x323   : > { %3336 = vmatpush.msrb.mxu0 %v4539_v31  ;;  %3260 = vmatpush.msra.mxu3 %v4526_v3  ;;  %v4493_v31 = vld [vmem:[%s8765_s8 + $0xcc0] sm:$0xff]  ;;  %v2376_v3 = vld [vmem:[%s8765_s8 + $0x4d8] sm:$0xff] }
 0x324   : > { %2927 = vmatpush.msra.mxu1 %v2348_v4  ;;  %3011 = vmatpush.msrb.mxu2 %v2337_v61  ;;  %v4444_v4 = vld [vmem:[%s8765_s8 + $0xb38] sm:$0xff]  ;;  %v8106_v61 = vsel %vm585_vm1, %v3205_v34, %v3206_v13  ;;  %v4546_v13 = vld [vmem:[%s8765_s8 + $0xe68] sm:$0xff] }
 0x325   : > { %3337 = vmatpush.msrb.mxu0 %v4536_v33  ;;  %3261 = vmatpush.msra.mxu3 %v4523_v19  ;;  %v8109_v33 = vsel %vm585_vm1, %v3208_v51, %v3209_v15  ;;  %v4440_v19 = vld [vmem:[%s8765_s8 + $0xb18] sm:$0xff]  ;;  %v4543_v51 = vld [vmem:[%s8765_s8 + $0xe50] sm:$0xff] }
 0x326   : > { %2928 = vmatpush.msra.mxu1 %v2345_v53  ;;  %3012 = vmatpush.msrb.mxu2 %v2334_v14  ;;  %v4500_v53 = vld [vmem:[%s8765_s8 + $0xcf8] sm:$0xff]  ;;  %v4441_v14 = vld [vmem:[%s8765_s8 + $0xb20] sm:$0xff] }
 0x327   : > { %3338 = vmatpush.msrb.mxu0 %v4533_v32  ;;  %3262 = vmatpush.msra.mxu3 %v4520_v35  ;;  %v2370_v32 = vld [vmem:[%s8765_s8 + $0x4a8] sm:$0xff]  ;;  %v4437_v35 = vld [vmem:[%s8765_s8 + $0xb00] sm:$0xff] }
 0x328   : > { %2929 = vmatpush.msra.mxu1 %v2342_v26  ;;  %3013 = vmatpush.msrb.mxu2 %v2331_v27  ;;  %v4497_v26 = vld [vmem:[%s8765_s8 + $0xce0] sm:$0xff]  ;;  %v4438_v27 = vld [vmem:[%s8765_s8 + $0xb08] sm:$0xff] }
 0x329   : > { %3339 = vmatpush.msrb.mxu0 %v4530_v16  ;;  %3263 = vmatpush.msra.mxu3 %v4517_v30  ;;  %v2367_v16 = vld [vmem:[%s8765_s8 + $0x490] sm:$0xff]  ;;  %v4434_v30 = vld [vmem:[%s8765_s8 + $0xae8] sm:$0xff] }
 0x32a   : > { %2930 = vmatpush.msra.mxu1 %v2339_v23  ;;  %3014 = vmatpush.msrb.mxu2 %v2328_v37  ;;  %v4442_v23 = vld [vmem:[%s8765_s8 + $0xb28] sm:$0xff] }
 0x32b   : > { %3340 = vmatpush.msrb.mxu0 %v4527_v24  ;;  %3264 = vmatpush.msra.mxu3 %v4514_v10  ;;  %v4494_v37 = vld [vmem:[%s8765_s8 + $0xcc8] sm:$0xff]  ;;  %v4435_v24 = vld [vmem:[%s8765_s8 + $0xaf0] sm:$0xff] }
 0x32c   : > { %2931 = vmatpush.msra.mxu1 %v2336_v39  ;;  %3015 = vmatpush.msrb.mxu2 %v2325_v44  ;;  %v4431_v10 = vld [vmem:[%s8765_s8 + $0xad0] sm:$0xff] }
 0x32d   : > { %3341 = vmatpush.msrb.mxu0 %v4524_v45  ;;  %3265 = vmatpush.msra.mxu3 %v4511_v49  ;;  %v4551_v39 = vld [vmem:[%s8765_s8 + $0xe90] sm:$0xff]  ;;  %v4432_v45 = vld [vmem:[%s8765_s8 + $0xad8] sm:$0xff] }
 0x32e   : > { %2932 = vmatpush.msra.mxu1 %v2333_v54  ;;  %3016 = vmatpush.msrb.mxu2 %v2322_v22  ;;  %v4439_v44 = vld [vmem:[%s8765_s8 + $0xb10] sm:$0xff]  ;;  %v4428_v49 = vld [vmem:[%s8765_s8 + $0xab8] sm:$0xff]  ;;  %v2637_v54 = vpop.f32.mrf.mxu2 }
 0x32f   : > { %3342 = vmatpush.msrb.mxu0 %v4521_v52  ;;  %3266 = vmatpush.msra.mxu3 %v4508_v20  ;;  %v4548_v22 = vld [vmem:[%s8765_s8 + $0xe78] sm:$0xff]  ;;  %v4429_v52 = vld [vmem:[%s8765_s8 + $0xac0] sm:$0xff] }
 0x330   : > { %2933 = vmatpush.msra.mxu1 %v2330_v55  ;;  %3017 = vmatpush.msrb.mxu2 %v2319_v36  ;;  %v4425_v20 = vld [vmem:[%s8765_s8 + $0xaa0] sm:$0xff] }
 0x331   : > { %3343 = vmatpush.msrb.mxu0 %v4518_v58  ;;  %3267 = vmatpush.msra.mxu3 %v4505_v38  ;;  %v4545_v55 = vld [vmem:[%s8765_s8 + $0xe60] sm:$0xff]  ;;  %v4426_v38 = vld [vmem:[%s8765_s8 + $0xaa8] sm:$0xff] }
 0x332   : > { %2934 = vmatpush.msra.mxu1 %v2327_v59  ;;  %3018 = vmatmul.f32.vlgmr.msrb.gmra.mxu2 %v7415_v48  ;;  %v4433_v36 = vld [vmem:[%s8765_s8 + $0xae0] sm:$0xff]  ;;  %v4422_v59 = vld [vmem:[%s8765_s8 + $0xa88] sm:$0xff] }
 0x333   : > { %3288 = vmatpush.msra.mxu2 %v4550_v8  ;;  %3344 = vmatpush.msrb.mxu0 %v4515_v9  ;;  %v4542_v9 = vld [vmem:[%s8765_s8 + $0xe48] sm:$0xff] }
 0x334   : > { %3268 = vmatpush.msra.mxu3 %v4502_v21  ;;  %2935 = vmatpush.msra.mxu1 %v2324_v42  ;;  %v4430_v21 = vld [vmem:[%s8765_s8 + $0xac8] sm:$0xff] }
 0x335   : > { %3289 = vmatpush.msra.mxu2 %v4547_v56  ;;  %3345 = vmatpush.msrb.mxu0 %v4512_v2  ;;  %v2577_v5 = vpop.f32.mrf.mxu3  ;;  %v4423_v56 = vld [vmem:[%s8765_s8 + $0xa90] sm:$0xff]  ;;  %v4552_v2 = vld [vmem:[%s8765_s8 + $0xe98] sm:$0xff] }
 0x336   : > { %3269 = vmatpush.msra.mxu3 %v4499_v25  ;;  %2936 = vmatpush.msra.mxu1 %v2321_v43  ;;  %v8081_v50 = vadd.f32 %v2597_v47, %v2577_v5  ;;  %v2657_v43 = vpop.f32.mrf.mxu0  ;;  %v4427_v47 = vld [vmem:[%s8765_s8 + $0xab0] sm:$0xff]  ;;  %v4416_v5 = vld [vmem:[%s8765_s8 + $0xa58] sm:$0xff] }
 0x337   : > { %3290 = vmatpush.msra.mxu2 %v4544_v28  ;;  %3346 = vmatpush.msrb.mxu0 %v4509_v29  ;;  %v4419_v28 = vld [vmem:[%s8765_s8 + $0xa70] sm:$0xff] }
 0x338   : > { %3270 = vmatpush.msra.mxu3 %v4496_v62  ;;  %2937 = vmatpush.msra.mxu1 %v2318_v17  ;;  %v4420_v62 = vld [vmem:[%s8765_s8 + $0xa78] sm:$0xff]  ;;  %v4549_v17 = vld [vmem:[%s8765_s8 + $0xe80] sm:$0xff] }
 0x339   : > { %3291 = vmatpush.msra.mxu2 %v4541_v7  ;;  %3347 = vmatpush.msrb.mxu0 %v4506_v63  ;;  %v4424_v63 = vld [vmem:[%s8765_s8 + $0xa98] sm:$0xff] }
 0x33a   : > { %2938 = vmatmul.f32.vlgmr.msra.gmra.mxu1 %v7415_v48  ;;  %3271 = vmatpush.msra.mxu3 %v4493_v31  ;;  %v2373_v48 = vld [vmem:[%s8765_s8 + $0x4c0] sm:$0xff] }
 0x33b   : > { %3034 = vmatpush.msrb.mxu1 %v2376_v3  ;;  %3296 = vmatpush.msrb.mxu2 %v4443_v11  ;;  %v4413_v31 = vld [vmem:[%s8765_s8 + $0xa40] sm:$0xff]  ;;  %v4414_v11 = vld [vmem:[%s8765_s8 + $0xa48] sm:$0xff] }
 0x33c   : > { %3272 = vmatmul.f32.vlgmr.msra.gmra.mxu3 %v8106_v61  ;;  %4553 = vmatmul.msk.f32.vlgmr.msra.gmra.mxu2 %vm2557_vm4, %v8109_v33  ;;  %v4421_v3 = vld [vmem:[%s8765_s8 + $0xa80] sm:$0xff] }
 0x33d   : > { %3348 = vmatpush.msrb.mxu0 %v4503_v40  ;;  %3376 = vmatpush.msrb.mxu3 %v4444_v4  ;;  %v2677_v42 = vpop.f32.mrf.mxu3  ;;  %v4410_v40 = vld [vmem:[%s8765_s8 + $0xa28] sm:$0xff] }
 0x33e   : > { %3035 = vmatpush.msrb.mxu1 %v2373_v48  ;;  %3297 = vmatpush.msrb.mxu2 %v4440_v19  ;;  %v2678_v29 = vadd.f32 %v2677_v42, %v2657_v43  ;;  %v3518_v48 = vld [vmem:[%s8767_s10 + $0x168] sm:$0xff]  ;;  %v4491_v42 = vld [vmem:[%s8765_s8 + $0xcb0] sm:$0xff]  ;;  %v4480_v43 = vld [vmem:[%s8765_s8 + $0xc58] sm:$0xff] }
 0x33f   : > { %3349 = vmatpush.msrb.mxu0 %v4500_v53  ;;  %3377 = vmatpush.msrb.mxu3 %v4441_v14  ;;  %v4418_v19 = vld [vmem:[%s8765_s8 + $0xa68] sm:$0xff]  ;;  %v4411_v53 = vld [vmem:[%s8765_s8 + $0xa30] sm:$0xff] }
 0x340   : > { %3036 = vmatpush.msrb.mxu1 %v2370_v32  ;;  %3298 = vmatpush.msrb.mxu2 %v4437_v35  ;;  %v4407_v14 = vld [vmem:[%s8765_s8 + $0xa10] sm:$0xff] }
 0x341   : > { %3350 = vmatpush.msrb.mxu0 %v4497_v26  ;;  %3378 = vmatpush.msrb.mxu3 %v4438_v27  ;;  %v4415_v32 = vld [vmem:[%s8765_s8 + $0xa50] sm:$0xff]  ;;  %v4408_v26 = vld [vmem:[%s8765_s8 + $0xa18] sm:$0xff] }
 0x342   : > { %3037 = vmatpush.msrb.mxu1 %v2367_v16  ;;  %3299 = vmatpush.msrb.mxu2 %v4434_v30  ;;  %v3515_v35 = vld [vmem:[%s8767_s10 + $0x150] sm:$0xff]  ;;  %v4404_v27 = vld [vmem:[%s8765_s8 + $0x9f8] sm:$0xff] }
 0x343   : > { %3351 = vmatpush.msrb.mxu0 %v4494_v37  ;;  %3379 = vmatpush.msrb.mxu3 %v4435_v24  ;;  %v4412_v16 = vld [vmem:[%s8765_s8 + $0xa38] sm:$0xff]  ;;  %v4401_v37 = vld [vmem:[%s8765_s8 + $0x9e0] sm:$0xff] }
 0x344   : > { %3216 = vmatpush.msra.mxu1 %v4442_v23  ;;  %3300 = vmatpush.msrb.mxu2 %v4431_v10  ;;  %v3512_v30 = vld [vmem:[%s8767_s10 + $0x138] sm:$0xff]  ;;  %v4405_v23 = vld [vmem:[%s8765_s8 + $0xa00] sm:$0xff] }
 0x345   : > { %4396 = vmatmul.msk.f32.vlgmr.msrb.gmra.mxu1 %vm2557_vm4, %v7282_v18  ;;  %3352 = vmatmul.f32.vlgmr.msrb.gmra.mxu0 %v8106_v61  ;;  %v4436_v18 = vld [vmem:[%s8765_s8 + $0xaf8] sm:$0xff]  ;;  %v4409_v24 = vld [vmem:[%s8765_s8 + $0xa20] sm:$0xff] }
 0x346   : > { %3368 = vmatpush.msra.mxu0 %v4551_v39  ;;  %3217 = vmatpush.msra.mxu1 %v4439_v44  ;;  %v3509_v10 = vld [vmem:[%s8767_s10 + $0x120] sm:$0xff]  ;;  %v4402_v39 = vld [vmem:[%s8765_s8 + $0x9e8] sm:$0xff] }
 0x347   : > { %3380 = vmatpush.msrb.mxu3 %v4432_v45  ;;  %3301 = vmatpush.msrb.mxu2 %v4428_v49  ;;  %v2617_v58 = vpop.f32.mrf.mxu1  ;;  %v4398_v44 = vld [vmem:[%s8765_s8 + $0x9c8] sm:$0xff]  ;;  %v3199_v45 = vrot.slane %v7318_v57, 2  ;;  %v4399_v49 = vld [vmem:[%s8765_s8 + $0x9d0] sm:$0xff] }
 0x348   : > { %3369 = vmatpush.msra.mxu0 %v4548_v22  ;;  %3218 = vmatpush.msra.mxu1 %v4436_v18  ;;  %v2618_v8 = vadd.f32 %v2617_v58, %v8081_v50  ;;  %v4417_v50 = vld [vmem:[%s8765_s8 + $0xa60] sm:$0xff]  ;;  %v3503_v18 = vld [vmem:[%s8767_s10 + $0xf0] sm:$0xff]  ;;  %v3554_v57 = vld [vmem:[%s8767_s10 + $0x288] sm:$0xff] }
 0x349   : > { %3381 = vmatpush.msrb.mxu3 %v4429_v52  ;;  %3302 = vmatpush.msrb.mxu2 %v4425_v20  ;;  %v4403_v52 = vld [vmem:[%s8765_s8 + $0x9f0] sm:$0xff]  ;;  %v4489_v20 = vld [vmem:[%s8765_s8 + $0xca0] sm:$0xff]  ;;  %v4400_v58 = vld [vmem:[%s8765_s8 + $0x9d8] sm:$0xff] }
 0x34a   : > { %3370 = vmatpush.msra.mxu0 %v4545_v55  ;;  %3219 = vmatpush.msra.mxu1 %v4433_v36  ;;  %v8208_v25 = vadd.f32 %v2637_v54, %v2618_v8  ;;  %v4492_v54 = vld [vmem:[%s8765_s8 + $0xcb8] sm:$0xff]  ;;  %v3551_v36 = vld [vmem:[%s8767_s10 + $0x270] sm:$0xff] }
 0x34b   : > { %3382 = vmatpush.msrb.mxu3 %v4426_v38  ;;  %3303 = vmatpush.msrb.mxu2 %v4422_v59  ;;  %v3500_v55 = vld [vmem:[%s8767_s10 + $0xd8] sm:$0xff]  ;;  %v4486_v38 = vld [vmem:[%s8765_s8 + $0xc88] sm:$0xff]  ;;  %v3497_v59 = vld [vmem:[%s8767_s10 + $0xc0] sm:$0xff] }
 0x34c   : > { %3371 = vmatpush.msra.mxu0 %v4542_v9  ;;  %3220 = vmatpush.msra.mxu1 %v4430_v21  ;;  %v3548_v8 = vld [vmem:[%s8767_s10 + $0x258] sm:$0xff]  ;;  %v4397_v9 = vld [vmem:[%s8765_s8 + $0x9c0] sm:$0xff]  ;;  %v4483_v21 = vld [vmem:[%s8765_s8 + $0xc70] sm:$0xff] }
 0x34d   : > { %3383 = vmatpush.msrb.mxu3 %v4423_v56  ;;  %v2697_v7 = vpop.f32.mrf.mxu2  ;;  %3304 = vmatpush.msrb.mxu2 %v4419_v28  ;;  %v3494_v56 = vld [vmem:[%s8767_s10 + $0xa8] sm:$0xff]  ;;  %v4488_v28 = vld [vmem:[%s8765_s8 + $0xc98] sm:$0xff] }
 0x34e   : > { %3448 = vmatpush.msrb.mxu0 %v4552_v2  ;;  %v2698_v15 = vadd.f32 %v2697_v7, %v2678_v29  ;;  %3221 = vmatpush.msra.mxu1 %v4427_v47  ;;  %v3545_v2 = vld [vmem:[%s8767_s10 + $0x240] sm:$0xff]  ;;  %v3491_v29 = vld [vmem:[%s8767_s10 + $0x90] sm:$0xff]  ;;  %v3542_v47 = vld [vmem:[%s8767_s10 + $0x228] sm:$0xff] }
 0x34f   : > { %4554 = vmatmul.msk.f32.vlgmr.msra.gmra.mxu0 %vm2557_vm4, %v8109_v33  ;;  %3384 = vmatpush.msrb.mxu3 %v4420_v62  ;;  %v4477_v62 = vld [vmem:[%s8765_s8 + $0xc40] sm:$0xff]  ;;  %v3539_v7 = vld [vmem:[%s8767_s10 + $0x210] sm:$0xff] }
 0x350   : > { %3449 = vmatpush.msrb.mxu0 %v4549_v17  ;;  %3305 = vmatpush.msrb.mxu2 %v4416_v5  ;;  %v2717_v34 = vpop.f32.mrf.mxu1  ;;  %v4485_v17 = vld [vmem:[%s8765_s8 + $0xc80] sm:$0xff]  ;;  %v3488_v5 = vld [vmem:[%s8767_s10 + $0x78] sm:$0xff] }
 0x351   : > { %3222 = vmatpush.msra.mxu1 %v4424_v63  ;;  %3385 = vmatpush.msrb.mxu3 %v4417_v50  ;;  %v8251_v4 = vadd.f32 %v2717_v34, %v2698_v15  ;;  %v4474_v63 = vld [vmem:[%s8765_s8 + $0xc28] sm:$0xff]  ;;  %v3485_v15 = vld [vmem:[%s8767_s10 + $0x60] sm:$0xff] }
 0x352   : > { %3450 = vmatpush.msrb.mxu0 %v4546_v13  ;;  %3306 = vmatpush.msrb.mxu2 %v4413_v31  ;;  %v4482_v50 = vld [vmem:[%s8765_s8 + $0xc68] sm:$0xff]  ;;  %v3536_v13 = vld [vmem:[%s8767_s10 + $0x1f8] sm:$0xff]  ;;  %v4471_v31 = vld [vmem:[%s8765_s8 + $0xc10] sm:$0xff] }
 0x353   : > { %3223 = vmatpush.msra.mxu1 %v4421_v3  ;;  %3386 = vmatpush.msrb.mxu3 %v4414_v11  ;;  %v4479_v3 = vld [vmem:[%s8765_s8 + $0xc50] sm:$0xff]  ;;  %v3482_v11 = vld [vmem:[%s8767_s10 + $0x48] sm:$0xff]  ;;  %v3533_v34 = vld [vmem:[%s8767_s10 + $0x1e0] sm:$0xff] }
 0x354   : > { %3451 = vmatpush.msrb.mxu0 %v4543_v51  ;;  %3307 = vmatpush.msrb.mxu2 %v4410_v40  ;;  %v4468_v51 = vld [vmem:[%s8765_s8 + $0xbf8] sm:$0xff] }
 0x355   : > { %3224 = vmatpush.msra.mxu1 %v4418_v19  ;;  %3387 = vmatpush.msrb.mxu3 %v4411_v53  ;;  %v4476_v40 = vld [vmem:[%s8765_s8 + $0xc38] sm:$0xff]  ;;  %v3530_v19 = vld [vmem:[%s8767_s10 + $0x1c8] sm:$0xff]  ;;  %v4465_v53 = vld [vmem:[%s8765_s8 + $0xbe0] sm:$0xff] }
 0x356   : > { %3557 = vmatpush.msra.mxu0 %v3518_v48  ;;  %3308 = vmatpush.msrb.mxu2 %v4407_v14  ;;  %v3479_v48 = vld [vmem:[%s8767_s10 + $0x30] sm:$0xff]  ;;  %v4473_v14 = vld [vmem:[%s8765_s8 + $0xc20] sm:$0xff] }
 0x357   : > { %4555 = vmatmul.msk.f32.vlgmr.msrb.gmra.mxu0 %vm2557_vm4, %v8109_v33  ;;  %3225 = vmatpush.msra.mxu1 %v4415_v32  ;;  %v3200_v33 = vrot.slane %v2217_v46, 2  ;;  %v3506_v46 = vld [vmem:[%s8767_s10 + $0x108] sm:$0xff]  ;;  %v3476_v32 = vld [vmem:[%s8767_s10 + $0x18] sm:$0xff] }
 0x358   : > { %3558 = vmatpush.msra.mxu0 %v3515_v35  ;;  %3388 = vmatpush.msrb.mxu3 %v4408_v26  ;;  %v3527_v35 = vld [vmem:[%s8767_s10 + $0x1b0] sm:$0xff]  ;;  %v4462_v26 = vld [vmem:[%s8765_s8 + $0xbc8] sm:$0xff] }
 0x359   : > { %3309 = vmatpush.msrb.mxu2 %v4404_v27  ;;  %3226 = vmatpush.msra.mxu1 %v4412_v16  ;;  %v3201_v22 = vsel %vm585_vm1, %v3199_v45, %v3200_v33  ;;  %v4470_v27 = vld [vmem:[%s8765_s8 + $0xc08] sm:$0xff]  ;;  %v3473_v16 = vld [vmem:[%s8767_s10] sm:$0xff] }
 0x35a   : > { %3559 = vmatpush.msra.mxu0 %v3512_v30  ;;  %3389 = vmatpush.msrb.mxu3 %v4405_v23  ;;  %v3524_v30 = vld [vmem:[%s8767_s10 + $0x198] sm:$0xff]  ;;  %v4459_v23 = vld [vmem:[%s8765_s8 + $0xbb0] sm:$0xff]  ;;  %v3521_v33 = vld [vmem:[%s8767_s10 + $0x180] sm:$0xff] }
 0x35b   : > { %3310 = vmatpush.msrb.mxu2 %v4401_v37  ;;  %3227 = vmatpush.msra.mxu1 %v4409_v24  ;;  %v4467_v37 = vld [vmem:[%s8765_s8 + $0xbf0] sm:$0xff]  ;;  %v3556_v24 = vld [vmem:[%s8767_s10 + $0x298] sm:$0xff]  ;;  %v3517_v45 = vld [vmem:[%s8767_s10 + $0x160] sm:$0xff] }
 0x35c   : > { %3560 = vmatpush.msra.mxu0 %v3509_v10  ;;  %3390 = vmatpush.msrb.mxu3 %v4402_v39  ;;  %v4456_v10 = vld [vmem:[%s8765_s8 + $0xb98] sm:$0xff] }
 0x35d   : > { %3311 = vmatpush.msrb.mxu2 %v4398_v44  ;;  %3228 = vmatpush.msra.mxu1 %v4406_v41  ;;  %v3520_v39 = vld [vmem:[%s8767_s10 + $0x178] sm:$0xff]  ;;  %v3553_v44 = vld [vmem:[%s8767_s10 + $0x280] sm:$0xff] }
 0x35e   : > { %3561 = vmatpush.msra.mxu0 %v3506_v46  ;;  %3312 = vmatmul.f32.vlgmr.msrb.gmra.mxu2 %v3201_v22  ;;  %v4464_v41 = vld [vmem:[%s8765_s8 + $0xbd8] sm:$0xff]  ;;  %v4453_v46 = vld [vmem:[%s8765_s8 + $0xb80] sm:$0xff] }
 0x35f   : > { %3391 = vmatpush.msrb.mxu3 %v4399_v49  ;;  %3396 = vmatpush.msra.mxu2 %v4492_v54  ;;  %v3550_v49 = vld [vmem:[%s8767_s10 + $0x268] sm:$0xff]  ;;  %v4461_v54 = vld [vmem:[%s8765_s8 + $0xbc0] sm:$0xff] }
 0x360   : > { %3392 = vmatmul.f32.vlgmr.msrb.gmra.mxu3 %v3201_v22  ;;  %3562 = vmatpush.msra.mxu0 %v3503_v18  ;;  %v3514_v18 = vld [vmem:[%s8767_s10 + $0x148] sm:$0xff] }
 0x361   : > { %3584 = vmatpush.msra.mxu3 %v3554_v57  ;;  %3229 = vmatpush.msra.mxu1 %v4403_v52  ;;  %v3547_v57 = vld [vmem:[%s8767_s10 + $0x250] sm:$0xff]  ;;  %v4458_v52 = vld [vmem:[%s8765_s8 + $0xba8] sm:$0xff] }
 0x362   : > { %3397 = vmatpush.msra.mxu2 %v4489_v20  ;;  %3563 = vmatpush.msra.mxu0 %v3500_v55  ;;  %v4447_v20 = vld [vmem:[%s8765_s8 + $0xb50] sm:$0xff] }
 0x363   : > { %3585 = vmatpush.msra.mxu3 %v3551_v36  ;;  %3230 = vmatpush.msra.mxu1 %v4400_v58  ;;  %v3511_v55 = vld [vmem:[%s8767_s10 + $0x130] sm:$0xff]  ;;  %v3544_v36 = vld [vmem:[%s8767_s10 + $0x238] sm:$0xff] }
 0x364   : > { %3398 = vmatpush.msra.mxu2 %v4486_v38  ;;  %3564 = vmatpush.msra.mxu0 %v3497_v59  ;;  %v4455_v58 = vld [vmem:[%s8765_s8 + $0xb90] sm:$0xff]  ;;  %v8511_v38 = vpop.f32.mrf.mxu2 }
 0x365   : > { %3586 = vmatpush.msra.mxu3 %v3548_v8  ;;  %3231 = vmatpush.msra.mxu1 %v4397_v9  ;;  %v3519_v59 = vld [vmem:[%s8767_s10 + $0x170] sm:$0xff]  ;;  %v3508_v8 = vld [vmem:[%s8767_s10 + $0x118] sm:$0xff]  ;;  %v3541_v9 = vld [vmem:[%s8767_s10 + $0x220] sm:$0xff] }
 0x366   : > { %3399 = vmatpush.msra.mxu2 %v4483_v21  ;;  %3232 = vmatmul.f32.vlgmr.msra.gmra.mxu1 %v3201_v22  ;;  %v4450_v22 = vld [vmem:[%s8765_s8 + $0xb68] sm:$0xff]  ;;  %v4452_v21 = vld [vmem:[%s8765_s8 + $0xb78] sm:$0xff] }
 0x367   : > { %3316 = vmatpush.msrb.mxu1 %v4491_v42  ;;  %3565 = vmatpush.msra.mxu0 %v3494_v56  ;;  %v3516_v42 = vld [vmem:[%s8767_s10 + $0x158] sm:$0xff]  ;;  %v3505_v56 = vld [vmem:[%s8767_s10 + $0x100] sm:$0xff] }
 0x368   : > { %3587 = vmatpush.msra.mxu3 %v3545_v2  ;;  %3400 = vmatpush.msra.mxu2 %v4480_v43  ;;  %v3538_v2 = vld [vmem:[%s8767_s10 + $0x208] sm:$0xff]  ;;  %v4449_v43 = vld [vmem:[%s8765_s8 + $0xb60] sm:$0xff] }
 0x369   : > { %3317 = vmatpush.msrb.mxu1 %v4488_v28  ;;  %3566 = vmatpush.msra.mxu0 %v3491_v29  ;;  %v3513_v29 = vld [vmem:[%s8767_s10 + $0x140] sm:$0xff] }
 0x36a   : > { %3588 = vmatpush.msra.mxu3 %v3542_v47  ;;  %3401 = vmatpush.msra.mxu2 %v4477_v62  ;;  %v8541_v28 = vpop.f32.mrf.mxu1  ;;  %v3502_v47 = vld [vmem:[%s8767_s10 + $0xe8] sm:$0xff]  ;;  %v3535_v62 = vld [vmem:[%s8767_s10 + $0x1f0] sm:$0xff] }
 0x36b   : > { %3318 = vmatpush.msrb.mxu1 %v4485_v17  ;;  %3567 = vmatpush.msra.mxu0 %v3488_v5  ;;  %v4446_v17 = vld [vmem:[%s8765_s8 + $0xb48] sm:$0xff]  ;;  %v8555_v5 = vpop.f32.mrf.mxu0 }
 0x36c   : > { %3589 = vmatpush.msra.mxu3 %v3539_v7  ;;  %3402 = vmatpush.msra.mxu2 %v4474_v63  ;;  %v3510_v7 = vld [vmem:[%s8767_s10 + $0x128] sm:$0xff]  ;;  %v4540_v63 = vld [vmem:[%s8765_s8 + $0xe38] sm:$0xff] }
 0x36d   : > { %3319 = vmatpush.msrb.mxu1 %v4482_v50  ;;  %3568 = vmatpush.msra.mxu0 %v3485_v15  ;;  %v3499_v50 = vld [vmem:[%s8767_s10 + $0xd0] sm:$0xff] }
 0x36e   : > { %3590 = vmatpush.msra.mxu3 %v3536_v13  ;;  %3403 = vmatpush.msra.mxu2 %v4471_v31  ;;  %v3532_v13 = vld [vmem:[%s8767_s10 + $0x1d8] sm:$0xff]  ;;  %v3507_v31 = vld [vmem:[%s8767_s10 + $0x110] sm:$0xff] }
 0x36f   : > { %3320 = vmatpush.msrb.mxu1 %v4479_v3  ;;  %3569 = vmatpush.msra.mxu0 %v3482_v11  ;;  %v4537_v3 = vld [vmem:[%s8765_s8 + $0xe20] sm:$0xff]  ;;  %v3496_v11 = vld [vmem:[%s8767_s10 + $0xb8] sm:$0xff] }
 0x370   : > { %3591 = vmatpush.msra.mxu3 %v3533_v34  ;;  %3404 = vmatpush.msra.mxu2 %v4468_v51  ;;  %v3529_v34 = vld [vmem:[%s8767_s10 + $0x1c0] sm:$0xff]  ;;  %v3504_v51 = vld [vmem:[%s8767_s10 + $0xf8] sm:$0xff] }
 0x371   : > { %3321 = vmatpush.msrb.mxu1 %v4476_v40  ;;  %3570 = vmatpush.msra.mxu0 %v3479_v48  ;;  %v2819_v15 = vpop.f32.mrf.mxu2  ;;  %v4534_v40 = vld [vmem:[%s8765_s8 + $0xe08] sm:$0xff]  ;;  %v3493_v48 = vld [vmem:[%s8767_s10 + $0xa0] sm:$0xff] }
 0x372   : > { %3592 = vmatpush.msra.mxu3 %v3530_v19  ;;  %3405 = vmatpush.msra.mxu2 %v4465_v53  ;;  %v3526_v19 = vld [vmem:[%s8767_s10 + $0x1a8] sm:$0xff] }
 0x373   : > { %3322 = vmatpush.msrb.mxu1 %v4473_v14  ;;  %3571 = vmatpush.msra.mxu0 %v3476_v32  ;;  %v4531_v14 = vld [vmem:[%s8765_s8 + $0xdf0] sm:$0xff]  ;;  %v3490_v32 = vld [vmem:[%s8767_s10 + $0x88] sm:$0xff] }
 0x374   : > { %3593 = vmatpush.msra.mxu3 %v3527_v35  ;;  %3406 = vmatpush.msra.mxu2 %v4462_v26  ;;  %v2859_v26 = vpop.f32.mrf.mxu0 }
 0x375   : > { %3323 = vmatpush.msrb.mxu1 %v4470_v27  ;;  %3572 = vmatpush.msra.mxu0 %v3473_v16  ;;  %v3523_v27 = vld [vmem:[%s8767_s10 + $0x190] sm:$0xff]  ;;  %v3498_v16 = vld [vmem:[%s8767_s10 + $0xc8] sm:$0xff] }
 0x376   : > { %3594 = vmatpush.msra.mxu3 %v3524_v30  ;;  %3407 = vmatpush.msra.mxu2 %v4459_v23  ;;  %v4528_v30 = vld [vmem:[%s8765_s8 + $0xdd8] sm:$0xff] }
 0x377   : > { %3573 = vmatmul.f32.vlgmr.msra.gmra.mxu0 %v6053_v6  ;;  %3324 = vmatpush.msrb.mxu1 %v4467_v37  ;;  %v3487_v37 = vld [vmem:[%s8767_s10 + $0x70] sm:$0xff] }
 0x378   : > { %3676 = vmatpush.msrb.mxu0 %v3556_v24  ;;  %3595 = vmatpush.msra.mxu3 %v3521_v33  ;;  %v3495_v24 = vld [vmem:[%s8767_s10 + $0xb0] sm:$0xff]  ;;  %v4525_v33 = vld [vmem:[%s8765_s8 + $0xdc0] sm:$0xff] }
 0x379   : > { %3408 = vmatpush.msra.mxu2 %v4456_v10  ;;  %4556 = vmatmul.msk.f32.vlgmr.msra.gmra.mxu3 %vm1501_vm3, %v6149_v60  ;;  %v3484_v10 = vld [vmem:[%s8767_s10 + $0x58] sm:$0xff] }
 0x37a   : > { %3649 = vmatpush.msrb.mxu3 %v3520_v39  ;;  %3677 = vmatpush.msrb.mxu0 %v3553_v44  ;;  %v3492_v39 = vld [vmem:[%s8767_s10 + $0x98] sm:$0xff]  ;;  %v4522_v44 = vld [vmem:[%s8765_s8 + $0xda8] sm:$0xff] }
 0x37b   : > { %3325 = vmatpush.msrb.mxu1 %v4464_v41  ;;  %3409 = vmatpush.msra.mxu2 %v4453_v46  ;;  %v3481_v41 = vld [vmem:[%s8767_s10 + $0x40] sm:$0xff] }
 0x37c   : > { %3650 = vmatpush.msrb.mxu3 %v3517_v45  ;;  %3678 = vmatpush.msrb.mxu0 %v3550_v49  ;;  %v3489_v46 = vld [vmem:[%s8767_s10 + $0x80] sm:$0xff]  ;;  %v4519_v45 = vld [vmem:[%s8765_s8 + $0xd90] sm:$0xff]  ;;  %v3478_v49 = vld [vmem:[%s8767_s10 + $0x28] sm:$0xff] }
 0x37d   : > { %3326 = vmatpush.msrb.mxu1 %v4461_v54  ;;  %3410 = vmatpush.msra.mxu2 %v4450_v22  ;;  %v3486_v54 = vld [vmem:[%s8767_s10 + $0x68] sm:$0xff]  ;;  %v4516_v22 = vld [vmem:[%s8765_s8 + $0xd78] sm:$0xff] }
 0x37e   : > { %3651 = vmatpush.msrb.mxu3 %v3514_v18  ;;  %3679 = vmatpush.msrb.mxu0 %v3547_v57  ;;  %v3475_v18 = vld [vmem:[%s8767_s10 + $0x10] sm:$0xff] }
 0x37f   : > { %3327 = vmatpush.msrb.mxu1 %v4458_v52  ;;  %3411 = vmatpush.msra.mxu2 %v4447_v20  ;;  %v3483_v57 = vld [vmem:[%s8767_s10 + $0x50] sm:$0xff]  ;;  %v4513_v52 = vld [vmem:[%s8765_s8 + $0xd60] sm:$0xff]  ;;  %v3480_v20 = vld [vmem:[%s8767_s10 + $0x38] sm:$0xff] }
 0x380   : > { %3576 = vmatmul.f32.gmra.mxu0 %v6061_v1  ;;  %3652 = vmatpush.msrb.mxu3 %v3511_v55  ;;  %v4510_v55 = vld [vmem:[%s8765_s8 + $0xd48] sm:$0xff] }
 0x381   : > { %3680 = vmatpush.msrb.mxu0 %v3544_v36  ;;  %3328 = vmatpush.msrb.mxu1 %v4455_v58  ;;  %v3477_v36 = vld [vmem:[%s8767_s10 + $0x20] sm:$0xff]  ;;  %v4507_v58 = vld [vmem:[%s8765_s8 + $0xd30] sm:$0xff] }
 0x382   : > { %3412 = vmatmul.f32.vlgmr.msra.gmra.mxu2 %v7948_v12  ;;  %4557 = vmatmul.msk.f32.gmra.mxu3 %vm1501_vm3, %v6157_v0 }
 0x383   : > { %3603 = vmatpush.msrb.mxu2 %v3519_v59  ;;  %3653 = vmatpush.msrb.mxu3 %v3508_v8  ;;  %v3474_v59 = vld [vmem:[%s8767_s10 + $0x8] sm:$0xff]  ;;  %v4504_v8 = vld [vmem:[%s8765_s8 + $0xd18] sm:$0xff] }
 0x384   : > { %3681 = vmatpush.msrb.mxu0 %v3541_v9  ;;  %3329 = vmatpush.msrb.mxu1 %v4452_v21  ;;  %v4501_v9 = vld [vmem:[%s8765_s8 + $0xd00] sm:$0xff]  ;;  %v4498_v21 = vld [vmem:[%s8765_s8 + $0xce8] sm:$0xff] }
 0x385   : > { %3604 = vmatpush.msrb.mxu2 %v3516_v42  ;;  %3654 = vmatpush.msrb.mxu3 %v3505_v56  ;;  %v4495_v42 = vld [vmem:[%s8765_s8 + $0xcd0] sm:$0xff] }
 0x386   : > { %3682 = vmatpush.msrb.mxu0 %v3538_v2  ;;  %3330 = vmatpush.msrb.mxu1 %v4449_v43  ;;  %v3555_v56 = vld [vmem:[%s8767_s10 + $0x290] sm:$0xff]  ;;  %v2777_v2 = vpop.f32.mrf.mxu3  ;;  %v3549_v43 = vld [vmem:[%s8767_s10 + $0x260] sm:$0xff] }
 0x387   : > { %3605 = vmatpush.msrb.mxu2 %v3513_v29  ;;  %3655 = vmatpush.msrb.mxu3 %v3502_v47  ;;  %v3546_v29 = vld [vmem:[%s8767_s10 + $0x248] sm:$0xff] }
 0x388   : > { %3683 = vmatpush.msrb.mxu0 %v3535_v62  ;;  %3331 = vmatpush.msrb.mxu1 %v4446_v17 }
 0x389   : > { %3606 = vmatpush.msrb.mxu2 %v3510_v7  ;;  %3332 = vmatmul.f32.vlgmr.msrb.gmra.mxu1 %v7948_v12  ;;  %v2820_v12 = vadd.f32 %v2819_v15, %v8208_v25  ;;  %v3501_v25 = vld [vmem:[%s8767_s10 + $0xe0] sm:$0xff] }
 0x38a   : > { %3416 = vmatpush.msra.mxu1 %v4540_v63  ;;  %3656 = vmatpush.msrb.mxu3 %v3499_v50  ;;  %v3537_v7 = vld [vmem:[%s8767_s10 + $0x200] sm:$0xff]  ;;  %v3534_v50 = vld [vmem:[%s8767_s10 + $0x1e8] sm:$0xff] }
 0x38b   : > { %3684 = vmatpush.msrb.mxu0 %v3532_v13  ;;  %3607 = vmatpush.msrb.mxu2 %v3507_v31  ;;  %v3531_v13 = vld [vmem:[%s8767_s10 + $0x1d0] sm:$0xff] }
 0x38c   : > { %3417 = vmatpush.msra.mxu1 %v4537_v3  ;;  %3657 = vmatpush.msrb.mxu3 %v3496_v11  ;;  %v2839_v53 = vpop.f32.mrf.mxu1  ;;  %v2959_v11 = vpop.f32.mrf.mxu0 }
 0x38d   : > { %3685 = vmatpush.msrb.mxu0 %v3529_v34  ;;  %3608 = vmatpush.msrb.mxu2 %v3504_v51  ;;  %v2840_v35 = vadd.f32 %v2839_v53, %v2820_v12  ;;  %v3528_v34 = vld [vmem:[%s8767_s10 + $0x1b8] sm:$0xff]  ;;  %v3525_v51 = vld [vmem:[%s8767_s10 + $0x1a0] sm:$0xff]  ;;  %v3522_v12 = vld [vmem:[%s8767_s10 + $0x188] sm:$0xff] }
 0x38e   : > { %3418 = vmatpush.msra.mxu1 %v4534_v40  ;;  %3658 = vmatpush.msrb.mxu3 %v3493_v48  ;;  %v2899_v62 = vpop.f32.mrf.mxu3 }
 0x38f   : > { %3686 = vmatpush.msrb.mxu0 %v3526_v19  ;;  %3609 = vmatpush.msrb.mxu2 %v3501_v25  ;;  %v8613_v23 = vadd.f32 %v2859_v26, %v2840_v35  ;;  %v2900_v63 = vadd.f32 %v2899_v62, %v8251_v4 }
 0x390   : > { %3419 = vmatpush.msra.mxu1 %v4531_v14  ;;  %3659 = vmatpush.msrb.mxu3 %v3490_v32 }
 0x391   : > { %3687 = vmatpush.msrb.mxu0 %v3523_v27  ;;  %3610 = vmatpush.msrb.mxu2 %v3498_v16 }
 0x392   : > { %4560 = vmatmul.msk.f32.vlgmr.msrb.gmra.mxu0 %vm1501_vm3, %v6149_v60  ;;  %3420 = vmatpush.msra.mxu1 %v4528_v30 }
 0x393   : > { %3660 = vmatpush.msrb.mxu3 %v3487_v37  ;;  %3611 = vmatpush.msrb.mxu2 %v3495_v24  ;;  %v2919_v17 = vpop.f32.mrf.mxu2 }
 0x394   : > { %3421 = vmatpush.msra.mxu1 %v4525_v33  ;;  %v2920_v15 = vadd.f32 %v2919_v17, %v2900_v63  ;;  %v2979_v40 = vpop.f32.mrf.mxu0 }
 0x395   : > { %3661 = vmatpush.msrb.mxu3 %v3484_v10  ;;  %3612 = vmatpush.msrb.mxu2 %v3492_v39 }
 0x396   : > { %3422 = vmatpush.msra.mxu1 %v4522_v44  ;;  %v8708_v47 = vpop.f32.mrf.mxu1 }
 0x397   : > { %3662 = vmatpush.msrb.mxu3 %v3481_v41  ;;  %3613 = vmatpush.msrb.mxu2 %v3489_v46 }
 0x398   : > { %3423 = vmatpush.msra.mxu1 %v4519_v45 }
 0x399   : > { %3663 = vmatpush.msrb.mxu3 %v3478_v49  ;;  %3614 = vmatpush.msrb.mxu2 %v3486_v54 }
 0x39a   : > { %4561 = vmatmul.msk.f32.gmra.mxu0 %vm1501_vm3, %v6157_v0  ;;  %3424 = vmatpush.msra.mxu1 %v4516_v22 }
 0x39b   : > { %3664 = vmatpush.msrb.mxu3 %v3475_v18  ;;  %3615 = vmatpush.msrb.mxu2 %v3483_v57 }
 0x39c   : > { %3665 = vmatmul.f32.vlgmr.msrb.gmra.mxu3 %v6053_v6  ;;  %3425 = vmatpush.msra.mxu1 %v4513_v52  ;;  %v2999_v25 = vpop.f32.mrf.mxu3 }
 0x39d   : > { %3616 = vmatpush.msrb.mxu2 %v3480_v20 }
 0x39e   : > { %3426 = vmatpush.msra.mxu1 %v4510_v55 }
 0x39f   : > { %3617 = vmatpush.msrb.mxu2 %v3477_v36  ;;  %v3253_v48 = vpop.f32.mrf.mxu0 }
 0x3a0   : > { %3427 = vmatpush.msra.mxu1 %v4507_v58 }
 0x3a1   : > { %3618 = vmatpush.msrb.mxu2 %v3474_v59 }
 0x3a2   : > { %3428 = vmatpush.msra.mxu1 %v4504_v8  ;;  %3619 = vmatmul.f32.vlgmr.msrb.gmra.mxu2 %v6053_v6  ;;  %v3552_v6 = vld [vmem:[%s8767_s10 + $0x278] sm:$0xff] }
 0x3a4   : > { %3668 = vmatmul.f32.gmra.mxu3 %v6061_v1  ;;  %3429 = vmatpush.msra.mxu1 %v4501_v9  ;;  %v3459_v9 = vld [vmem:[%s8766_s9] sm:$0x7] }
 0x3a5   : > { %v3462_v62 = vperm.slane %v3459_v9, 1 }
 0x3a6   : > { %3430 = vmatpush.msra.mxu1 %v4498_v21 }
 0x3a8   : > { %3431 = vmatpush.msra.mxu1 %v4495_v42 }
 0x3a9   : > { %3432 = vmatmul.f32.vlgmr.msra.gmra.mxu1 %v8106_v61  ;;  %v3543_v61 = vld [vmem:[%s8767_s10 + $0x230] sm:$0xff] }
 0x3aa   : > { %3630 = vmatpush.msrb.mxu1 %v3555_v56  ;;  %3622 = vmatmul.f32.gmra.mxu2 %v6061_v1  ;;  %v3540_v1 = vld [vmem:[%s8767_s10 + $0x218] sm:$0xff]  ;;  %v3463_v56 = vperm.slane %v3459_v9, 2 }
 0x3ac   : > { %3631 = vmatpush.msrb.mxu1 %v3552_v6 }
 0x3ae   : > { %3632 = vmatpush.msrb.mxu1 %v3549_v43 }
 0x3b0   : > { %3633 = vmatpush.msrb.mxu1 %v3546_v29  ;;  %v2880_v29 = vadd.f32 %v8708_v47, %v8613_v23 }
 0x3b2   : > { %3634 = vmatpush.msrb.mxu1 %v3543_v61 }
 0x3b4   : > { %3635 = vmatpush.msrb.mxu1 %v3540_v1 }
 0x3b5   : > { %v3019_v32 = vpop.f32.mrf.mxu2 }
 0x3b6   : > { %3636 = vmatpush.msrb.mxu1 %v3537_v7 }
 0x3b7   : > { %v2939_v31 = vpop.f32.mrf.mxu1 }
 0x3b8   : > { %3637 = vmatpush.msrb.mxu1 %v3534_v50  ;;  %v2940_v3 = vadd.f32 %v2939_v31, %v2920_v15  ;;  %v3461_v50 = vperm.slane %v3459_v9, 0 }
 0x3ba   : > { %3638 = vmatpush.msrb.mxu1 %v3531_v13  ;;  %v2960_v4 = vadd.f32 %v2959_v11, %v2940_v3 }
 0x3bc   : > { %3639 = vmatpush.msrb.mxu1 %v3528_v34 }
 0x3be   : > { %3640 = vmatpush.msrb.mxu1 %v3525_v51 }
 0x3bf   : > { %v3273_v53 = vpop.f32.mrf.mxu3  ;;  %v3293_v16 = vpop.f32.mrf.mxu2 }
 0x3c0   : > { %3641 = vmatpush.msrb.mxu1 %v3522_v12 }
 0x3c1   : > { %4558 = vmatmul.msk.f32.vlgmr.msrb.gmra.mxu1 %vm1501_vm3, %v6149_v60  ;;  %v2758_v60 = vadd.f32 %v8555_v5, %v8541_v28 }
 0x3c2   : > { %v3353_v19 = vpop.f32.mrf.mxu0  ;;  %v3039_v26 = vpop.f32.mrf.mxu1 }
 0x3c3   : > { %v2778_v44 = vadd.f32 %v2777_v2, %v2758_v60 }
 0x3c5   : > { %v2798_v45 = vadd.f32 %v8511_v38, %v2778_v44 }
 0x3c7   : > { %v2980_v18 = vadd.f32 %v2979_v40, %v2798_v45 }
 0x3c9   : > { %4559 = vmatmul.msk.f32.gmra.mxu1 %vm1501_vm3, %v6157_v0  ;;  %v3000_v55 = vadd.f32 %v2999_v25, %v2980_v18 }
 0x3cb   : > { %v3020_v58 = vadd.f32 %v3019_v32, %v3000_v55 }
 0x3cc   : > { %v3373_v14 = vpop.f32.mrf.mxu0 }
 0x3cd   : > { %v3040_v5 = vadd.f32 %v3039_v26, %v3020_v58 }
 0x3d4   : > { %v3453_v27 = vpop.f32.mrf.mxu0 }
 0x3e1   : > { %v3313_v33 = vpop.f32.mrf.mxu2 }
 0x3e3   : > { %v3393_v35 = vpop.f32.mrf.mxu3  ;;  %v3233_v37 = vpop.f32.mrf.mxu1 }
 0x3e4   : > { %v3254_v20 = vadd.f32 %v3253_v48, %v3233_v37 }
 0x3e6   : > { %v3274_v8 = vadd.f32 %v3273_v53, %v3254_v20 }
 0x3e8   : > { %v3294_v6 = vadd.f32 %v3293_v16, %v3274_v8 }
 0x3ea   : > { %v3456_v63 = vadd.f32 %v3294_v6, %v2880_v29 }
 0x3f4   : > { %v3574_v24 = vpop.f32.mrf.mxu0 }
 0x3fc   : > { %v3597_v30 = vpop.f32.mrf.mxu3 }
 0x3fd   : > { %v3577_v39 = vpop.f32.mrf.mxu0  ;;  %v3598_v13 = vadd.f32 %v3597_v30, %v3574_v24 }
 0x3ff   : > { %v3701_v47 = vrot.slane %v3598_v13, 2 }
 0x405   : > { %v3600_v0 = vpop.f32.mrf.mxu3  ;;  %v3413_v41 = vpop.f32.mrf.mxu2 }
 0x406   : > { %v3333_v10 = vpop.f32.mrf.mxu1  ;;  %v3414_v49 = vadd.f32 %v3413_v41, %v3393_v35  ;;  %v3601_v17 = vadd.f32 %v3600_v0, %v3577_v39 }
 0x407   : > { %v3334_v22 = vadd.f32 %v3333_v10, %v3313_v33 }
 0x408   : > { %v3702_v12 = vrot.slane %v3601_v17, 2 }
 0x409   : > { %v3354_v36 = vadd.f32 %v3353_v19, %v3334_v22  ;;  %v3467_v19 = vadd.f32 %v3461_v50, %v3456_v63 }
 0x40a   : > { %v3703_v32 = vsel %vm585_vm1, %v3701_v47, %v3702_v12 }
 0x40b   : > { %v3374_v21 = vadd.f32 %v3373_v14, %v3354_v36  ;;  %v3470_v16 = vmax.f32 %v3467_v19, 0.0 }
 0x40d   : > { %v3457_v61 = vadd.f32 %v3374_v21, %v2960_v4  ;;  %v3713_v37 = vadd.f32 %v3703_v32, %v3470_v16 }
 0x40f   : > { %v3689_v57 = vpop.f32.mrf.mxu0  ;;  %v3468_v3 = vadd.f32 %v3462_v62, %v3457_v61 }
 0x411   : > { %v3471_v14 = vmax.f32 %v3468_v3, 0.0 }
 0x417   : > { %v3692_v43 = vpop.f32.mrf.mxu0 }
 0x41f   : > { %v3666_v54 = vpop.f32.mrf.mxu3 }
 0x420   : > { %v3690_v15 = vadd.f32 %v3689_v57, %v3666_v54 }
 0x422   : > { %v3707_v23 = vrot.slane %v3690_v15, 2 }
 0x425   : > { %v3620_v28 = vpop.f32.mrf.mxu2 }
 0x426   : > { %v3433_v46 = vpop.f32.mrf.mxu1 }
 0x427   : > { %v3434_v52 = vadd.f32 %v3433_v46, %v3414_v49  ;;  %v3669_v2 = vpop.f32.mrf.mxu3 }
 0x428   : > { %v3693_v1 = vadd.f32 %v3692_v43, %v3669_v2 }
 0x429   : > { %v3454_v59 = vadd.f32 %v3453_v27, %v3434_v52  ;;  %v3726_v27 = vlaneseq }
 0x42a   : > { %v3708_v11 = vrot.slane %v3693_v1, 2 }
 0x42b   : > { %v3458_v42 = vadd.f32 %v3454_v59, %v3040_v5  ;;  %vm3728_vm7 = vcmp.lt.s32.totalorder %v3726_v27, 384 }
 0x42c   : > { %v3709_v53 = vsel %vm585_vm1, %v3707_v23, %v3708_v11 }
 0x42d   : > { %v3469_v7 = vadd.f32 %v3463_v56, %v3458_v42  ;;  %v3623_v34 = vpop.f32.mrf.mxu2 }
 0x42f   : > { %v3472_v40 = vmax.f32 %v3469_v7, 0.0 }
 0x431   : > { %v3715_v35 = vadd.f32 %v3709_v53, %v3472_v40 }
 0x433   : > { %v3720_v33 = vrot.slane %v3715_v35, 6 }
 0x43e   : > { %v3643_v38 = vpop.f32.mrf.mxu1 }
 0x43f   : > { %v3644_v31 = vadd.f32 %v3643_v38, %v3620_v28 }
 0x441   : > { %v3704_v4 = vrot.slane %v3644_v31, 2 }
 0x446   : > { %v3646_v51 = vpop.f32.mrf.mxu1 }
 0x447   : > { %v3647_v48 = vadd.f32 %v3646_v51, %v3623_v34 }
 0x449   : > { %v3705_v25 = vrot.slane %v3647_v48, 2 }
 0x44b   : > { %v3706_v26 = vsel %vm585_vm1, %v3704_v4, %v3705_v25 }
 0x44c   : > { %v3714_v30 = vadd.f32 %v3706_v26, %v3471_v14 }
 0x44e   : > { %v3719_v24 = vrot.slane %v3714_v30, 7 }
 0x450   : > { %v3722_v10 = vsel %vm3721_vm5, %v3713_v37, %v3719_v24 }
 0x451   : > { %v3724_v60 = vsel %vm3723_vm6, %v3722_v10, %v3720_v33 }
 0x452   : > { %3730 = vst.msk [vmem:[%s384_s27] sm:$0x7] %vm3728_vm7, %v3724_v60 }
 0x453 PF: > { %s21_s17 = sadd.s32 1, %s4582_s17  }
 0x454   : > { %p18_p4 = scmp.ge.s32.totalorder %s21_s17, 4  }
 0x456   :  { %20 = sbr.rel (!%p18_p4) target bundleno = 1 (0x1), region = 102 }

</bundles_post_ra>
